<compile_context>
chip_gen: v7x
topology: tpu7x:2x2x1
jax: 0.10.0
libtpu: 0.0.40
codegen_flags: <defaults>
</compile_context>

<pallas_src>
import jax
import jax.numpy as jnp
from jax.experimental import pallas as pl
from jax.experimental.pallas import tpu as pltpu


def _mlp_decode_kernel(x_ref, w1_ref, b1_ref, w2_ref, b2_ref, w3_ref, b3_ref,
                       o_ref, h2_ref):
    j = pl.program_id(1)

    # Layers 1 & 2: computed once per batch tile (first output-column step),
    # cached in VMEM scratch for all remaining column tiles of this batch tile.
    @pl.when(j == 0)
    def _():
        h1 = jnp.tanh(
            jnp.dot(x_ref[...], w1_ref[...],
                    preferred_element_type=jnp.float32) + b1_ref[...])
        h2 = jnp.tanh(
            jnp.dot(h1.astype(jnp.bfloat16), w2_ref[...],
                    preferred_element_type=jnp.float32) + b2_ref[...])
        h2_ref[...] = h2.astype(jnp.bfloat16)

    # Layer 3: one lane-dense output-column tile per grid step.
    z = jnp.dot(h2_ref[...], w3_ref[...],
                preferred_element_type=jnp.float32) + b3_ref[...]
    o_ref[...] = jax.nn.sigmoid(z).astype(o_ref.dtype)


def _pick_col_tile(d3):
    """Largest lane-dense layer-3 column tile dividing d3 (cap 1024)."""
    for tn in (1024, 512, 256, 128):
        if d3 % tn == 0:
            return tn
    return d3  # non-128-multiple output width: single full-width tile


def generator_decode(x, params, *, bm=None, tn=None):
    """Fused decoder forward.

    x: (B, rep_dim) float32
    params: dict with w1 (d0,d1), b1 (1,d1), w2 (d1,d2), b2 (1,d2),
            w3 (d2,d3), b3 (1,d3), all float32.
    returns: (B, data_dim) float32
    """
    w1, b1 = params["w1"], params["b1"]
    w2, b2 = params["w2"], params["b2"]
    w3, b3 = params["w3"], params["b3"]
    B, d0 = x.shape
    d1 = w1.shape[1]
    d2 = w2.shape[1]
    d3 = w3.shape[1]

    # Output-column tile: lane-dense and dividing d3.
    if tn is None:
        tn = _pick_col_tile(d3)
    elif d3 % tn != 0:
        tn = d3

    # Batch tile: 256 rows for large batches (halves w3 HBM streaming),
    # 128 (one MXU height) otherwise so megacore keeps >= 2 parallel steps.
    if bm is None:
        bm = 256 if B >= 1024 else 128

    # Pad the batch up to a multiple of the batch tile; slice back at the end.
    num_bt = pl.cdiv(B, bm)
    Bp = num_bt * bm
    if Bp != B:
        x = jnp.pad(x, ((0, Bp - B), (0, 0)))

    # bf16 operands for the MXU; accumulation stays f32 inside the kernel.
    x_bf = x.astype(jnp.bfloat16)
    w1_bf = w1.astype(jnp.bfloat16)
    w2_bf = w2.astype(jnp.bfloat16)
    w3_bf = w3.astype(jnp.bfloat16)

    grid = (num_bt, d3 // tn)

    in_specs = [
        pl.BlockSpec((bm, d0), lambda i, j: (i, 0)),   # x batch tile
        pl.BlockSpec((d0, d1), lambda i, j: (0, 0)),   # w1 (fetched once)
        pl.BlockSpec((1, d1), lambda i, j: (0, 0)),    # b1
        pl.BlockSpec((d1, d2), lambda i, j: (0, 0)),   # w2 (fetched once)
        pl.BlockSpec((1, d2), lambda i, j: (0, 0)),    # b2
        pl.BlockSpec((d2, tn), lambda i, j: (0, j)),   # w3 column tile
        pl.BlockSpec((1, tn), lambda i, j: (0, j)),    # b3 column tile
    ]
    out_spec = pl.BlockSpec((bm, tn), lambda i, j: (i, j))

    # VMEM budget: double-buffered inputs/outputs + scratch + headroom.
    est = 2 * ((bm * d0 + d0 * d1 + d1 * d2 + d2 * tn) * 2   # bf16 tiles
               + (d1 + d2 + tn) * 4                          # f32 biases
               + bm * tn * 4)                                # f32 output tile
    est += bm * d2 * 2                                       # bf16 h2 scratch
    vmem_limit = int(min(max(est + (4 << 20), 32 << 20), 64 << 20))

    out = pl.pallas_call(
        _mlp_decode_kernel,
        out_shape=jax.ShapeDtypeStruct((Bp, d3), jnp.float32),
        grid_spec=pltpu.PrefetchScalarGridSpec(
            num_scalar_prefetch=0,
            grid=grid,
            in_specs=in_specs,
            out_specs=out_spec,
            scratch_shapes=[pltpu.VMEM((bm, d2), jnp.bfloat16)],
        ),
        compiler_params=pltpu.CompilerParams(
            dimension_semantics=("parallel", "arbitrary"),
            vmem_limit_bytes=vmem_limit,
        ),
    )(x_bf, w1_bf, b1, w2_bf, b2, w3_bf, b3)
    return out[:B]


def init_params(key, layers):
    """Deterministic init. layers = [d0, d1, d2, d3] (decoder order)."""
    params = {}
    keys = jax.random.split(key, 2 * (len(layers) - 1))
    for li in range(len(layers) - 1):
        fan_in, fan_out = layers[li], layers[li + 1]
        bound = 1.0 / jnp.sqrt(fan_in)  # torch.nn.Linear default scale
        w = jax.random.uniform(keys[2 * li], (fan_in, fan_out),
                               minval=-bound, maxval=bound, dtype=jnp.float32)
        b = jax.random.uniform(keys[2 * li + 1], (1, fan_out),
                               minval=-bound, maxval=bound, dtype=jnp.float32)
        params[f"w{li + 1}"] = w
        params[f"b{li + 1}"] = b
    return params


def reference_decode_f32(x, params):
    """Pure-f32 reference (module semantics)."""
    h1 = jnp.tanh(x @ params["w1"] + params["b1"])
    h2 = jnp.tanh(h1 @ params["w2"] + params["b2"])
    return jax.nn.sigmoid(h2 @ params["w3"] + params["b3"])


def reference_decode_bf16(x, params):
    """Reference emulating the kernel numerics (bf16 operands, f32 accum)."""
    xb = x.astype(jnp.bfloat16)
    h1 = jnp.tanh(jnp.dot(xb, params["w1"].astype(jnp.bfloat16),
                          preferred_element_type=jnp.float32) + params["b1"])
    h2 = jnp.tanh(jnp.dot(h1.astype(jnp.bfloat16),
                          params["w2"].astype(jnp.bfloat16),
                          preferred_element_type=jnp.float32) + params["b2"])
    z = jnp.dot(h2.astype(jnp.bfloat16), params["w3"].astype(jnp.bfloat16),
                preferred_element_type=jnp.float32) + params["b3"]
    return jax.nn.sigmoid(z)


if __name__ == "__main__":
    # Small, structure-identical configuration:
    #   encoder layers would be [data_dim, 512, 256, rep_dim]
    #   decoder (reversed):      [rep_dim, 256, 512, data_dim]
    rep_dim = 128
    data_dim = 1024
    de_layers = [rep_dim, 256, 512, data_dim]
    batch = 200  # not a multiple of the 128-row tile: exercises the padding path

    key = jax.random.PRNGKey(0)
    k_x, k_p = jax.random.split(key)
    x = jax.random.normal(k_x, (batch, rep_dim), dtype=jnp.float32)
    params = init_params(k_p, de_layers)

    out = generator_decode(x, params)
    out = jax.block_until_ready(out)
    assert out.shape == (batch, data_dim)

    # Tight check vs. a reference using the same bf16-operand / f32-accum math.
    ref_bf16 = reference_decode_bf16(x, params)
    assert jnp.allclose(out, ref_bf16, atol=1e-3, rtol=1e-3), \
        "mismatch vs bf16-emulated reference"

    # Loose check vs. the pure-f32 module semantics (expected bf16 rounding).
    ref_f32 = reference_decode_f32(x, params)
    assert jnp.allclose(out, ref_f32, atol=3e-2, rtol=3e-2), \
        "mismatch vs f32 reference"

    print("KERNEL_OK")
</pallas_src>

<mosaic_0001>
module attributes {stable_mosaic.version = 11 : i64} {
  func.func @_mlp_decode_kernel(%arg0: i32, %arg1: i32, %arg2: memref<128x128xbf16, #tpu.memory_space<vmem>>, %arg3: memref<128x256xbf16, #tpu.memory_space<vmem>>, %arg4: memref<1x256xf32, #tpu.memory_space<vmem>>, %arg5: memref<256x512xbf16, #tpu.memory_space<vmem>>, %arg6: memref<1x512xf32, #tpu.memory_space<vmem>>, %arg7: memref<512x1024xbf16, #tpu.memory_space<vmem>>, %arg8: memref<1x1024xf32, #tpu.memory_space<vmem>>, %arg9: memref<128x1024xf32, #tpu.memory_space<vmem>>, %arg10: memref<128x512xbf16, #tpu.memory_space<vmem>>) attributes {dimension_semantics = [#tpu.dimension_semantics<parallel>, #tpu.dimension_semantics<arbitrary>], iteration_bounds = array<i64: 2, 1>, scalar_prefetch = 0 : i64, scratch_operands = 1 : i64, tpu.core_type = #tpu.core_type<tc>, window_params = [{transform_indices = @transform_0, window_bounds = array<i64: 128, 128>}, {pipeline_mode = #tpu.pipeline_mode<synchronous>, transform_indices = @transform_1, window_bounds = array<i64: 128, 256>}, {pipeline_mode = #tpu.pipeline_mode<synchronous>, transform_indices = @transform_2, window_bounds = array<i64: 1, 256>}, {pipeline_mode = #tpu.pipeline_mode<synchronous>, transform_indices = @transform_3, window_bounds = array<i64: 256, 512>}, {pipeline_mode = #tpu.pipeline_mode<synchronous>, transform_indices = @transform_4, window_bounds = array<i64: 1, 512>}, {transform_indices = @transform_5, window_bounds = array<i64: 512, 1024>}, {transform_indices = @transform_6, window_bounds = array<i64: 1, 1024>}, {transform_indices = @transform_7, window_bounds = array<i64: 128, 1024>}]} {
    %c0_i32 = arith.constant 0 : i32
    %0 = arith.cmpi eq, %arg1, %c0_i32 : i32
    %1 = arith.extui %0 : i1 to i32
    %c0_i32_0 = arith.constant 0 : i32
    %2 = arith.cmpi ne, %1, %c0_i32_0 : i32
    scf.if %2 {
      %c0_9 = arith.constant 0 : index
      %c0_10 = arith.constant 0 : index
      %15 = vector.load %arg2[%c0_9, %c0_10] : memref<128x128xbf16, #tpu.memory_space<vmem>>, vector<128x128xbf16>
      %c0_11 = arith.constant 0 : index
      %c0_12 = arith.constant 0 : index
      %16 = vector.load %arg3[%c0_11, %c0_12] : memref<128x256xbf16, #tpu.memory_space<vmem>>, vector<128x256xbf16>
      %cst_13 = arith.constant dense<0.000000e+00> : vector<128x256xf32>
      %17 = tpu.matmul %15, %16, %cst_13 {dimension_numbers = #tpu.dot_dimension_numbers<[1], [0], [0], [1], [0, 0, 1, 1], [], []>} : vector<128x128xbf16>, vector<128x256xbf16>, vector<128x256xf32> -> vector<128x256xf32>
      %c0_14 = arith.constant 0 : index
      %c0_15 = arith.constant 0 : index
      %18 = vector.load %arg4[%c0_14, %c0_15] : memref<1x256xf32, #tpu.memory_space<vmem>>, vector<1x256xf32>
      %19 = vector.broadcast %18 : vector<1x256xf32> to vector<128x256xf32>
      %20 = arith.addf %17, %19 : vector<128x256xf32>
      %21 = math.tanh %20 : vector<128x256xf32>
      %22 = arith.truncf %21 : vector<128x256xf32> to vector<128x256xbf16>
      %c0_16 = arith.constant 0 : index
      %c0_17 = arith.constant 0 : index
      %23 = vector.load %arg5[%c0_16, %c0_17] : memref<256x512xbf16, #tpu.memory_space<vmem>>, vector<256x512xbf16>
      %cst_18 = arith.constant dense<0.000000e+00> : vector<128x512xf32>
      %24 = tpu.matmul %22, %23, %cst_18 {dimension_numbers = #tpu.dot_dimension_numbers<[1], [0], [0], [1], [0, 0, 1, 1], [], []>} : vector<128x256xbf16>, vector<256x512xbf16>, vector<128x512xf32> -> vector<128x512xf32>
      %c0_19 = arith.constant 0 : index
      %c0_20 = arith.constant 0 : index
      %25 = vector.load %arg6[%c0_19, %c0_20] : memref<1x512xf32, #tpu.memory_space<vmem>>, vector<1x512xf32>
      %26 = vector.broadcast %25 : vector<1x512xf32> to vector<128x512xf32>
      %27 = arith.addf %24, %26 : vector<128x512xf32>
      %28 = math.tanh %27 : vector<128x512xf32>
      %29 = arith.truncf %28 : vector<128x512xf32> to vector<128x512xbf16>
      %c0_21 = arith.constant 0 : index
      %c0_22 = arith.constant 0 : index
      %30 = vector.load %arg10[%c0_21, %c0_22] : memref<128x512xbf16, #tpu.memory_space<vmem>>, vector<128x512xbf16>
      tpu.vector_store %arg10[%c0_21, %c0_22], %29 {strides = array<i32>} : memref<128x512xbf16, #tpu.memory_space<vmem>>, vector<128x512xbf16>,
    } else {
    }
    %c0 = arith.constant 0 : index
    %c0_1 = arith.constant 0 : index
    %3 = vector.load %arg10[%c0, %c0_1] : memref<128x512xbf16, #tpu.memory_space<vmem>>, vector<128x512xbf16>
    %c0_2 = arith.constant 0 : index
    %c0_3 = arith.constant 0 : index
    %4 = vector.load %arg7[%c0_2, %c0_3] : memref<512x1024xbf16, #tpu.memory_space<vmem>>, vector<512x1024xbf16>
    %cst = arith.constant dense<0.000000e+00> : vector<128x1024xf32>
    %5 = tpu.matmul %3, %4, %cst {dimension_numbers = #tpu.dot_dimension_numbers<[1], [0], [0], [1], [0, 0, 1, 1], [], []>} : vector<128x512xbf16>, vector<512x1024xbf16>, vector<128x1024xf32> -> vector<128x1024xf32>
    %c0_4 = arith.constant 0 : index
    %c0_5 = arith.constant 0 : index
    %6 = vector.load %arg8[%c0_4, %c0_5] : memref<1x1024xf32, #tpu.memory_space<vmem>>, vector<1x1024xf32>
    %7 = vector.broadcast %6 : vector<1x1024xf32> to vector<128x1024xf32>
    %8 = arith.addf %5, %7 : vector<128x1024xf32>
    %9 = arith.negf %8 : vector<128x1024xf32>
    %10 = math.exp %9 : vector<128x1024xf32>
    %cst_6 = arith.constant 1.000000e+00 : f32
    %11 = vector.broadcast %cst_6 : f32 to vector<128x1024xf32>
    %12 = arith.addf %11, %10 : vector<128x1024xf32>
    %13 = arith.divf %11, %12 : vector<128x1024xf32>
    %c0_7 = arith.constant 0 : index
    %c0_8 = arith.constant 0 : index
    %14 = vector.load %arg9[%c0_7, %c0_8] : memref<128x1024xf32, #tpu.memory_space<vmem>>, vector<128x1024xf32>
    tpu.vector_store %arg9[%c0_7, %c0_8], %13 {strides = array<i32>} : memref<128x1024xf32, #tpu.memory_space<vmem>>, vector<128x1024xf32>,
    return
  }
  func.func @transform_0(%arg0: i32, %arg1: i32) -> (i32, i32) {
    %c0_i32 = arith.constant 0 : i32
    %c0_i32_0 = arith.constant 0 : i32
    return %arg0, %c0_i32 : i32, i32
  }
  func.func @transform_1(%arg0: i32, %arg1: i32) -> (i32, i32) {
    %c0_i32 = arith.constant 0 : i32
    %c0_i32_0 = arith.constant 0 : i32
    %c0_i32_1 = arith.constant 0 : i32
    return %c0_i32, %c0_i32_0 : i32, i32
  }
  func.func @transform_2(%arg0: i32, %arg1: i32) -> (i32, i32) {
    %c0_i32 = arith.constant 0 : i32
    %c0_i32_0 = arith.constant 0 : i32
    %c0_i32_1 = arith.constant 0 : i32
    return %c0_i32, %c0_i32_0 : i32, i32
  }
  func.func @transform_3(%arg0: i32, %arg1: i32) -> (i32, i32) {
    %c0_i32 = arith.constant 0 : i32
    %c0_i32_0 = arith.constant 0 : i32
    %c0_i32_1 = arith.constant 0 : i32
    return %c0_i32, %c0_i32_0 : i32, i32
  }
  func.func @transform_4(%arg0: i32, %arg1: i32) -> (i32, i32) {
    %c0_i32 = arith.constant 0 : i32
    %c0_i32_0 = arith.constant 0 : i32
    %c0_i32_1 = arith.constant 0 : i32
    return %c0_i32, %c0_i32_0 : i32, i32
  }
  func.func @transform_5(%arg0: i32, %arg1: i32) -> (i32, i32) {
    %c0_i32 = arith.constant 0 : i32
    %c0_i32_0 = arith.constant 0 : i32
    return %c0_i32, %arg1 : i32, i32
  }
  func.func @transform_6(%arg0: i32, %arg1: i32) -> (i32, i32) {
    %c0_i32 = arith.constant 0 : i32
    %c0_i32_0 = arith.constant 0 : i32
    return %c0_i32, %arg1 : i32, i32
  }
  func.func @transform_7(%arg0: i32, %arg1: i32) -> (i32, i32) {
    %c0_i32 = arith.constant 0 : i32
    return %arg0, %arg1 : i32, i32
  }
}

</mosaic_0001>

<bundles_post_ra>
// kernel: tpu_custom_call.1
= control target key start
LH: loop header
LB: loop body
LE: loop exit
PB: predicated region body
PF: predicated region fallthrough
CT: control target
= control target key end

     0   :  { %s8550_s0 = inlined_call_operand.hbm [shape: bf16[256,128], index: 0, kind: input, shape index: {}]   ;;  %s8551_s1 = inlined_call_operand.hbm [shape: bf16[128,256], index: 1, kind: input, shape index: {}]   ;;  %s8552_s2 = inlined_call_operand.vmem [shape: f32[1,256], index: 2, kind: input, shape index: {}]   ;;  %s8553_s3 = inlined_call_operand.hbm [shape: bf16[256,512], index: 3, kind: input, shape index: {}]   ;;  %s8554_s4 = inlined_call_operand.vmem [shape: f32[1,512], index: 4, kind: input, shape index: {}]   ;;  %s8555_s5 = inlined_call_operand.hbm [shape: bf16[512,1024], index: 5, kind: input, shape index: {}]   ;;  %s8556_s6 = inlined_call_operand.vmem [shape: f32[1,1024], index: 6, kind: input, shape index: {}]   ;;  %s8557_s7 = inlined_call_operand.hbm [shape: f32[256,1024], index: 7, kind: output, shape index: {}]  }
   0x1   :  { %8568 = sst [smem:[#allocation19_spill]] %s8551_s1 }
   0x2   :  { %8569 = sst [smem:[#allocation20_spill]] %s8557_s7 }
   0x3   :  { %12 = vsyncpa [#allocation4], 0 }
   0x4   :  { %14 = vsyncpa [#allocation4 + $0x1], 0 }
   0x5   :  { %15 = vsyncpa [#allocation7], 0 }
   0x6   :  { %16 = vsyncpa [#allocation10], 0 }
   0x7   :  { %17 = vsyncpa [#allocation5], 0 }
   0x8   :  { %19 = vsyncpa [#allocation5 + $0x1], 0  ;;  %s7023_s24 = smov 0   ;;  %s7025_s25 = smov 0  }
   0x9   :  { %s7027_s26 = smov 0   ;;  %s7029_s27 = smov 0  }
   0xa   :  { %s7031_s28 = smov 0   ;;  %s7033_s29 = smov 0  }
   0xb LB: > { %8570 = sst [smem:[#allocation16_spill]] %s6945_s24  ;;  %s5038_s30 = sadd.s32 4294967295, %s6965_s29   ;;  %s6965_s29 = sphi %s7033_s29, %s25_s29   ;;  %s6961_s28 = sphi %s7031_s28, %s8599_s28   ;;  %s6957_s27 = sphi %s7029_s27, %s8598_s27   ;;  %s6953_s26 = sphi %s7027_s26, %s8597_s26   ;;  %s6949_s25 = sphi %s7025_s25, %s8596_s25   ;;  %s6945_s24 = sphi %s7023_s24, %s8595_s24  }
   0xc   : > { %s5039_s8 = sadd.s32 4294967294, %s6965_s29   ;;  %p57_p0 = scmp.ne.s32.totalorder %s6949_s25, %s6945_s24 }
   0xd   : > { %p7057_p1 = scmp.eq.s32.totalorder %s5038_s30, 0  ;;  %p7061_p2 = scmp.eq.s32.totalorder %s5038_s30, 1 }
   0xe   : > { %p225_p3 = scmp.eq.s32.totalorder %s5039_s8, 1  ;;  %p5040_p5 = scmp.ge.s32.totalorder %s6965_s29, 1 }
   0xf   : > { %s8571_s9 = scalar_select %p7057_p1, 1, 0 }
  0x10   : > { %s8572_s10 = scalar_select %p7061_p2, 1, 0 }
  0x11   : > { %p7067_p4 = por %p7057_p1, %p57_p0  ;;  %p7072_p6 = por %p225_p3, %p57_p0 }
  0x12   : > { %p232_p7 = scmp.lt.s32.totalorder %s6965_s29, 3  ;;  %s6967_s14 = smov [#allocation6]  }
  0x13   : > { %s8573_s11 = scalar_select %p7067_p4, 1, 0 }
  0x14   : > { %s8574_s12 = scalar_select %p7072_p6, 1, 0 }
  0x15   : > { %p7077_p8 = pnand %p5040_p5, %p232_p7  ;;  %s244_s15 = sshll.u32 %s6967_s14, 4  ;;  %s7081_s15 = int_to_ptr.vmem [resolvable:$true] %s244_s15 }
  0x16   : > { %8575 = sst [smem:[#allocation17_spill]] %s8574_s12  ;;  %s6968_s17 = smov [#allocation8]  }
  0x17   : > { %s8576_s13 = scalar_select %p7077_p8, 1, 0 }
  0x18   : > { %p5840_p9 = pneg %p7077_p8  ;;  %s260_s18 = sshll.u32 %s6968_s17, 4  ;;  %s7092_s18 = int_to_ptr.vmem [resolvable:$true] %s260_s18 }
  0x19   : > { %s8578_s1 = sld [smem:[#allocation19_spill]] }
  0x1a   : > { %p7088_p11 = pnand %p5840_p9, %p7057_p1 }
  0x1c   : > { %p7102_p13 = pneg %p7088_p11 }
  0x1f   : > { %s6761_s21 = scalar_lea.hbm %s8578_s1, 2048 }
  0x20   : > { %p6762_p12 = scmp.ne.s32.totalorder %s8578_s1, %s6761_s21  ;;  %p6768_p5 = scmp.lt.u32.totalorder %s6761_s21, %s8578_s1 }
  0x22   : > { %p6764_p0 = pnand %p7102_p13, %p6762_p12 }
  0x24   : > { %p6765_p3 = pneg %p6764_p0 }
  0x26   : > { %p6770_p7 = pnand %p6768_p5, %p6765_p3 }
  0x28   : > { %6773 = shalt.err (!%p6770_p7)
}
  0x29   : > { %s6774_s17 = scalar_lea.vmem %s7081_s15, 2048  ;;  %p6782_p1 = scmp.lt.s32.totalorder %s7081_s15, %s7081_s15 }
  0x2a   : > { %p6775_p9 = scmp.ne.s32.totalorder %s7081_s15, %s6774_s17  ;;  %p6783_p4 = scmp.lt.s32.totalorder %s6774_s17, %s6774_s17 }
  0x2c   : > { %p6777_p10 = pnand %p6775_p9, %p7102_p13  ;;  %p6784_p12 = por %p6783_p4, %p6782_p1 }
  0x2e   : > { %p6778_p6 = pneg %p6777_p10 }
  0x30   : > { %p6785_p0 = pnand %p6784_p12, %p6778_p6 }
  0x32   : > { %6788 = shalt.err (!%p6785_p0)
}
  0x33   : > { %s6969_s19 = smov 128   ;;  %s6970_s20 = smov 8  }
  0x34   : > { %5843 = dma.hbm_to_vmem [thread:$0]  (!%p7088_p11), %s8578_s1, 2048, %s7081_s15, [#allocation7], %s6969_s19, %s6969_s19, %s6970_s20  }
  0x35   : > { %s6789_s14 = scalar_lea.hbm %s8553_s3, 8192 }
  0x36   : > { %p6790_p1 = scmp.ne.s32.totalorder %s8553_s3, %s6789_s14  ;;  %p6796_p10 = scmp.lt.u32.totalorder %s6789_s14, %s8553_s3 }
  0x38   : > { %p6792_p4 = pnand %p6790_p1, %p7102_p13 }
  0x3a   : > { %p6793_p6 = pneg %p6792_p4 }
  0x3c   : > { %p6798_p3 = pnand %p6796_p10, %p6793_p6 }
  0x3e   : > { %6801 = shalt.err (!%p6798_p3)
}
  0x3f   : > { %s6802_s15 = scalar_lea.vmem %s7092_s18, 8192  ;;  %p6810_p12 = scmp.lt.s32.totalorder %s7092_s18, %s7092_s18 }
  0x40   : > { %p6803_p5 = scmp.ne.s32.totalorder %s7092_s18, %s6802_s15  ;;  %p6811_p0 = scmp.lt.s32.totalorder %s6802_s15, %s6802_s15 }
  0x42   : > { %p6805_p7 = pnand %p6803_p5, %p7102_p13  ;;  %p6812_p1 = por %p6811_p0, %p6810_p12 }
  0x44   : > { %p6806_p9 = pneg %p6805_p7 }
  0x46   : > { %p6813_p4 = pnand %p6812_p1, %p6806_p9 }
  0x48   : > { %6816 = shalt.err (!%p6813_p4)
}
  0x49   : > { %s6971_s24 = smov 256   ;;  %s6972_s7 = smov 16  }
  0x4a   : > { %5846 = dma.hbm_to_vmem [thread:$0]  (!%p7088_p11), %s8553_s3, 8192, %s7092_s18, [#allocation7], %s6971_s24, %s6971_s24, %s6972_s7  }
  0x4b   : > { %s6973_s20 = smov [#allocation9]   ;;  %s6817_s8 = scalar_lea.hbm %s8555_s5, 32768 }
  0x4c   : > { %s279_s21 = sshll.u32 %s6973_s20, 4  ;;  %p6818_p6 = scmp.ne.s32.totalorder %s8555_s5, %s6817_s8  ;;  %s280_s21 = int_to_ptr.vmem [resolvable:$true] %s279_s21 }
  0x4d   : > { %p6824_p5 = scmp.lt.u32.totalorder %s6817_s8, %s8555_s5 }
  0x4e   : > { %p6820_p10 = pnand %p6818_p6, %p7102_p13 }
  0x50   : > { %p6821_p3 = pneg %p6820_p10 }
  0x52   : > { %p6826_p7 = pnand %p6824_p5, %p6821_p3 }
  0x54   : > { %6829 = shalt.err (!%p6826_p7)
}
  0x55   : > { %s6830_s18 = scalar_lea.vmem %s280_s21, 32768  ;;  %p6838_p1 = scmp.lt.s32.totalorder %s280_s21, %s280_s21 }
  0x56   : > { %p6831_p9 = scmp.ne.s32.totalorder %s280_s21, %s6830_s18  ;;  %p6839_p4 = scmp.lt.s32.totalorder %s6830_s18, %s6830_s18 }
  0x58   : > { %p6833_p12 = pnand %p6831_p9, %p7102_p13  ;;  %p6840_p8 = por %p6839_p4, %p6838_p1 }
  0x5a   : > { %p6834_p0 = pneg %p6833_p12 }
  0x5c   : > { %p6841_p2 = pnand %p6840_p8, %p6834_p0 }
  0x5e   : > { %6844 = shalt.err (!%p6841_p2)
}
  0x5f   : > { %s6974_s24 = smov 512   ;;  %s6975_s1 = smov 32  }
  0x60   : > { %5849 = dma.hbm_to_vmem [thread:$0]  (!%p7088_p11), %s8555_s5, 32768, %s280_s21, [#allocation10], %s6974_s24, %s6974_s24, %s6975_s1  }
  0x61   : > { %s44_s12 = sadd.s32 1, %s6953_s26  ;;  %s37_s19 = sadd.s32 1, %s6961_s28 }
  0x62   : > { %p51_p2 = scmp.ne.s32.totalorder %s6953_s26, %s6949_s25  ;;  %p39_p8 = scmp.ge.s32.totalorder %s37_s19, 2 }
  0x63   : > { %p52_p13 = scmp.eq.s32.totalorder %s6965_s29, 0  ;;  %p8580_p6 = scmp.ne.s32.totalorder %s8572_s10, 0 }
  0x64   : > { %p5861_p3 = scmp.lt.s32.totalorder %s6965_s29, 2  ;;  %s8601_s19 = smov (%p39_p8, %s37_s19), 0 }
  0x65   : > { %p7171_p10 = por %p8580_p6, %p51_p2  ;;  %p53_p5 = por %p52_p13, %p51_p2 }
  0x66   : > { %s301_s16 = sand.u32 1, %s6953_s26   ;;  %s41_s22 = ssub.s32 %s6961_s28, %s8601_s19 }
  0x67   : > { %p42_p7 = scmp.eq.s32.totalorder %s41_s22, 0  ;;  %s5046_s21 = sshll.u32 %s301_s16, 6 }
  0x68   : > { %s5533_s23 = sshll.u32 %s6961_s28, 10  ;;  %s305_s15 = scalar_lea.vmem [#allocation3], %s5046_s21 }
  0x69   : > { %s7183_s8 = scalar_select %p42_p7, %s6953_s26, %s44_s12  }
  0x6a   : > { %s7188_s10 = scalar_lea.hbm %s8550_s0, %s5533_s23  ;;  %s312_s18 = sshll.u32 %s305_s15, 4  ;;  %s7190_s18 = int_to_ptr.vmem [resolvable:$true] %s312_s18 }
  0x6b   : > { %p7194_p11 = pnand %p5861_p3, %p53_p5  ;;  %s7198_s1 = scalar_lea.sflag [#allocation4], %s301_s16 }
  0x6c   : > { %s6845_s30 = scalar_lea.hbm %s7188_s10, 1024  ;;  %s6850_s22 = scalar_lea.hbm %s8550_s0, 2048 }
  0x6d   : > { %p6846_p9 = scmp.ne.s32.totalorder %s7188_s10, %s6845_s30  ;;  %p6847_p12 = pneg %p7194_p11 }
  0x6e   : > { %p6851_p4 = scmp.lt.u32.totalorder %s7188_s10, %s8550_s0  ;;  %p6852_p2 = scmp.lt.u32.totalorder %s6850_s22, %s6845_s30 }
  0x6f   : > { %p6848_p0 = pnand %p6847_p12, %p6846_p9  ;;  %p6854_p13 = scmp.lt.u32.totalorder %s6845_s30, %s7188_s10 }
  0x70   : > { %p6853_p8 = por %p6852_p2, %p6851_p4 }
  0x71   : > { %p6849_p1 = pneg %p6848_p0 }
  0x72   : > { %p6855_p6 = por %p6854_p13, %p6853_p8 }
  0x74   : > { %p6856_p3 = pnand %p6855_p6, %p6849_p1 }
  0x76   : > { %6859 = shalt.err (!%p6856_p3)
}
  0x77   : > { %s6860_s16 = scalar_lea.vmem %s7190_s18, 1024  ;;  %s6976_s14 = smov [#allocation3]  }
  0x78   : > { %p6861_p5 = scmp.ne.s32.totalorder %s7190_s18, %s6860_s16  ;;  %s6865_s17 = sshll.u32 %s6976_s14, 4  ;;  %s6866_s17 = int_to_ptr.vmem [resolvable:$false] %s6865_s17 }
  0x79   : > { %s6867_s15 = scalar_lea.vmem %s6866_s17, 2048  ;;  %p6868_p0 = scmp.lt.s32.totalorder %s7190_s18, %s6866_s17 }
  0x7a   : > { %p6863_p7 = pnand %p6861_p5, %p6847_p12  ;;  %p6869_p4 = scmp.lt.s32.totalorder %s6867_s15, %s6860_s16 }
  0x7c   : > { %p6864_p9 = pneg %p6863_p7  ;;  %p6870_p2 = por %p6869_p4, %p6868_p0 }
  0x7e   : > { %p6871_p8 = pnand %p6870_p2, %p6864_p9 }
  0x80   : > { %6874 = shalt.err (!%p6871_p8)
}
  0x81   : > { %s6977_s30 = smov 64   ;;  %s6978_s7 = smov 4  }
  0x82   : > { %5853 = dma.hbm_to_vmem [thread:$0]  (!%p7194_p11), %s7188_s10, 1024, %s7190_s18, %s7198_s1, %s6977_s30, %s6977_s30, %s6978_s7  }
  0x83   : > { %p8583_p12 = scmp.ne.s32.totalorder %s8576_s13, 0 }
  0x85   : > { %324 = sbr.rel (%p8583_p12) target bundleno = 1215 (0x4bf), region = 48 }
  0x8c   : > { %s7229_s12 = sand.u32 1, %s6949_s25   ;;  %p8584_p1 = scmp.ne.s32.totalorder %s8573_s11, 0 }
  0x8d   : > { %s5050_s22 = sshll.u32 %s7229_s12, 6  ;;  %s327_s21 = scalar_lea.sflag [#allocation4], %s7229_s12 }
  0x8e   : > { %s7233_s23 = scalar_lea.vmem [#allocation3], %s5050_s22 }
  0x8f   : > { %6928 = dma.done.wait (%p8584_p1), %s327_s21, 1024  }
  0x90   : > { %6930 = vsyncadd (%p8584_p1), %s327_s21, 4294966272  ;;  %p8585_p11 = scmp.ne.s32.totalorder %s8571_s9, 0 }
  0x92   : > { %6932 = dma.done.wait (%p8585_p11), [#allocation7], 10240  }
  0x93   : > { %6934 = vsyncadd (%p8585_p11), [#allocation7], 4294957056 }
  0x94   : > { %6936 = dma.done.wait (%p8585_p11), [#allocation10], 32768  }
  0x95   : > { %6938 = vsyncadd (%p8585_p11), [#allocation10], 4294934528  ;;  %v6979_v0 = vmov 0   ;;  %v5928_v1 = vld [vmem:[#allocation6 + $0x4] ss:$8 sps:$4 sm:$0xff]   ;;  %v5954_v43 = vld [vmem:[%s7233_s23 + $0x10] sm:$0xff]  }
  0x96   : > { %595 = vmatprep.mubr.bf16.mxu0 %v6979_v0  ;;  %v5930_v2 = vld [vmem:[#allocation6] ss:$8 sps:$4 sm:$0xff]   ;;  %563 = vmatprep.subr.bf16.mxu0 %v5928_v1  ;;  %v5931_v3 = vld [vmem:[#allocation6 + $0x14] ss:$8 sps:$4 sm:$0xff]   ;;  %v5933_v4 = vld [vmem:[#allocation6 + $0x10] ss:$8 sps:$4 sm:$0xff]  }
  0x97   : > { %564 = vmatpush1.bf16.msra.mxu0 %v5930_v2  ;;  %v5934_v5 = vld [vmem:[#allocation6 + $0x24] ss:$8 sps:$4 sm:$0xff]   ;;  %v5936_v6 = vld [vmem:[#allocation6 + $0x20] ss:$8 sps:$4 sm:$0xff]   ;;  %v5937_v7 = vld [vmem:[#allocation6 + $0x34] ss:$8 sps:$4 sm:$0xff]  }
  0x98   : > { %565 = vmatprep.subr.bf16.mxu0 %v5931_v3  ;;  %v5939_v8 = vld [vmem:[#allocation6 + $0x30] ss:$8 sps:$4 sm:$0xff]   ;;  %v5940_v9 = vld [vmem:[#allocation6 + $0x44] ss:$8 sps:$4 sm:$0xff]   ;;  %v5942_v10 = vld [vmem:[#allocation6 + $0x40] ss:$8 sps:$4 sm:$0xff]  }
  0x99   : > { %v5943_v11 = vld [vmem:[#allocation6 + $0x54] ss:$8 sps:$4 sm:$0xff]   ;;  %v5945_v12 = vld [vmem:[#allocation6 + $0x50] ss:$8 sps:$4 sm:$0xff]   ;;  %v5946_v14 = vld [vmem:[#allocation6 + $0x64] ss:$8 sps:$4 sm:$0xff]  }
  0x9a   : > { %v5960_v13 = vld [vmem:[#allocation8 + $0x4] ss:$16 sps:$4 sm:$0xff]   ;;  %v5965_v15 = vld [vmem:[#allocation8] ss:$16 sps:$4 sm:$0xff]   ;;  %v5964_v23 = vld [vmem:[#allocation8 + $0xc] ss:$16 sps:$4 sm:$0xff]  }
  0x9b   : > { %566 = vmatpush1.bf16.msra.mxu0 %v5933_v4  ;;  %1130 = vmatprep.subr.bf16.mxu1 %v5960_v13  ;;  %v5966_v16 = vld [vmem:[#allocation8 + $0x24] ss:$16 sps:$4 sm:$0xff]   ;;  %v5948_v17 = vld [vmem:[#allocation6 + $0x60] ss:$8 sps:$4 sm:$0xff]   ;;  %v5951_v21 = vld [vmem:[#allocation6 + $0x70] ss:$8 sps:$4 sm:$0xff]  }
  0x9c   : > { %567 = vmatprep.subr.bf16.mxu0 %v5934_v5  ;;  %v5949_v18 = vld [vmem:[#allocation6 + $0x74] ss:$8 sps:$4 sm:$0xff]   ;;  %1131 = vmatpush1.bf16.msra.mxu1 %v5965_v15  ;;  %v5971_v19 = vld [vmem:[#allocation8 + $0x20] ss:$16 sps:$4 sm:$0xff]   ;;  %v5962_v26 = vld [vmem:[#allocation8 + $0x8] ss:$16 sps:$4 sm:$0xff]  }
  0x9d   : > { %1132 = vmatprep.subr.bf16.mxu1 %v5966_v16  ;;  %v5972_v20 = vld [vmem:[#allocation8 + $0x44] ss:$16 sps:$4 sm:$0xff]   ;;  %v5977_v22 = vld [vmem:[#allocation8 + $0x40] ss:$16 sps:$4 sm:$0xff]   ;;  %v5970_v27 = vld [vmem:[#allocation8 + $0x2c] ss:$16 sps:$4 sm:$0xff]  }
  0x9e   : > { %v5978_v24 = vld [vmem:[#allocation8 + $0x64] ss:$16 sps:$4 sm:$0xff]   ;;  %v5983_v28 = vld [vmem:[#allocation8 + $0x60] ss:$16 sps:$4 sm:$0xff]   ;;  %v5968_v30 = vld [vmem:[#allocation8 + $0x28] ss:$16 sps:$4 sm:$0xff]  }
  0x9f   : > { %568 = vmatpush1.bf16.msra.mxu0 %v5936_v6  ;;  %v5952_v25 = vld [vmem:[%s7233_s23] sm:$0xff]   ;;  %v5976_v31 = vld [vmem:[#allocation8 + $0x4c] ss:$16 sps:$4 sm:$0xff]   ;;  %v5974_v35 = vld [vmem:[#allocation8 + $0x48] ss:$16 sps:$4 sm:$0xff]   ;;  %s5054_s1 = sshll.u32 %s7229_s12, 10 }
  0xa0   : > { %569 = vmatprep.subr.bf16.mxu0 %v5937_v7  ;;  %1133 = vmatpush1.bf16.msra.mxu1 %v5971_v19  ;;  %v5984_v29 = vld [vmem:[#allocation8 + $0x84] ss:$16 sps:$4 sm:$0xff]   ;;  %v5989_v32 = vld [vmem:[#allocation8 + $0x80] ss:$16 sps:$4 sm:$0xff]   ;;  %v5953_v34 = vld [vmem:[%s7233_s23 + $0x8] sm:$0xff]   ;;  %s7984_s16 = scalar_lea.vmem [#allocation11], %s5054_s1 }
  0xa1   : > { %1134 = vmatprep.subr.bf16.mxu1 %v5972_v20  ;;  %v5990_v33 = vld [vmem:[#allocation8 + $0xa4] ss:$16 sps:$4 sm:$0xff]   ;;  %v5982_v36 = vld [vmem:[#allocation8 + $0x6c] ss:$16 sps:$4 sm:$0xff]   ;;  %v5995_v37 = vld [vmem:[#allocation8 + $0xa0] ss:$16 sps:$4 sm:$0xff]  }
  0xa2   : > { %v5996_v38 = vld [vmem:[#allocation8 + $0xc4] ss:$16 sps:$4 sm:$0xff]   ;;  %v5980_v39 = vld [vmem:[#allocation8 + $0x68] ss:$16 sps:$4 sm:$0xff]   ;;  %v5988_v40 = vld [vmem:[#allocation8 + $0x8c] ss:$16 sps:$4 sm:$0xff]  }
  0xa3   : > { %570 = vmatpush1.bf16.msra.mxu0 %v5939_v8  ;;  %v6001_v41 = vld [vmem:[#allocation8 + $0xc0] ss:$16 sps:$4 sm:$0xff]   ;;  %v6002_v42 = vld [vmem:[#allocation8 + $0xe4] ss:$16 sps:$4 sm:$0xff]   ;;  %v5986_v44 = vld [vmem:[#allocation8 + $0x88] ss:$16 sps:$4 sm:$0xff]  }
  0xa4   : > { %571 = vmatprep.subr.bf16.mxu0 %v5940_v9  ;;  %1135 = vmatpush1.bf16.msra.mxu1 %v5977_v22  ;;  %v5994_v45 = vld [vmem:[#allocation8 + $0xac] ss:$16 sps:$4 sm:$0xff]   ;;  %v6007_v46 = vld [vmem:[#allocation8 + $0xe0] ss:$16 sps:$4 sm:$0xff]   ;;  %v6008_v47 = vld [vmem:[#allocation8 + $0x104] ss:$16 sps:$4 sm:$0xff]  }
  0xa5   : > { %1136 = vmatprep.subr.bf16.mxu1 %v5978_v24  ;;  %v5992_v48 = vld [vmem:[#allocation8 + $0xa8] ss:$16 sps:$4 sm:$0xff]   ;;  %v6000_v49 = vld [vmem:[#allocation8 + $0xcc] ss:$16 sps:$4 sm:$0xff]   ;;  %v6013_v50 = vld [vmem:[#allocation8 + $0x100] ss:$16 sps:$4 sm:$0xff]  }
  0xa6   : > { %v6014_v51 = vld [vmem:[#allocation8 + $0x124] ss:$16 sps:$4 sm:$0xff]   ;;  %v5955_v52 = vld [vmem:[%s7233_s23 + $0x18] sm:$0xff]   ;;  %v6019_v55 = vld [vmem:[#allocation8 + $0x120] ss:$16 sps:$4 sm:$0xff]   ;;  %s5535_s15 = sshll.u32 %s6957_s27, 14 }
  0xa7   : > { %572 = vmatpush1.bf16.msra.mxu0 %v5942_v10  ;;  %v5998_v53 = vld [vmem:[#allocation8 + $0xc8] ss:$16 sps:$4 sm:$0xff]   ;;  %v6006_v54 = vld [vmem:[#allocation8 + $0xec] ss:$16 sps:$4 sm:$0xff]   ;;  %v6020_v56 = vld [vmem:[#allocation8 + $0x144] ss:$16 sps:$4 sm:$0xff]  }
  0xa8   : > { %573 = vmatprep.subr.bf16.mxu0 %v5943_v11  ;;  %1137 = vmatpush1.bf16.msra.mxu1 %v5983_v28  ;;  %v6004_v57 = vld [vmem:[#allocation8 + $0xe8] ss:$16 sps:$4 sm:$0xff]   ;;  %v6012_v58 = vld [vmem:[#allocation8 + $0x10c] ss:$16 sps:$4 sm:$0xff]   ;;  %v6025_v59 = vld [vmem:[#allocation8 + $0x140] ss:$16 sps:$4 sm:$0xff]  }
  0xa9   : > { %1138 = vmatprep.subr.bf16.mxu1 %v5984_v29  ;;  %v5956_v60 = vld [vmem:[%s7233_s23 + $0x20] sm:$0xff]   ;;  %v6010_v61 = vld [vmem:[#allocation8 + $0x108] ss:$16 sps:$4 sm:$0xff]   ;;  %v6018_v62 = vld [vmem:[#allocation8 + $0x12c] ss:$16 sps:$4 sm:$0xff]   ;;  %s4911_s30 = sshll.u32 %s7984_s16, 4  ;;  %s8498_s30 = int_to_ptr.vmem [resolvable:$true] %s4911_s30 }
  0xaa   : > { %v6016_v63 = vld [vmem:[#allocation8 + $0x128] ss:$16 sps:$4 sm:$0xff]   ;;  %v6024_v1 = vld [vmem:[#allocation8 + $0x14c] ss:$16 sps:$4 sm:$0xff]   ;;  %v5958_v4 = vld [vmem:[%s7233_s23 + $0x30] sm:$0xff]   ;;  %s8590_s21 = sld [smem:[#allocation20_spill]] }
  0xab   : > { %574 = vmatpush1.bf16.msra.mxu0 %v5945_v12  ;;  %v5957_v2 = vld [vmem:[%s7233_s23 + $0x28] sm:$0xff]   ;;  %v5959_v5 = vld [vmem:[%s7233_s23 + $0x38] sm:$0xff]   ;;  %v6026_v6 = vld [vmem:[#allocation8 + $0x164] ss:$16 sps:$4 sm:$0xff]   ;;  %s4895_s27 = scalar_lea.sflag [#allocation5], %s7229_s12  ;;  %s6875_s9 = scalar_lea.vmem %s8498_s30, 16384 }
  0xac   : > { %575 = vmatprep.subr.bf16.mxu0 %v5946_v14  ;;  %1139 = vmatpush1.bf16.msra.mxu1 %v5989_v32  ;;  %v6022_v3 = vld [vmem:[#allocation8 + $0x148] ss:$16 sps:$4 sm:$0xff]   ;;  %v6030_v7 = vld [vmem:[#allocation8 + $0x16c] ss:$16 sps:$4 sm:$0xff]   ;;  %v6031_v9 = vld [vmem:[#allocation8 + $0x160] ss:$16 sps:$4 sm:$0xff]   ;;  %p6876_p13 = scmp.ne.s32.totalorder %s8498_s30, %s6875_s9 }
  0xad   : > { %1140 = vmatprep.subr.bf16.mxu1 %v5990_v33  ;;  %v6028_v8 = vld [vmem:[#allocation8 + $0x168] ss:$16 sps:$4 sm:$0xff]   ;;  %v6032_v10 = vld [vmem:[#allocation8 + $0x184] ss:$16 sps:$4 sm:$0xff]   ;;  %v6036_v11 = vld [vmem:[#allocation8 + $0x18c] ss:$16 sps:$4 sm:$0xff]   ;;  %v425_v33 = vlaneseq }
  0xae   : > { %v6034_v12 = vld [vmem:[#allocation8 + $0x188] ss:$16 sps:$4 sm:$0xff]   ;;  %v6037_v13 = vld [vmem:[#allocation8 + $0x180] ss:$16 sps:$4 sm:$0xff]   ;;  %v6038_v14 = vld [vmem:[#allocation8 + $0x1a4] ss:$16 sps:$4 sm:$0xff]   ;;  %p6877_p6 = pnand %p6876_p13, %p7171_p10 }
  0xaf   : > { %576 = vmatpush1.bf16.msra.mxu0 %v5948_v17  ;;  %v6040_v15 = vld [vmem:[#allocation8 + $0x1a8] ss:$16 sps:$4 sm:$0xff]   ;;  %v6043_v16 = vld [vmem:[#allocation8 + $0x1a0] ss:$16 sps:$4 sm:$0xff]   ;;  %v6044_v17 = vld [vmem:[#allocation8 + $0x1c4] ss:$16 sps:$4 sm:$0xff]  }
  0xb0   : > { %577 = vmatprep.subr.bf16.mxu0 %v5949_v18  ;;  %1141 = vmatpush1.bf16.msra.mxu1 %v5995_v37  ;;  %v6048_v18 = vld [vmem:[#allocation8 + $0x1cc] ss:$16 sps:$4 sm:$0xff]   ;;  %v6046_v19 = vld [vmem:[#allocation8 + $0x1c8] ss:$16 sps:$4 sm:$0xff]   ;;  %v6049_v20 = vld [vmem:[#allocation8 + $0x1c0] ss:$16 sps:$4 sm:$0xff]   ;;  %s8496_s23 = scalar_lea.hbm %s8590_s21, %s5535_s15  ;;  %p6878_p3 = pneg %p6877_p6 }
  0xb1   : > { %1142 = vmatprep.subr.bf16.mxu1 %v5996_v38  ;;  %v6054_v22 = vld [vmem:[#allocation8 + $0x1ec] ss:$16 sps:$4 sm:$0xff]   ;;  %v6055_v24 = vld [vmem:[#allocation8 + $0x1e0] ss:$16 sps:$4 sm:$0xff]   ;;  %s6980_s11 = smov [#allocation11]  }
  0xb2   : > { %s6879_s13 = sshll.u32 %s6980_s11, 4  ;;  %s6880_s13 = int_to_ptr.vmem [resolvable:$false] %s6879_s13 }
  0xb3   : > { %578 = vmatpush1.bf16.msra.mxu0 %v5951_v21  ;;  %v6050_v21 = vld [vmem:[#allocation8 + $0x1e4] ss:$16 sps:$4 sm:$0xff]   ;;  %s6881_s10 = scalar_lea.vmem %s6880_s13, 32768  ;;  %p6882_p5 = scmp.lt.s32.totalorder %s8498_s30, %s6880_s13 }
  0xb4   : > { %1243 = vmatprep.subr.bf16.mxu0 %v5964_v23  ;;  %1143 = vmatpush1.bf16.msra.mxu1 %v6001_v41  ;;  %v6052_v23 = vld [vmem:[#allocation8 + $0x1e8] ss:$16 sps:$4 sm:$0xff]   ;;  %p6883_p7 = scmp.lt.s32.totalorder %s6881_s10, %s6875_s9 }
  0xb5   : > { %1144 = vmatprep.subr.bf16.mxu1 %v6002_v42 }
  0xb6   : > { %596 = vmatmul.mubr.bf16.vlgmr.msra.gmra.mrb[0].mxu0 %v5952_v25  ;;  %v7263_v25 = vld [vmem:[#allocation9] sm:$0xff]  ;;  %p6884_p9 = por %p6883_p7, %p6882_p5 }
  0xb7   : > { %605 = vmatprep.mubr.bf16.mxu0 %v6979_v0  ;;  %1244 = vmatpush1.bf16.msra.mxu0 %v5962_v26  ;;  %v7265_v26 = vld [vmem:[#allocation9 + $0x20] sm:$0xff] }
  0xb8   : > { %1245 = vmatprep.subr.bf16.mxu0 %v5970_v27  ;;  %1145 = vmatpush1.bf16.msra.mxu1 %v6007_v46  ;;  %v7267_v27 = vld [vmem:[#allocation9 + $0x8] sm:$0xff]  ;;  %v5143_v28 = vcombine.low %v7263_v25, %v7265_v26  ;;  %v5144_v29 = vcombine.high %v7263_v25, %v7265_v26  ;;  %p6885_p0 = pnand %p6884_p9, %p6878_p3 }
  0xb9   : > { %1146 = vmatprep.subr.bf16.mxu1 %v6008_v47 }
  0xbb   : > { %1246 = vmatpush1.bf16.msra.mxu0 %v5968_v30  ;;  %v7273_v30 = vld [vmem:[#allocation9 + $0x28] sm:$0xff] }
  0xbc   : > { %1247 = vmatprep.subr.bf16.mxu0 %v5976_v31  ;;  %1147 = vmatpush1.bf16.msra.mxu1 %v6013_v50  ;;  %v5145_v31 = vcombine.low %v7267_v27, %v7273_v30  ;;  %v5146_v32 = vcombine.high %v7267_v27, %v7273_v30 }
  0xbd   : > { %1148 = vmatprep.subr.bf16.mxu1 %v6014_v51 }
  0xbe   : > { %606 = vmatmul.mubr.bf16.gmra.mrb[4].mxu0 %v5953_v34  ;;  %v7279_v34 = vshrl.u32 %v425_v33, 7 }
  0xbf   : > { %615 = vmatprep.mubr.bf16.mxu0 %v6979_v0  ;;  %1248 = vmatpush1.bf16.msra.mxu0 %v5974_v35 }
  0xc0   : > { %1249 = vmatprep.subr.bf16.mxu0 %v5982_v36  ;;  %1149 = vmatpush1.bf16.msra.mxu1 %v6019_v55  ;;  %v7282_v35 = vsub.s32 0, %v7279_v34  ;;  %v423_v36 = vld [vmem:[%s8552_s2] sm:$0x3]  ;;  %v7288_v37 = vsub.s32 1, %v7279_v34 }
  0xc1   : > { %1150 = vmatprep.subr.bf16.mxu1 %v6020_v56 }
  0xc2   : > { %8586 = vst [vmem:[#allocation18_spill] sm:$0xff] %v7288_v37  ;;  %v7291_v38 = vrot.slane %v423_v36, %v7282_v35 }
  0xc3   : > { %1250 = vmatpush1.bf16.msra.mxu0 %v5980_v39  ;;  %v7294_v39 = vrot.slane %v423_v36, %v7288_v37 }
  0xc4   : > { %1251 = vmatprep.subr.bf16.mxu0 %v5988_v40  ;;  %1151 = vmatpush1.bf16.msra.mxu1 %v6025_v59 }
  0xc5   : > { %1152 = vmatprep.subr.bf16.mxu1 %v6026_v6 }
  0xc6   : > { %616 = vmatmul.mubr.bf16.gmra.mrb[8].mxu0 %v5954_v43 }
  0xc7   : > { %625 = vmatprep.mubr.bf16.mxu0 %v6979_v0  ;;  %1252 = vmatpush1.bf16.msra.mxu0 %v5986_v44 }
  0xc8   : > { %1253 = vmatprep.subr.bf16.mxu0 %v5994_v45  ;;  %1153 = vmatpush1.bf16.msra.mxu1 %v6031_v9 }
  0xc9   : > { %1154 = vmatprep.subr.bf16.mxu1 %v6032_v10  ;;  %v1532_v10 = vld [vmem:[#allocation9 + $0x80] sm:$0xff] }
  0xcb   : > { %1254 = vmatpush1.bf16.msra.mxu0 %v5992_v48 }
  0xcc   : > { %1255 = vmatprep.subr.bf16.mxu0 %v6000_v49  ;;  %1155 = vmatpush1.bf16.msra.mxu1 %v6037_v13  ;;  %v1536_v13 = vld [vmem:[#allocation9 + $0xa0] sm:$0xff] }
  0xcd   : > { %1156 = vmatprep.subr.bf16.mxu1 %v6038_v14  ;;  %v1533_v14 = vld [vmem:[#allocation9 + $0x88] sm:$0xff] }
  0xce   : > { %626 = vmatmul.mubr.bf16.gmra.mrb[12].mxu0 %v5955_v52 }
  0xcf   : > { %635 = vmatprep.mubr.bf16.mxu0 %v6979_v0  ;;  %1256 = vmatpush1.bf16.msra.mxu0 %v5998_v53 }
  0xd0   : > { %1257 = vmatprep.subr.bf16.mxu0 %v6006_v54  ;;  %1157 = vmatpush1.bf16.msra.mxu1 %v6043_v16 }
  0xd1   : > { %1158 = vmatprep.subr.bf16.mxu1 %v6044_v17 }
  0xd3   : > { %1258 = vmatpush1.bf16.msra.mxu0 %v6004_v57 }
  0xd4   : > { %1259 = vmatprep.subr.bf16.mxu0 %v6012_v58  ;;  %1159 = vmatpush1.bf16.msra.mxu1 %v6049_v20  ;;  %v1524_v58 = vld [vmem:[#allocation9 + $0x40] sm:$0xff]  ;;  %v5160_v20 = vcombine.high %v1532_v10, %v1536_v13 }
  0xd5   : > { %1160 = vmatprep.subr.bf16.mxu1 %v6050_v21 }
  0xd6   : > { %636 = vmatmul.mubr.bf16.gmra.mrb[16].mxu0 %v5956_v60  ;;  %v1528_v60 = vld [vmem:[#allocation9 + $0x60] sm:$0xff] }
  0xd7   : > { %645 = vmatprep.mubr.bf16.mxu0 %v6979_v0  ;;  %1260 = vmatpush1.bf16.msra.mxu0 %v6010_v61  ;;  %v1525_v61 = vld [vmem:[#allocation9 + $0x48] sm:$0xff]  ;;  %v5151_v17 = vcombine.low %v1524_v58, %v1528_v60 }
  0xd8   : > { %1261 = vmatprep.subr.bf16.mxu0 %v6018_v62  ;;  %1161 = vmatpush1.bf16.msra.mxu1 %v6055_v24  ;;  %v1529_v62 = vld [vmem:[#allocation9 + $0x68] sm:$0xff]  ;;  %v1544_v24 = vld [vmem:[#allocation9 + $0xe0] sm:$0xff] }
  0xd9   : > { %3094 = vmatprep.subr.bf16.mxu1 %v5144_v29  ;;  %v5154_v9 = vcombine.high %v1525_v61, %v1529_v62  ;;  %v1541_v29 = vld [vmem:[#allocation9 + $0xc8] sm:$0xff] }
  0xdb   : > { %1262 = vmatpush1.bf16.msra.mxu0 %v6016_v63 }
  0xdc   : > { %1263 = vmatprep.subr.bf16.mxu0 %v6024_v1 }
  0xde   : > { %646 = vmatmul.mubr.bf16.gmra.mrb[20].mxu0 %v5957_v2 }
  0xdf   : > { %655 = vmatprep.mubr.bf16.mxu0 %v6979_v0  ;;  %1264 = vmatpush1.bf16.msra.mxu0 %v6022_v3 }
  0xe0   : > { %1265 = vmatprep.subr.bf16.mxu0 %v6030_v7 }
  0xe3   : > { %1266 = vmatpush1.bf16.msra.mxu0 %v6028_v8  ;;  %v5152_v8 = vcombine.high %v1524_v58, %v1528_v60  ;;  %v1557_v60 = vld [vmem:[#allocation9 + $0x148] sm:$0xff] }
  0xe4   : > { %1267 = vmatprep.subr.bf16.mxu0 %v6036_v11 }
  0xe6   : > { %656 = vmatmul.mubr.bf16.gmra.mrb[24].mxu0 %v5958_v4 }
  0xe7   : > { %665 = vmatprep.mubr.bf16.mxu0 %v6979_v0  ;;  %1268 = vmatpush1.bf16.msra.mxu0 %v6034_v12  ;;  %v6042_v0 = vld [vmem:[#allocation8 + $0x1ac] ss:$16 sps:$4 sm:$0xff]  }
  0xe8   : > { %1269 = vmatprep.subr.bf16.mxu0 %v6042_v0  ;;  %v1537_v0 = vld [vmem:[#allocation9 + $0xa8] sm:$0xff] }
  0xe9   : > { %v5162_v21 = vcombine.high %v1533_v14, %v1537_v0  ;;  %v5161_v36 = vcombine.low %v1533_v14, %v1537_v0  ;;  %v1568_v14 = vld [vmem:[#allocation9 + $0x1a0] sm:$0xff]  ;;  %v1565_v0 = vld [vmem:[#allocation9 + $0x188] sm:$0xff] }
  0xeb   : > { %1270 = vmatpush1.bf16.msra.mxu0 %v6040_v15 }
  0xec   : > { %1271 = vmatprep.subr.bf16.mxu0 %v6048_v18  ;;  %v5153_v18 = vcombine.low %v1525_v61, %v1529_v62  ;;  %v1561_v61 = vld [vmem:[#allocation9 + $0x168] sm:$0xff] }
  0xee   : > { %666 = vmatmul.mubr.bf16.gmra.mrb[28].mxu0 %v5959_v5 }
  0xef   : > { %1272 = vmatpush1.bf16.msra.mxu0 %v6046_v19 }
  0xf0   : > { %1273 = vmatprep.subr.bf16.mxu0 %v6054_v22  ;;  %v1540_v22 = vld [vmem:[#allocation9 + $0xc0] sm:$0xff] }
  0xf3   : > { %1274 = vmatpush1.bf16.msra.mxu0 %v6052_v23 }
  0xf4   : > { %3320 = vmatprep.subr.bf16.mxu0 %v5146_v32  ;;  %v1545_v32 = vld [vmem:[#allocation9 + $0xe8] sm:$0xff] }
 0x189   : > { %v597_v40 = vpop.f32.mrb[0].mxu0 }
 0x18a   : > { %v598_v41 = vadd.f32 %v597_v40, %v7291_v38  ;;  %v599_v42 = vpop.f32.mrb[1].mxu0 }
 0x18b   : > { %v600_v43 = vadd.f32 %v599_v42, %v7294_v39  ;;  %v601_v44 = vpop.f32.mrb[2].mxu0  ;;  %v5168_v42 = vcombine.high %v1540_v22, %v1544_v24 }
 0x18c   : > { %6056 = vtanh.f32 %v598_v41  ;;  %v602_v45 = vadd.f32 %v601_v44, %v7291_v38  ;;  %v603_v46 = vpop.f32.mrb[3].mxu0  ;;  %v1548_v44 = vld [vmem:[#allocation9 + $0x100] sm:$0xff] }
 0x18d   : > { %6058 = vtanh.f32 %v600_v43  ;;  %v604_v47 = vadd.f32 %v603_v46, %v7294_v39  ;;  %v5170_v43 = vcombine.high %v1541_v29, %v1545_v32 }
 0x18e   : > { %6060 = vtanh.f32 %v602_v45 }
 0x18f   : > { %6062 = vtanh.f32 %v604_v47  ;;  %v1552_v47 = vld [vmem:[#allocation9 + $0x120] sm:$0xff] }
 0x191   : > { %v607_v48 = vpop.f32.mrb[4].mxu0 }
 0x192   : > { %v608_v49 = vadd.f32 %v607_v48, %v7291_v38  ;;  %v609_v50 = vpop.f32.mrb[5].mxu0  ;;  %v1549_v48 = vld [vmem:[#allocation9 + $0x108] sm:$0xff] }
 0x193   : > { %v610_v51 = vadd.f32 %v609_v50, %v7294_v39  ;;  %v611_v52 = vpop.f32.mrb[6].mxu0 }
 0x194   : > { %6064 = vtanh.f32 %v608_v49  ;;  %v612_v53 = vadd.f32 %v611_v52, %v7291_v38  ;;  %v613_v54 = vpop.f32.mrb[7].mxu0  ;;  %v1553_v49 = vld [vmem:[#allocation9 + $0x128] sm:$0xff]  ;;  %v5167_v52 = vcombine.low %v1540_v22, %v1544_v24 }
 0x195   : > { %6066 = vtanh.f32 %v610_v51  ;;  %v614_v55 = vadd.f32 %v613_v54, %v7294_v39 }
 0x196   : > { %v6057_v56 = vpop.eup %6056  ;;  %6068 = vtanh.f32 %v612_v53  ;;  %v5169_v53 = vcombine.low %v1541_v29, %v1545_v32  ;;  %v1576_v29 = vld [vmem:[#allocation9 + $0x1e0] sm:$0xff]  ;;  %v1573_v32 = vld [vmem:[#allocation9 + $0x1c8] sm:$0xff] }
 0x197   : > { %v6059_v57 = vpop.eup %6058  ;;  %6070 = vtanh.f32 %v614_v55  ;;  %v5176_v55 = vcombine.high %v1548_v44, %v1552_v47 }
 0x198   : > { %v6061_v59 = vpop.eup %6060 }
 0x199   : > { %v6063_v63 = vpop.eup %6062  ;;  %v617_v1 = vpop.f32.mrb[8].mxu0  ;;  %v708_v2 = vpack.c.bf16 %v6061_v59, %v6057_v56  ;;  %v5178_v56 = vcombine.high %v1549_v48, %v1553_v49  ;;  %v1560_v59 = vld [vmem:[#allocation9 + $0x160] sm:$0xff] }
 0x19a   : > { %v618_v3 = vadd.f32 %v617_v1, %v7291_v38  ;;  %v619_v4 = vpop.f32.mrb[9].mxu0  ;;  %v709_v5 = vpack.c.bf16 %v6063_v63, %v6059_v57  ;;  %v1556_v57 = vld [vmem:[#allocation9 + $0x140] sm:$0xff] }
 0x19b   : > { %v620_v6 = vadd.f32 %v619_v4, %v7294_v39  ;;  %v621_v7 = vpop.f32.mrb[10].mxu0 }
 0x19c   : > { %6072 = vtanh.f32 %v618_v3  ;;  %v622_v11 = vadd.f32 %v621_v7, %v7291_v38  ;;  %v623_v12 = vpop.f32.mrb[11].mxu0  ;;  %1162 = vmatprep.mubr.bf16.mxu1 %v709_v5  ;;  %1275 = vmatprep.mubr.bf16.mxu0 %v709_v5 }
 0x19d   : > { %6074 = vtanh.f32 %v620_v6  ;;  %v624_v15 = vadd.f32 %v623_v12, %v7294_v39  ;;  %1163 = vmatmul.mubr.bf16.vlgmr.msra.gmra.mrb[0].mxu1 %v708_v2  ;;  %1276 = vmatmul.mubr.bf16.vlgmr.msra.gmra.mrb[32].mxu0 %v708_v2  ;;  %v5175_v2 = vcombine.low %v1548_v44, %v1552_v47  ;;  %v5177_v6 = vcombine.low %v1549_v48, %v1553_v49  ;;  %v1584_v48 = vld [vmem:[#allocation9 + $0x220] sm:$0xff]  ;;  %v1581_v49 = vld [vmem:[#allocation9 + $0x208] sm:$0xff] }
 0x19e   : > { %v6065_v16 = vpop.eup %6064  ;;  %6076 = vtanh.f32 %v622_v11  ;;  %3095 = vmatpush1.bf16.msra.mxu1 %v5143_v28  ;;  %3321 = vmatpush1.bf16.msra.mxu0 %v5145_v31  ;;  %v5159_v28 = vcombine.low %v1532_v10, %v1536_v13  ;;  %v5186_v10 = vcombine.high %v1557_v60, %v1561_v61  ;;  %v1564_v11 = vld [vmem:[#allocation9 + $0x180] sm:$0xff] }
 0x19f   : > { %v6067_v19 = vpop.eup %6066  ;;  %6078 = vtanh.f32 %v624_v15  ;;  %3096 = vmatprep.subr.bf16.mxu1 %v5152_v8  ;;  %3322 = vmatprep.subr.bf16.mxu0 %v5154_v9  ;;  %v5184_v9 = vcombine.high %v1556_v57, %v1560_v59  ;;  %v1569_v15 = vld [vmem:[#allocation9 + $0x1a8] sm:$0xff] }
 0x1a0   : > { %v6069_v23 = vpop.eup %6068  ;;  %v5194_v22 = vcombine.high %v1565_v0, %v1569_v15 }
 0x1a1   : > { %v6071_v33 = vpop.eup %6070  ;;  %v627_v25 = vpop.f32.mrb[12].mxu0  ;;  %v710_v26 = vpack.c.bf16 %v6069_v23, %v6065_v16  ;;  %v1572_v23 = vld [vmem:[#allocation9 + $0x1c0] sm:$0xff] }
 0x1a2   : > { %v628_v27 = vadd.f32 %v627_v25, %v7291_v38  ;;  %v629_v30 = vpop.f32.mrb[13].mxu0  ;;  %v711_v31 = vpack.c.bf16 %v6071_v33, %v6067_v19  ;;  %3097 = vmatpush1.bf16.msra.mxu1 %v5151_v17  ;;  %3323 = vmatpush1.bf16.msra.mxu0 %v5153_v18  ;;  %v5183_v18 = vcombine.low %v1556_v57, %v1560_v59  ;;  %v1577_v33 = vld [vmem:[#allocation9 + $0x1e8] sm:$0xff] }
 0x1a3   : > { %v630_v40 = vadd.f32 %v629_v30, %v7294_v39  ;;  %v631_v41 = vpop.f32.mrb[14].mxu0  ;;  %3098 = vmatprep.subr.bf16.mxu1 %v5160_v20  ;;  %3324 = vmatprep.subr.bf16.mxu0 %v5162_v21  ;;  %v5185_v19 = vcombine.low %v1557_v60, %v1561_v61  ;;  %v5192_v21 = vcombine.high %v1564_v11, %v1568_v14  ;;  %v1592_v60 = vld [vmem:[#allocation9 + $0x260] sm:$0xff]  ;;  %v1589_v61 = vld [vmem:[#allocation9 + $0x248] sm:$0xff] }
 0x1a4   : > { %6080 = vtanh.f32 %v628_v27  ;;  %v632_v45 = vadd.f32 %v631_v41, %v7291_v38  ;;  %v633_v46 = vpop.f32.mrb[15].mxu0  ;;  %1172 = vmatprep.mubr.bf16.mxu1 %v711_v31  ;;  %1285 = vmatprep.mubr.bf16.mxu0 %v711_v31  ;;  %v5191_v27 = vcombine.low %v1564_v11, %v1568_v14  ;;  %v5202_v44 = vcombine.high %v1573_v32, %v1577_v33 }
 0x1a5   : > { %6082 = vtanh.f32 %v630_v40  ;;  %v634_v50 = vadd.f32 %v633_v46, %v7294_v39  ;;  %1173 = vmatmul.mubr.bf16.gmra.mrb[4].mxu1 %v710_v26  ;;  %1286 = vmatmul.mubr.bf16.gmra.mrb[36].mxu0 %v710_v26  ;;  %v5193_v40 = vcombine.low %v1565_v0, %v1569_v15  ;;  %v1600_v0 = vld [vmem:[#allocation9 + $0x2a0] sm:$0xff]  ;;  %v1597_v15 = vld [vmem:[#allocation9 + $0x288] sm:$0xff] }
 0x1a6   : > { %v6073_v51 = vpop.eup %6072  ;;  %6084 = vtanh.f32 %v632_v45  ;;  %3099 = vmatpush1.bf16.msra.mxu1 %v5159_v28  ;;  %3325 = vmatpush1.bf16.msra.mxu0 %v5161_v36  ;;  %v1580_v45 = vld [vmem:[#allocation9 + $0x200] sm:$0xff] }
 0x1a7   : > { %v6075_v54 = vpop.eup %6074  ;;  %6086 = vtanh.f32 %v634_v50  ;;  %3100 = vmatprep.subr.bf16.mxu1 %v5168_v42  ;;  %3326 = vmatprep.subr.bf16.mxu0 %v5170_v43  ;;  %v5200_v43 = vcombine.high %v1572_v23, %v1576_v29  ;;  %v1585_v50 = vld [vmem:[#allocation9 + $0x228] sm:$0xff] }
 0x1a8   : > { %v6077_v58 = vpop.eup %6076  ;;  %v5210_v57 = vcombine.high %v1581_v49, %v1585_v50 }
 0x1a9   : > { %v6079_v62 = vpop.eup %6078  ;;  %v637_v63 = vpop.f32.mrb[16].mxu0  ;;  %v712_v1 = vpack.c.bf16 %v6077_v58, %v6073_v51  ;;  %v1588_v58 = vld [vmem:[#allocation9 + $0x240] sm:$0xff] }
 0x1aa   : > { %v638_v3 = vadd.f32 %v637_v63, %v7291_v38  ;;  %v639_v4 = vpop.f32.mrb[17].mxu0  ;;  %v713_v5 = vpack.c.bf16 %v6079_v62, %v6075_v54  ;;  %3101 = vmatpush1.bf16.msra.mxu1 %v5167_v52  ;;  %3327 = vmatpush1.bf16.msra.mxu0 %v5169_v53  ;;  %v5199_v53 = vcombine.low %v1572_v23, %v1576_v29  ;;  %v1593_v62 = vld [vmem:[#allocation9 + $0x268] sm:$0xff]  ;;  %v1604_v29 = vld [vmem:[#allocation9 + $0x2c0] sm:$0xff] }
 0x1ab   : > { %v640_v7 = vadd.f32 %v639_v4, %v7294_v39  ;;  %v641_v8 = vpop.f32.mrb[18].mxu0  ;;  %3102 = vmatprep.subr.bf16.mxu1 %v5176_v55  ;;  %3328 = vmatprep.subr.bf16.mxu0 %v5178_v56  ;;  %v5201_v54 = vcombine.low %v1573_v32, %v1577_v33  ;;  %v5208_v56 = vcombine.high %v1580_v45, %v1584_v48  ;;  %v1608_v32 = vld [vmem:[#allocation9 + $0x2e0] sm:$0xff] }
 0x1ac   : > { %6088 = vtanh.f32 %v638_v3  ;;  %v642_v12 = vadd.f32 %v641_v8, %v7291_v38  ;;  %v643_v13 = vpop.f32.mrb[19].mxu0  ;;  %1182 = vmatprep.mubr.bf16.mxu1 %v713_v5  ;;  %1295 = vmatprep.mubr.bf16.mxu0 %v713_v5  ;;  %v5207_v3 = vcombine.low %v1580_v45, %v1584_v48  ;;  %v5218_v11 = vcombine.high %v1589_v61, %v1593_v62 }
 0x1ad   : > { %6090 = vtanh.f32 %v640_v7  ;;  %v644_v16 = vadd.f32 %v643_v13, %v7294_v39  ;;  %1183 = vmatmul.mubr.bf16.gmra.mrb[8].mxu1 %v712_v1  ;;  %1296 = vmatmul.mubr.bf16.gmra.mrb[40].mxu0 %v712_v1  ;;  %v5209_v7 = vcombine.low %v1581_v49, %v1585_v50 }
 0x1ae   : > { %v6081_v17 = vpop.eup %6080  ;;  %6092 = vtanh.f32 %v642_v12  ;;  %3103 = vmatpush1.bf16.msra.mxu1 %v5175_v2  ;;  %3329 = vmatpush1.bf16.msra.mxu0 %v5177_v6  ;;  %v1596_v12 = vld [vmem:[#allocation9 + $0x280] sm:$0xff] }
 0x1af   : > { %v6083_v20 = vpop.eup %6082  ;;  %6094 = vtanh.f32 %v644_v16  ;;  %3104 = vmatprep.subr.bf16.mxu1 %v5184_v9  ;;  %3330 = vmatprep.subr.bf16.mxu0 %v5186_v10  ;;  %v5216_v10 = vcombine.high %v1588_v58, %v1592_v60  ;;  %v1601_v16 = vld [vmem:[#allocation9 + $0x2a8] sm:$0xff] }
 0x1b0   : > { %v6085_v24 = vpop.eup %6084  ;;  %v5226_v23 = vcombine.high %v1597_v15, %v1601_v16 }
 0x1b1   : > { %v6087_v25 = vpop.eup %6086  ;;  %v647_v26 = vpop.f32.mrb[20].mxu0  ;;  %v714_v28 = vpack.c.bf16 %v6085_v24, %v6081_v17 }
 0x1b2   : > { %v648_v30 = vadd.f32 %v647_v26, %v7291_v38  ;;  %v649_v31 = vpop.f32.mrb[21].mxu0  ;;  %v715_v36 = vpack.c.bf16 %v6087_v25, %v6083_v20  ;;  %3105 = vmatpush1.bf16.msra.mxu1 %v5183_v18  ;;  %3331 = vmatpush1.bf16.msra.mxu0 %v5185_v19  ;;  %v5215_v19 = vcombine.low %v1588_v58, %v1592_v60  ;;  %v1609_v58 = vld [vmem:[#allocation9 + $0x2e8] sm:$0xff] }
 0x1b3   : > { %v650_v41 = vadd.f32 %v649_v31, %v7294_v39  ;;  %v651_v42 = vpop.f32.mrb[22].mxu0  ;;  %3106 = vmatprep.subr.bf16.mxu1 %v5192_v21  ;;  %3332 = vmatprep.subr.bf16.mxu0 %v5194_v22  ;;  %v5217_v20 = vcombine.low %v1589_v61, %v1593_v62  ;;  %v5224_v22 = vcombine.high %v1596_v12, %v1600_v0  ;;  %v1612_v61 = vld [vmem:[#allocation9 + $0x300] sm:$0xff] }
 0x1b4   : > { %6096 = vtanh.f32 %v648_v30  ;;  %v652_v46 = vadd.f32 %v651_v42, %v7291_v38  ;;  %v653_v47 = vpop.f32.mrb[23].mxu0  ;;  %1192 = vmatprep.mubr.bf16.mxu1 %v715_v36  ;;  %1305 = vmatprep.mubr.bf16.mxu0 %v715_v36  ;;  %v5225_v36 = vcombine.low %v1597_v15, %v1601_v16  ;;  %v5232_v42 = vcombine.high %v1604_v29, %v1608_v32  ;;  %v1616_v62 = vld [vmem:[#allocation9 + $0x320] sm:$0xff]  ;;  %v1629_v15 = vld [vmem:[#allocation9 + $0x388] sm:$0xff] }
 0x1b5   : > { %6098 = vtanh.f32 %v650_v41  ;;  %v654_v51 = vadd.f32 %v653_v47, %v7294_v39  ;;  %1193 = vmatmul.mubr.bf16.gmra.mrb[12].mxu1 %v714_v28  ;;  %1306 = vmatmul.mubr.bf16.gmra.mrb[44].mxu0 %v714_v28  ;;  %v5223_v28 = vcombine.low %v1596_v12, %v1600_v0  ;;  %v5231_v47 = vcombine.low %v1604_v29, %v1608_v32  ;;  %v1632_v0 = vld [vmem:[#allocation9 + $0x3a0] sm:$0xff]  ;;  %v1641_v32 = vld [vmem:[#allocation9 + $0x3e8] sm:$0xff] }
 0x1b6   : > { %v6089_v52 = vpop.eup %6088  ;;  %6100 = vtanh.f32 %v652_v46  ;;  %3107 = vmatpush1.bf16.msra.mxu1 %v5191_v27  ;;  %3333 = vmatpush1.bf16.msra.mxu0 %v5193_v40 }
 0x1b7   : > { %v6091_v55 = vpop.eup %6090  ;;  %6102 = vtanh.f32 %v654_v51  ;;  %3108 = vmatprep.subr.bf16.mxu1 %v5200_v43  ;;  %3334 = vmatprep.subr.bf16.mxu0 %v5202_v44 }
 0x1b8   : > { %v6093_v59 = vpop.eup %6092 }
 0x1b9   : > { %v6095_v63 = vpop.eup %6094  ;;  %v657_v1 = vpop.f32.mrb[24].mxu0  ;;  %v716_v2 = vpack.c.bf16 %v6093_v59, %v6089_v52 }
 0x1ba   : > { %v658_v4 = vadd.f32 %v657_v1, %v7291_v38  ;;  %v659_v5 = vpop.f32.mrb[25].mxu0  ;;  %v717_v6 = vpack.c.bf16 %v6095_v63, %v6091_v55  ;;  %3109 = vmatpush1.bf16.msra.mxu1 %v5199_v53  ;;  %3335 = vmatpush1.bf16.msra.mxu0 %v5201_v54  ;;  %v1613_v63 = vld [vmem:[#allocation9 + $0x308] sm:$0xff]  ;;  %v5240_v1 = vcombine.high %v1612_v61, %v1616_v62 }
 0x1bb   : > { %v660_v8 = vadd.f32 %v659_v5, %v7294_v39  ;;  %v661_v9 = vpop.f32.mrb[26].mxu0  ;;  %3110 = vmatprep.subr.bf16.mxu1 %v5208_v56  ;;  %3336 = vmatprep.subr.bf16.mxu0 %v5210_v57  ;;  %v1605_v57 = vld [vmem:[#allocation9 + $0x2c8] sm:$0xff] }
 0x1bc   : > { %6104 = vtanh.f32 %v658_v4  ;;  %v662_v13 = vadd.f32 %v661_v9, %v7291_v38  ;;  %v663_v14 = vpop.f32.mrb[27].mxu0  ;;  %1202 = vmatprep.mubr.bf16.mxu1 %v717_v6  ;;  %1315 = vmatprep.mubr.bf16.mxu0 %v717_v6  ;;  %v5234_v59 = vcombine.high %v1605_v57, %v1609_v58  ;;  %v5233_v60 = vcombine.low %v1605_v57, %v1609_v58  ;;  %v1620_v6 = vld [vmem:[#allocation9 + $0x340] sm:$0xff] }
 0x1bd   : > { %6106 = vtanh.f32 %v660_v8  ;;  %v664_v17 = vadd.f32 %v663_v14, %v7294_v39  ;;  %1203 = vmatmul.mubr.bf16.gmra.mrb[16].mxu1 %v716_v2  ;;  %1316 = vmatmul.mubr.bf16.gmra.mrb[48].mxu0 %v716_v2  ;;  %v1617_v2 = vld [vmem:[#allocation9 + $0x328] sm:$0xff]  ;;  %v1628_v14 = vld [vmem:[#allocation9 + $0x380] sm:$0xff] }
 0x1be   : > { %v6097_v18 = vpop.eup %6096  ;;  %6108 = vtanh.f32 %v662_v13  ;;  %3111 = vmatpush1.bf16.msra.mxu1 %v5207_v3  ;;  %3337 = vmatpush1.bf16.msra.mxu0 %v5209_v7  ;;  %v5239_v3 = vcombine.low %v1612_v61, %v1616_v62  ;;  %v5241_v4 = vcombine.low %v1613_v63, %v1617_v2  ;;  %v5242_v5 = vcombine.high %v1613_v63, %v1617_v2  ;;  %v1624_v7 = vld [vmem:[#allocation9 + $0x360] sm:$0xff]  ;;  %v1621_v8 = vld [vmem:[#allocation9 + $0x348] sm:$0xff] }
 0x1bf   : > { %v6099_v21 = vpop.eup %6098  ;;  %6110 = vtanh.f32 %v664_v17  ;;  %3112 = vmatprep.subr.bf16.mxu1 %v5216_v10  ;;  %3338 = vmatprep.subr.bf16.mxu0 %v5218_v11  ;;  %v5247_v9 = vcombine.low %v1620_v6, %v1624_v7  ;;  %v5248_v10 = vcombine.high %v1620_v6, %v1624_v7  ;;  %v1625_v11 = vld [vmem:[#allocation9 + $0x368] sm:$0xff]  ;;  %v5256_v16 = vcombine.high %v1628_v14, %v1632_v0 }
 0x1c0   : > { %v6101_v24 = vpop.eup %6100  ;;  %v5249_v12 = vcombine.low %v1621_v8, %v1625_v11  ;;  %v5250_v13 = vcombine.high %v1621_v8, %v1625_v11  ;;  %v1633_v17 = vld [vmem:[#allocation9 + $0x3a8] sm:$0xff] }
 0x1c1   : > { %v6103_v33 = vpop.eup %6102  ;;  %v667_v25 = vpop.f32.mrb[28].mxu0  ;;  %v718_v26 = vpack.c.bf16 %v6101_v24, %v6097_v18  ;;  %v5255_v18 = vcombine.low %v1628_v14, %v1632_v0 }
 0x1c2   : > { %v668_v27 = vadd.f32 %v667_v25, %v7291_v38  ;;  %v669_v30 = vpop.f32.mrb[29].mxu0  ;;  %v719_v31 = vpack.c.bf16 %v6103_v33, %v6099_v21  ;;  %3113 = vmatpush1.bf16.msra.mxu1 %v5215_v19  ;;  %3339 = vmatpush1.bf16.msra.mxu0 %v5217_v20  ;;  %v5257_v19 = vcombine.low %v1629_v15, %v1633_v17  ;;  %v1636_v21 = vld [vmem:[#allocation9 + $0x3c0] sm:$0xff] }
 0x1c3   : > { %v670_v40 = vadd.f32 %v669_v30, %v7294_v39  ;;  %v671_v41 = vpop.f32.mrb[30].mxu0  ;;  %3114 = vmatprep.subr.bf16.mxu1 %v5224_v22  ;;  %3340 = vmatprep.subr.bf16.mxu0 %v5226_v23  ;;  %v5258_v20 = vcombine.high %v1629_v15, %v1633_v17  ;;  %v1640_v22 = vld [vmem:[#allocation9 + $0x3e0] sm:$0xff]  ;;  %v1637_v23 = vld [vmem:[#allocation9 + $0x3c8] sm:$0xff] }
 0x1c4   : > { %6112 = vtanh.f32 %v668_v27  ;;  %v672_v43 = vadd.f32 %v671_v41, %v7291_v38  ;;  %v673_v44 = vpop.f32.mrb[31].mxu0  ;;  %1212 = vmatprep.mubr.bf16.mxu1 %v719_v31  ;;  %1325 = vmatprep.mubr.bf16.mxu0 %v719_v31  ;;  %v5263_v24 = vcombine.low %v1636_v21, %v1640_v22  ;;  %v5264_v29 = vcombine.high %v1636_v21, %v1640_v22  ;;  %v7338_v27 = vld [vmem:[#allocation9 + $0x408] sm:$0xff] }
 0x1c5   : > { %6114 = vtanh.f32 %v670_v40  ;;  %v674_v45 = vadd.f32 %v673_v44, %v7294_v39  ;;  %1213 = vmatmul.mubr.bf16.gmra.mrb[20].mxu1 %v718_v26  ;;  %1326 = vmatmul.mubr.bf16.gmra.mrb[52].mxu0 %v718_v26  ;;  %v5265_v33 = vcombine.low %v1637_v23, %v1641_v32  ;;  %v5266_v25 = vcombine.high %v1637_v23, %v1641_v32  ;;  %v7334_v26 = vld [vmem:[#allocation9 + $0x400] sm:$0xff]  ;;  %v7342_v31 = vld [vmem:[#allocation9 + $0x428] sm:$0xff] }
 0x1c6   : > { %v6105_v46 = vpop.eup %6104  ;;  %6116 = vtanh.f32 %v672_v43  ;;  %3115 = vmatpush1.bf16.msra.mxu1 %v5223_v28  ;;  %3341 = vmatpush1.bf16.msra.mxu0 %v5225_v36  ;;  %v7336_v28 = vld [vmem:[#allocation9 + $0x420] sm:$0xff]  ;;  %v5273_v40 = vcombine.low %v7338_v27, %v7342_v31  ;;  %v5274_v41 = vcombine.high %v7338_v27, %v7342_v31  ;;  %v8565_v44 = vsub.s32 3, %v7279_v34 }
 0x1c7   : > { %v6107_v48 = vpop.eup %6106  ;;  %6118 = vtanh.f32 %v674_v45  ;;  %3116 = vmatprep.subr.bf16.mxu1 %v5232_v42  ;;  %3342 = vmatprep.subr.bf16.mxu0 %v5234_v59  ;;  %v5272_v30 = vcombine.high %v7334_v26, %v7336_v28  ;;  %v5271_v36 = vcombine.low %v7334_v26, %v7336_v28  ;;  %v8566_v42 = vsub.s32 2, %v7279_v34  ;;  %v788_v43 = vld [vmem:[%s8554_s4] sm:$0xf] }
 0x1c8   : > { %v6109_v49 = vpop.eup %6108  ;;  %v7356_v45 = vrot.slane %v788_v43, %v7282_v35  ;;  %v7387_v32 = vld [vmem:[#allocation9 + $0x440] sm:$0xff] }
 0x1c9   : > { %v6111_v50 = vpop.eup %6110  ;;  %v720_v51 = vpack.c.bf16 %v6109_v49, %v6105_v46  ;;  %v7360_v46 = vrot.slane %v788_v43, %v8566_v42  ;;  %v1762_v42 = vld [vmem:[#allocation9 + $0x7b0] sm:$0xff] }
 0x1ca   : > { %v721_v38 = vpack.c.bf16 %v6111_v50, %v6107_v48  ;;  %3117 = vmatpush1.bf16.msra.mxu1 %v5231_v47  ;;  %3343 = vmatpush1.bf16.msra.mxu0 %v5233_v60  ;;  %v7363_v47 = vrot.slane %v788_v43, %v7288_v37  ;;  %v7367_v48 = vrot.slane %v788_v43, %v8565_v44  ;;  %v1755_v44 = vld [vmem:[#allocation9 + $0x778] sm:$0xff] }
 0x1cb   : > { %3118 = vmatprep.subr.bf16.mxu1 %v5240_v1  ;;  %3344 = vmatprep.subr.bf16.mxu0 %v5242_v5  ;;  %v1771_v37 = vld [vmem:[#allocation9 + $0x7f8] sm:$0xff] }
 0x1cc   : > { %1222 = vmatprep.mubr.bf16.mxu1 %v721_v38  ;;  %1335 = vmatprep.mubr.bf16.mxu0 %v721_v38 }
 0x1cd   : > { %1223 = vmatmul.mubr.bf16.gmra.mrb[24].mxu1 %v720_v51  ;;  %1336 = vmatmul.mubr.bf16.gmra.mrb[56].mxu0 %v720_v51 }
 0x1ce   : > { %v6113_v39 = vpop.eup %6112  ;;  %3119 = vmatpush1.bf16.msra.mxu1 %v5239_v3  ;;  %3345 = vmatpush1.bf16.msra.mxu0 %v5241_v4 }
 0x1cf   : > { %v6115_v52 = vpop.eup %6114  ;;  %3120 = vmatprep.subr.bf16.mxu1 %v5248_v10  ;;  %3346 = vmatprep.subr.bf16.mxu0 %v5250_v13 }
 0x1d0   : > { %v6117_v53 = vpop.eup %6116 }
 0x1d1   : > { %v6119_v54 = vpop.eup %6118  ;;  %v722_v55 = vpack.c.bf16 %v6117_v53, %v6113_v39 }
 0x1d2   : > { %v723_v56 = vpack.c.bf16 %v6119_v54, %v6115_v52  ;;  %3121 = vmatpush1.bf16.msra.mxu1 %v5247_v9  ;;  %3347 = vmatpush1.bf16.msra.mxu0 %v5249_v12 }
 0x1d3   : > { %3122 = vmatprep.subr.bf16.mxu1 %v5256_v16  ;;  %3348 = vmatprep.subr.bf16.mxu0 %v5258_v20 }
 0x1d4   : > { %1232 = vmatprep.mubr.bf16.mxu1 %v723_v56  ;;  %1345 = vmatprep.mubr.bf16.mxu0 %v723_v56 }
 0x1d5   : > { %1233 = vmatmul.mubr.bf16.gmra.mrb[28].mxu1 %v722_v55  ;;  %1346 = vmatmul.mubr.bf16.gmra.mrb[60].mxu0 %v722_v55 }
 0x1d6   : > { %3123 = vmatpush1.bf16.msra.mxu1 %v5255_v18  ;;  %3349 = vmatpush1.bf16.msra.mxu0 %v5257_v19 }
 0x1d7   : > { %3124 = vmatprep.subr.bf16.mxu1 %v5264_v29  ;;  %3350 = vmatprep.subr.bf16.mxu0 %v5266_v25 }
 0x1da   : > { %3125 = vmatpush1.bf16.msra.mxu1 %v5263_v24  ;;  %3351 = vmatpush1.bf16.msra.mxu0 %v5265_v33  ;;  %v7389_v33 = vld [vmem:[#allocation9 + $0x460] sm:$0xff] }
 0x1db   : > { %3207 = vmatprep.subr.bf16.mxu1 %v5272_v30  ;;  %3433 = vmatprep.subr.bf16.mxu0 %v5274_v41 }
 0x270   : > { %v1164_v49 = vpop.f32.mrb[0].mxu1  ;;  %v1277_v50 = vpop.f32.mrb[32].mxu0 }
 0x271   : > { %v1165_v51 = vadd.f32 %v1164_v49, %v7356_v45  ;;  %v1278_v38 = vadd.f32 %v1277_v50, %v7360_v46  ;;  %v1166_v39 = vpop.f32.mrb[1].mxu1  ;;  %v1279_v52 = vpop.f32.mrb[33].mxu0 }
 0x272   : > { %v1167_v53 = vadd.f32 %v1166_v39, %v7363_v47  ;;  %v1280_v54 = vadd.f32 %v1279_v52, %v7367_v48  ;;  %v1168_v55 = vpop.f32.mrb[2].mxu1  ;;  %v1281_v56 = vpop.f32.mrb[34].mxu0 }
 0x273   : > { %6120 = vtanh.f32 %v1165_v51  ;;  %v1169_v57 = vadd.f32 %v1168_v55, %v7356_v45  ;;  %v1170_v58 = vpop.f32.mrb[3].mxu1  ;;  %v1283_v59 = vpop.f32.mrb[35].mxu0  ;;  %v1282_v60 = vadd.f32 %v1281_v56, %v7360_v46  ;;  %v7395_v51 = vld [vmem:[#allocation9 + $0x448] sm:$0xff] }
 0x274   : > { %6122 = vtanh.f32 %v1278_v38  ;;  %v1171_v61 = vadd.f32 %v1170_v58, %v7363_v47  ;;  %v1284_v62 = vadd.f32 %v1283_v59, %v7367_v48  ;;  %v7397_v38 = vld [vmem:[#allocation9 + $0x468] sm:$0xff]  ;;  %v5280_v59 = vcombine.high %v7387_v32, %v7389_v33 }
 0x275   : > { %6124 = vtanh.f32 %v1167_v53 }
 0x276   : > { %6126 = vtanh.f32 %v1280_v54 }
 0x277   : > { %6128 = vtanh.f32 %v1169_v57 }
 0x278   : > { %6130 = vtanh.f32 %v1282_v60  ;;  %v1174_v63 = vpop.f32.mrb[4].mxu1  ;;  %v1287_v1 = vpop.f32.mrb[36].mxu0 }
 0x279   : > { %6132 = vtanh.f32 %v1171_v61  ;;  %v1175_v2 = vadd.f32 %v1174_v63, %v7356_v45  ;;  %v1288_v3 = vadd.f32 %v1287_v1, %v7360_v46  ;;  %v1176_v4 = vpop.f32.mrb[5].mxu1  ;;  %v1289_v5 = vpop.f32.mrb[37].mxu0  ;;  %v7410_v63 = vld [vmem:[#allocation9 + $0x480] sm:$0xff] }
 0x27a   : > { %6134 = vtanh.f32 %v1284_v62  ;;  %v1177_v6 = vadd.f32 %v1176_v4, %v7363_v47  ;;  %v1290_v7 = vadd.f32 %v1289_v5, %v7367_v48  ;;  %v1178_v8 = vpop.f32.mrb[6].mxu1  ;;  %v1291_v9 = vpop.f32.mrb[38].mxu0  ;;  %v5282_v62 = vcombine.high %v7395_v51, %v7397_v38  ;;  %v7412_v1 = vld [vmem:[#allocation9 + $0x4a0] sm:$0xff]  ;;  %v7419_v5 = vld [vmem:[#allocation9 + $0x488] sm:$0xff] }
 0x27b   : > { %6136 = vtanh.f32 %v1175_v2  ;;  %v1179_v10 = vadd.f32 %v1178_v8, %v7356_v45  ;;  %v1180_v11 = vpop.f32.mrb[7].mxu1  ;;  %v1293_v12 = vpop.f32.mrb[39].mxu0  ;;  %v1292_v13 = vadd.f32 %v1291_v9, %v7360_v46  ;;  %v5279_v8 = vcombine.low %v7387_v32, %v7389_v33 }
 0x27c   : > { %6138 = vtanh.f32 %v1288_v3  ;;  %v1181_v0 = vadd.f32 %v1180_v11, %v7363_v47  ;;  %v1294_v16 = vadd.f32 %v1293_v12, %v7367_v48  ;;  %v5281_v12 = vcombine.low %v7395_v51, %v7397_v38 }
 0x27d   : > { %v6121_v14 = vpop.eup %6120  ;;  %6140 = vtanh.f32 %v1177_v6  ;;  %v7421_v6 = vld [vmem:[#allocation9 + $0x4a8] sm:$0xff] }
 0x27e   : > { %v6123_v15 = vpop.eup %6122  ;;  %6142 = vtanh.f32 %v1290_v7 }
 0x27f   : > { %v6125_v17 = vpop.eup %6124  ;;  %6144 = vtanh.f32 %v1179_v10 }
 0x280   : > { %v6127_v18 = vpop.eup %6126  ;;  %6146 = vtanh.f32 %v1292_v13  ;;  %v1184_v19 = vpop.f32.mrb[8].mxu1  ;;  %v5287_v13 = vcombine.low %v7410_v63, %v7412_v1 }
 0x281   : > { %v1297_v20 = vpop.f32.mrb[40].mxu0  ;;  %v6129_v21 = vpop.eup %6128  ;;  %6148 = vtanh.f32 %v1181_v0  ;;  %v1185_v22 = vadd.f32 %v1184_v19, %v7356_v45 }
 0x282   : > { %v1298_v23 = vadd.f32 %v1297_v20, %v7360_v46  ;;  %v1186_v24 = vpop.f32.mrb[9].mxu1  ;;  %v1299_v29 = vpop.f32.mrb[41].mxu0  ;;  %6150 = vtanh.f32 %v1294_v16  ;;  %v7393_v50 = vpack.c.bf16 %v6129_v21, %v6121_v14  ;;  %v5288_v14 = vcombine.high %v7410_v63, %v7412_v1 }
 0x283   : > { %v6131_v25 = vpop.eup %6130  ;;  %v1187_v30 = vadd.f32 %v1186_v24, %v7363_v47  ;;  %v1300_v41 = vadd.f32 %v1299_v29, %v7367_v48  ;;  %v1188_v43 = vpop.f32.mrb[10].mxu1  ;;  %6152 = vtanh.f32 %v1185_v22  ;;  %v7451_v22 = vld [vmem:[#allocation9 + $0x4c8] sm:$0xff] }
 0x284   : > { %v1301_v49 = vpop.f32.mrb[42].mxu0  ;;  %v6133_v39 = vpop.eup %6132  ;;  %v1189_v52 = vadd.f32 %v1188_v43, %v7356_v45  ;;  %v7400_v55 = vpack.c.bf16 %v6131_v25, %v6123_v15  ;;  %6154 = vtanh.f32 %v1298_v23  ;;  %v7445_v15 = vld [vmem:[#allocation9 + $0x4e0] sm:$0xff]  ;;  %v7453_v23 = vld [vmem:[#allocation9 + $0x4e8] sm:$0xff]  ;;  %v5289_v25 = vcombine.low %v7419_v5, %v7421_v6 }
 0x285   : > { %v1190_v53 = vpop.f32.mrb[11].mxu1  ;;  %v1303_v54 = vpop.f32.mrb[43].mxu0  ;;  %v1302_v57 = vadd.f32 %v1301_v49, %v7360_v46  ;;  %v7403_v58 = vpack.c.bf16 %v6133_v39, %v6125_v17  ;;  %6156 = vtanh.f32 %v1187_v30 }
 0x286   : > { %v6135_v56 = vpop.eup %6134  ;;  %v1191_v61 = vadd.f32 %v1190_v53, %v7363_v47  ;;  %6158 = vtanh.f32 %v1300_v41  ;;  %v1304_v4 = vadd.f32 %v1303_v54, %v7367_v48  ;;  %v7468_v53 = vld [vmem:[#allocation9 + $0x500] sm:$0xff] }
 0x287   : > { %v6137_v60 = vpop.eup %6136  ;;  %v7414_v2 = vpack.c.bf16 %v6135_v56, %v6127_v18  ;;  %3126 = vmatprep.mubr.bf16.mxu1 %v7403_v58  ;;  %3352 = vmatprep.mubr.bf16.mxu0 %v7403_v58  ;;  %6160 = vtanh.f32 %v1189_v52  ;;  %v5298_v52 = vcombine.high %v7451_v22, %v7453_v23  ;;  %v7470_v54 = vld [vmem:[#allocation9 + $0x520] sm:$0xff] }
 0x288   : > { %v6139_v3 = vpop.eup %6138  ;;  %3127 = vmatmul.mubr.bf16.vlgmr.msra.gmra.mrb[32].mxu1 %v7393_v50  ;;  %3353 = vmatmul.mubr.bf16.vlgmr.msra.gmra.mrb[64].mxu0 %v7393_v50  ;;  %6162 = vtanh.f32 %v1302_v57  ;;  %v1194_v10 = vpop.f32.mrb[12].mxu1 }
 0x289   : > { %v6141_v7 = vpop.eup %6140  ;;  %3208 = vmatpush1.bf16.msra.mxu1 %v5271_v36  ;;  %3434 = vmatpush1.bf16.msra.mxu0 %v5273_v40  ;;  %v1307_v11 = vpop.f32.mrb[44].mxu0  ;;  %6164 = vtanh.f32 %v1191_v61  ;;  %v1195_v26 = vadd.f32 %v1194_v10, %v7356_v45  ;;  %v5290_v36 = vcombine.high %v7419_v5, %v7421_v6  ;;  %v7443_v40 = vld [vmem:[#allocation9 + $0x4c0] sm:$0xff]  ;;  %v7479_v61 = vld [vmem:[#allocation9 + $0x528] sm:$0xff]  ;;  %v5297_v5 = vcombine.low %v7451_v22, %v7453_v23 }
 0x28a   : > { %v6143_v9 = vpop.eup %6142  ;;  %3209 = vmatprep.subr.bf16.mxu1 %v5280_v59  ;;  %v1308_v28 = vadd.f32 %v1307_v11, %v7360_v46  ;;  %3435 = vmatprep.subr.bf16.mxu0 %v5282_v62  ;;  %v1196_v27 = vpop.f32.mrb[13].mxu1  ;;  %6166 = vtanh.f32 %v1304_v4  ;;  %v5296_v51 = vcombine.high %v7443_v40, %v7445_v15  ;;  %v5295_v63 = vcombine.low %v7443_v40, %v7445_v15  ;;  %v7503_v15 = vld [vmem:[#allocation9 + $0x548] sm:$0xff] }
 0x28b   : > { %v6145_v0 = vpop.eup %6144  ;;  %v1309_v31 = vpop.f32.mrb[45].mxu0  ;;  %v1197_v17 = vadd.f32 %v1196_v27, %v7363_v47  ;;  %6168 = vtanh.f32 %v1195_v26  ;;  %v5303_v6 = vcombine.low %v7468_v53, %v7470_v54 }
 0x28c   : > { %v6147_v16 = vpop.eup %6146  ;;  %v1310_v18 = vadd.f32 %v1309_v31, %v7367_v48  ;;  %v1198_v19 = vpop.f32.mrb[14].mxu1  ;;  %v7449_v21 = vpack.c.bf16 %v6145_v0, %v6137_v60  ;;  %6170 = vtanh.f32 %v1308_v28  ;;  %v7477_v60 = vld [vmem:[#allocation9 + $0x508] sm:$0xff]  ;;  %v7497_v0 = vld [vmem:[#allocation9 + $0x560] sm:$0xff] }
 0x28d   : > { %v1311_v20 = vpop.f32.mrb[46].mxu0  ;;  %v6149_v24 = vpop.eup %6148  ;;  %v1199_v29 = vadd.f32 %v1198_v19, %v7356_v45  ;;  %v7458_v30 = vpack.c.bf16 %v6147_v16, %v6139_v3  ;;  %3210 = vmatpush1.bf16.msra.mxu1 %v5279_v8  ;;  %3436 = vmatpush1.bf16.msra.mxu0 %v5281_v12  ;;  %6172 = vtanh.f32 %v1197_v17  ;;  %v7505_v16 = vld [vmem:[#allocation9 + $0x568] sm:$0xff]  ;;  %v5305_v22 = vcombine.low %v7477_v60, %v7479_v61 }
 0x28e   : > { %v1200_v32 = vpop.f32.mrb[15].mxu1  ;;  %v1313_v33 = vpop.f32.mrb[47].mxu0  ;;  %v1312_v43 = vadd.f32 %v1311_v20, %v7360_v46  ;;  %v7461_v49 = vpack.c.bf16 %v6149_v24, %v6141_v7  ;;  %3211 = vmatprep.subr.bf16.mxu1 %v5288_v14  ;;  %3437 = vmatprep.subr.bf16.mxu0 %v5290_v36  ;;  %6174 = vtanh.f32 %v1310_v18  ;;  %v5304_v7 = vcombine.high %v7468_v53, %v7470_v54  ;;  %v7495_v14 = vld [vmem:[#allocation9 + $0x540] sm:$0xff]  ;;  %v7529_v54 = vld [vmem:[#allocation9 + $0x588] sm:$0xff] }
 0x28f   : > { %v6151_v41 = vpop.eup %6150  ;;  %v1201_v39 = vadd.f32 %v1200_v32, %v7363_v47  ;;  %v1314_v59 = vadd.f32 %v1313_v33, %v7367_v48  ;;  %6176 = vtanh.f32 %v1199_v29  ;;  %v5312_v33 = vcombine.high %v7495_v14, %v7497_v0 }
 0x290   : > { %v6153_v38 = vpop.eup %6152  ;;  %v7472_v56 = vpack.c.bf16 %v6151_v41, %v6143_v9  ;;  %3136 = vmatprep.mubr.bf16.mxu1 %v7461_v49  ;;  %3362 = vmatprep.mubr.bf16.mxu0 %v7461_v49  ;;  %6178 = vtanh.f32 %v1312_v43  ;;  %v1204_v3 = vpop.f32.mrb[16].mxu1  ;;  %v5314_v43 = vcombine.high %v7503_v15, %v7505_v16 }
 0x291   : > { %v6155_v57 = vpop.eup %6154  ;;  %3137 = vmatmul.mubr.bf16.gmra.mrb[36].mxu1 %v7449_v21  ;;  %3363 = vmatmul.mubr.bf16.gmra.mrb[68].mxu0 %v7449_v21  ;;  %v1317_v4 = vpop.f32.mrb[48].mxu0  ;;  %6180 = vtanh.f32 %v1201_v39  ;;  %v1205_v9 = vadd.f32 %v1204_v3, %v7356_v45 }
 0x292   : > { %v6157_v62 = vpop.eup %6156  ;;  %3212 = vmatpush1.bf16.msra.mxu1 %v5287_v13  ;;  %3438 = vmatpush1.bf16.msra.mxu0 %v5289_v25  ;;  %v1318_v10 = vadd.f32 %v1317_v4, %v7360_v46  ;;  %v1206_v11 = vpop.f32.mrb[17].mxu1  ;;  %v5306_v13 = vcombine.high %v7477_v60, %v7479_v61  ;;  %6182 = vtanh.f32 %v1314_v59  ;;  %v5311_v60 = vcombine.low %v7495_v14, %v7497_v0 }
 0x293   : > { %v6159_v1 = vpop.eup %6158  ;;  %3213 = vmatprep.subr.bf16.mxu1 %v5296_v51  ;;  %3439 = vmatprep.subr.bf16.mxu0 %v5298_v52  ;;  %v1319_v12 = vpop.f32.mrb[49].mxu0  ;;  %v1207_v28 = vadd.f32 %v1206_v11, %v7363_v47  ;;  %6184 = vtanh.f32 %v1205_v9  ;;  %v7520_v51 = vld [vmem:[#allocation9 + $0x580] sm:$0xff] }
 0x294   : > { %v6161_v8 = vpop.eup %6160  ;;  %v1320_v27 = vadd.f32 %v1319_v12, %v7367_v48  ;;  %v1208_v31 = vpop.f32.mrb[18].mxu1  ;;  %6186 = vtanh.f32 %v1318_v10  ;;  %v7547_v11 = vld [vmem:[#allocation9 + $0x5c0] sm:$0xff] }
 0x295   : > { %v6163_v26 = vpop.eup %6162  ;;  %v1321_v36 = vpop.f32.mrb[50].mxu0  ;;  %v7501_v40 = vpack.c.bf16 %v6161_v8, %v6153_v38  ;;  %v1209_v18 = vadd.f32 %v1208_v31, %v7356_v45  ;;  %6188 = vtanh.f32 %v1207_v28  ;;  %v7522_v38 = vld [vmem:[#allocation9 + $0x5a0] sm:$0xff]  ;;  %v7555_v31 = vld [vmem:[#allocation9 + $0x5c8] sm:$0xff] }
 0x296   : > { %v6165_v17 = vpop.eup %6164  ;;  %v1210_v19 = vpop.f32.mrb[19].mxu1  ;;  %v7510_v23 = vpack.c.bf16 %v6163_v26, %v6155_v57  ;;  %3214 = vmatpush1.bf16.msra.mxu1 %v5295_v63  ;;  %3440 = vmatpush1.bf16.msra.mxu0 %v5297_v5  ;;  %v1322_v29 = vadd.f32 %v1321_v36, %v7360_v46  ;;  %6190 = vtanh.f32 %v1320_v27  ;;  %v7531_v57 = vld [vmem:[#allocation9 + $0x5a8] sm:$0xff]  ;;  %v5319_v3 = vcombine.low %v7520_v51, %v7522_v38  ;;  %v7549_v12 = vld [vmem:[#allocation9 + $0x5e0] sm:$0xff] }
 0x297   : > { %v1323_v20 = vpop.f32.mrb[51].mxu0  ;;  %v6167_v24 = vpop.eup %6166  ;;  %v7513_v32 = vpack.c.bf16 %v6165_v17, %v6157_v62  ;;  %v1211_v41 = vadd.f32 %v1210_v19, %v7363_v47  ;;  %3215 = vmatprep.subr.bf16.mxu1 %v5304_v7  ;;  %3441 = vmatprep.subr.bf16.mxu0 %v5306_v13  ;;  %6192 = vtanh.f32 %v1209_v18  ;;  %v5320_v4 = vcombine.high %v7520_v51, %v7522_v38  ;;  %v7557_v36 = vld [vmem:[#allocation9 + $0x5e8] sm:$0xff]  ;;  %v7572_v51 = vld [vmem:[#allocation9 + $0x600] sm:$0xff] }
 0x298   : > { %v6169_v25 = vpop.eup %6168  ;;  %v7524_v39 = vpack.c.bf16 %v6167_v24, %v6159_v1  ;;  %v1324_v53 = vadd.f32 %v1323_v20, %v7367_v48  ;;  %6194 = vtanh.f32 %v1322_v29  ;;  %v1214_v62 = vpop.f32.mrb[20].mxu1  ;;  %v5313_v1 = vcombine.low %v7503_v15, %v7505_v16  ;;  %v7574_v38 = vld [vmem:[#allocation9 + $0x620] sm:$0xff] }
 0x299   : > { %v6171_v52 = vpop.eup %6170  ;;  %3146 = vmatprep.mubr.bf16.mxu1 %v7513_v32  ;;  %3372 = vmatprep.mubr.bf16.mxu0 %v7513_v32  ;;  %v1327_v63 = vpop.f32.mrb[52].mxu0  ;;  %6196 = vtanh.f32 %v1211_v41  ;;  %v1215_v7 = vadd.f32 %v1214_v62, %v7356_v45  ;;  %v5322_v10 = vcombine.high %v7529_v54, %v7531_v57  ;;  %v5321_v19 = vcombine.low %v7529_v54, %v7531_v57  ;;  %v7581_v57 = vld [vmem:[#allocation9 + $0x608] sm:$0xff] }
 0x29a   : > { %v6173_v59 = vpop.eup %6172  ;;  %3147 = vmatmul.mubr.bf16.gmra.mrb[40].mxu1 %v7501_v40  ;;  %3373 = vmatmul.mubr.bf16.gmra.mrb[72].mxu0 %v7501_v40  ;;  %v1328_v8 = vadd.f32 %v1327_v63, %v7360_v46  ;;  %v1329_v9 = vpop.f32.mrb[53].mxu0  ;;  %6198 = vtanh.f32 %v1324_v53 }
 0x29b   : > { %v6175_v61 = vpop.eup %6174  ;;  %3216 = vmatpush1.bf16.msra.mxu1 %v5303_v6  ;;  %3442 = vmatpush1.bf16.msra.mxu0 %v5305_v22  ;;  %v1216_v6 = vpop.f32.mrb[21].mxu1  ;;  %v1330_v0 = vadd.f32 %v1329_v9, %v7367_v48  ;;  %6200 = vtanh.f32 %v1215_v7  ;;  %v5336_v7 = vcombine.high %v7572_v51, %v7574_v38 }
 0x29c   : > { %v6177_v5 = vpop.eup %6176  ;;  %3217 = vmatprep.subr.bf16.mxu1 %v5312_v33  ;;  %3443 = vmatprep.subr.bf16.mxu0 %v5314_v43  ;;  %v1217_v14 = vadd.f32 %v1216_v6, %v7363_v47  ;;  %v1218_v26 = vpop.f32.mrb[22].mxu1  ;;  %6202 = vtanh.f32 %v1328_v8  ;;  %v5328_v33 = vcombine.high %v7547_v11, %v7549_v12  ;;  %v5330_v43 = vcombine.high %v7555_v31, %v7557_v36 }
 0x29d   : > { %v6179_v13 = vpop.eup %6178  ;;  %v1331_v28 = vpop.f32.mrb[54].mxu0  ;;  %v7553_v27 = vpack.c.bf16 %v6177_v5, %v6169_v25  ;;  %v1219_v16 = vadd.f32 %v1218_v26, %v7356_v45  ;;  %v5335_v5 = vcombine.low %v7572_v51, %v7574_v38 }
 0x29e   : > { %v6181_v15 = vpop.eup %6180  ;;  %v1220_v17 = vpop.f32.mrb[23].mxu1  ;;  %v7562_v20 = vpack.c.bf16 %v6179_v13, %v6171_v52  ;;  %v1332_v24 = vadd.f32 %v1331_v28, %v7360_v46  ;;  %6204 = vtanh.f32 %v1217_v14  ;;  %v7601_v13 = vld [vmem:[#allocation9 + $0x660] sm:$0xff] }
 0x29f   : > { %v1333_v18 = vpop.f32.mrb[55].mxu0  ;;  %v6183_v22 = vpop.eup %6182  ;;  %3218 = vmatpush1.bf16.msra.mxu1 %v5311_v60  ;;  %3444 = vmatpush1.bf16.msra.mxu0 %v5313_v1  ;;  %v7565_v29 = vpack.c.bf16 %v6181_v15, %v6173_v59  ;;  %v1221_v41 = vadd.f32 %v1220_v17, %v7363_v47  ;;  %6206 = vtanh.f32 %v1330_v0  ;;  %v7583_v59 = vld [vmem:[#allocation9 + $0x628] sm:$0xff] }
 0x2a0   : > { %v6185_v25 = vpop.eup %6184  ;;  %3219 = vmatprep.subr.bf16.mxu1 %v5320_v4  ;;  %3445 = vmatprep.subr.bf16.mxu0 %v5322_v10  ;;  %v7576_v52 = vpack.c.bf16 %v6183_v22, %v6175_v61  ;;  %v1334_v54 = vadd.f32 %v1333_v18, %v7367_v48  ;;  %6208 = vtanh.f32 %v1219_v16  ;;  %v5327_v61 = vcombine.low %v7547_v11, %v7549_v12  ;;  %v1224_v63 = vpop.f32.mrb[24].mxu1  ;;  %v7599_v12 = vld [vmem:[#allocation9 + $0x640] sm:$0xff]  ;;  %v7607_v15 = vld [vmem:[#allocation9 + $0x648] sm:$0xff] }
 0x2a1   : > { %v6187_v53 = vpop.eup %6186  ;;  %3156 = vmatprep.mubr.bf16.mxu1 %v7565_v29  ;;  %3382 = vmatprep.mubr.bf16.mxu0 %v7565_v29  ;;  %6210 = vtanh.f32 %v1332_v24  ;;  %v1337_v1 = vpop.f32.mrb[56].mxu0  ;;  %v5329_v4 = vcombine.low %v7555_v31, %v7557_v36  ;;  %v1225_v6 = vadd.f32 %v1224_v63, %v7356_v45  ;;  %v5338_v11 = vcombine.high %v7581_v57, %v7583_v59  ;;  %v7609_v16 = vld [vmem:[#allocation9 + $0x668] sm:$0xff] }
 0x2a2   : > { %v6189_v60 = vpop.eup %6188  ;;  %3157 = vmatmul.mubr.bf16.gmra.mrb[44].mxu1 %v7553_v27  ;;  %3383 = vmatmul.mubr.bf16.gmra.mrb[76].mxu0 %v7553_v27  ;;  %6212 = vtanh.f32 %v1221_v41  ;;  %v1338_v9 = vadd.f32 %v1337_v1, %v7360_v46  ;;  %v1339_v10 = vpop.f32.mrb[57].mxu0  ;;  %v5337_v24 = vcombine.low %v7581_v57, %v7583_v59  ;;  %v5344_v51 = vcombine.high %v7599_v12, %v7601_v13  ;;  %v7624_v57 = vld [vmem:[#allocation9 + $0x680] sm:$0xff]  ;;  %v7633_v1 = vld [vmem:[#allocation9 + $0x688] sm:$0xff] }
 0x2a3   : > { %v6191_v62 = vpop.eup %6190  ;;  %3220 = vmatpush1.bf16.msra.mxu1 %v5319_v3  ;;  %3446 = vmatpush1.bf16.msra.mxu0 %v5321_v19  ;;  %v1226_v3 = vpop.f32.mrb[25].mxu1  ;;  %6214 = vtanh.f32 %v1334_v54  ;;  %v1340_v26 = vadd.f32 %v1339_v10, %v7367_v48  ;;  %v7626_v59 = vld [vmem:[#allocation9 + $0x6a0] sm:$0xff] }
 0x2a4   : > { %v6193_v8 = vpop.eup %6192  ;;  %3221 = vmatprep.subr.bf16.mxu1 %v5328_v33  ;;  %3447 = vmatprep.subr.bf16.mxu0 %v5330_v43  ;;  %v1227_v0 = vadd.f32 %v1226_v3, %v7363_v47  ;;  %v1228_v28 = vpop.f32.mrb[26].mxu1  ;;  %6216 = vtanh.f32 %v1225_v6  ;;  %v5345_v3 = vcombine.low %v7607_v15, %v7609_v16  ;;  %v5351_v10 = vcombine.low %v7624_v57, %v7626_v59 }
 0x2a5   : > { %v6195_v14 = vpop.eup %6194  ;;  %v1341_v31 = vpop.f32.mrb[58].mxu0  ;;  %v7605_v36 = vpack.c.bf16 %v6193_v8, %v6185_v25  ;;  %v1229_v18 = vadd.f32 %v1228_v28, %v7356_v45  ;;  %6218 = vtanh.f32 %v1338_v9  ;;  %v7651_v28 = vld [vmem:[#allocation9 + $0x6c0] sm:$0xff] }
 0x2a6   : > { %v6197_v17 = vpop.eup %6196  ;;  %v1230_v19 = vpop.f32.mrb[27].mxu1  ;;  %v7614_v33 = vpack.c.bf16 %v6195_v14, %v6187_v53  ;;  %v1342_v25 = vadd.f32 %v1341_v31, %v7360_v46  ;;  %6220 = vtanh.f32 %v1227_v0  ;;  %v5346_v53 = vcombine.high %v7607_v15, %v7609_v16  ;;  %v7653_v31 = vld [vmem:[#allocation9 + $0x6e0] sm:$0xff] }
 0x2a7   : > { %v1343_v22 = vpop.f32.mrb[59].mxu0  ;;  %v6199_v41 = vpop.eup %6198  ;;  %3222 = vmatpush1.bf16.msra.mxu1 %v5327_v61  ;;  %3448 = vmatpush1.bf16.msra.mxu0 %v5329_v4  ;;  %v7617_v43 = vpack.c.bf16 %v6197_v17, %v6189_v60  ;;  %v1231_v54 = vadd.f32 %v1230_v19, %v7363_v47  ;;  %6222 = vtanh.f32 %v1340_v26  ;;  %v7635_v4 = vld [vmem:[#allocation9 + $0x6a8] sm:$0xff] }
 0x2a8   : > { %v6201_v38 = vpop.eup %6200  ;;  %3223 = vmatprep.subr.bf16.mxu1 %v5336_v7  ;;  %3449 = vmatprep.subr.bf16.mxu0 %v5338_v11  ;;  %v7628_v61 = vpack.c.bf16 %v6199_v41, %v6191_v62  ;;  %v1344_v63 = vadd.f32 %v1343_v22, %v7367_v48  ;;  %6224 = vtanh.f32 %v1229_v18  ;;  %v5343_v62 = vcombine.low %v7599_v12, %v7601_v13  ;;  %v1234_v6 = vpop.f32.mrb[28].mxu1  ;;  %v1737_v41 = vld [vmem:[#allocation9 + $0x6e8] sm:$0xff] }
 0x2a9   : > { %v6203_v60 = vpop.eup %6202  ;;  %3166 = vmatprep.mubr.bf16.mxu1 %v7617_v43  ;;  %3392 = vmatprep.mubr.bf16.mxu0 %v7617_v43  ;;  %6226 = vtanh.f32 %v1342_v25  ;;  %v1347_v9 = vpop.f32.mrb[60].mxu0  ;;  %v5352_v11 = vcombine.high %v7624_v57, %v7626_v59  ;;  %v1235_v12 = vadd.f32 %v1234_v6, %v7356_v45  ;;  %v5354_v26 = vcombine.high %v7633_v1, %v7635_v4 }
 0x2aa   : > { %v6205_v7 = vpop.eup %6204  ;;  %3167 = vmatmul.mubr.bf16.gmra.mrb[48].mxu1 %v7605_v36  ;;  %3393 = vmatmul.mubr.bf16.gmra.mrb[80].mxu0 %v7605_v36  ;;  %6228 = vtanh.f32 %v1231_v54  ;;  %v1348_v13 = vadd.f32 %v1347_v9, %v7360_v46  ;;  %v1349_v0 = vpop.f32.mrb[61].mxu0  ;;  %v5353_v57 = vcombine.low %v7633_v1, %v7635_v4  ;;  %v5360_v9 = vcombine.high %v7651_v28, %v7653_v31 }
 0x2ab   : > { %v6207_v8 = vpop.eup %6206  ;;  %3224 = vmatpush1.bf16.msra.mxu1 %v5335_v5  ;;  %3450 = vmatpush1.bf16.msra.mxu0 %v5337_v24  ;;  %v1236_v5 = vpop.f32.mrb[29].mxu1  ;;  %6230 = vtanh.f32 %v1344_v63  ;;  %v1350_v17 = vadd.f32 %v1349_v0, %v7367_v48  ;;  %v1733_v24 = vld [vmem:[#allocation9 + $0x6c8] sm:$0xff] }
 0x2ac   : > { %v6209_v14 = vpop.eup %6208  ;;  %3225 = vmatprep.subr.bf16.mxu1 %v5344_v51  ;;  %3451 = vmatprep.subr.bf16.mxu0 %v5346_v53  ;;  %v1237_v16 = vadd.f32 %v1236_v5, %v7363_v47  ;;  %v1238_v18 = vpop.f32.mrb[30].mxu1  ;;  %6232 = vtanh.f32 %v1235_v12  ;;  %v5362_v1 = vcombine.high %v1733_v24, %v1737_v41 }
 0x2ad   : > { %v6211_v15 = vpop.eup %6210  ;;  %v1351_v19 = vpop.f32.mrb[62].mxu0  ;;  %v7657_v22 = vpack.c.bf16 %v6209_v14, %v6201_v38  ;;  %v1239_v51 = vadd.f32 %v1238_v18, %v7356_v45  ;;  %6234 = vtanh.f32 %v1348_v13  ;;  %v1749_v18 = vld [vmem:[#allocation9 + $0x748] sm:$0xff] }
 0x2ae   : > { %v6213_v25 = vpop.eup %6212  ;;  %v1240_v54 = vpop.f32.mrb[31].mxu1  ;;  %v7662_v59 = vpack.c.bf16 %v6211_v15, %v6203_v60  ;;  %v1352_v38 = vadd.f32 %v1351_v19, %v7360_v46  ;;  %6236 = vtanh.f32 %v1237_v16  ;;  %v1740_v60 = vld [vmem:[#allocation9 + $0x700] sm:$0xff]  ;;  %v1753_v19 = vld [vmem:[#allocation9 + $0x768] sm:$0xff] }
 0x2af   : > { %v1353_v53 = vpop.f32.mrb[63].mxu0  ;;  %v6215_v63 = vpop.eup %6214  ;;  %3226 = vmatpush1.bf16.msra.mxu1 %v5343_v62  ;;  %3452 = vmatpush1.bf16.msra.mxu0 %v5345_v3  ;;  %v7665_v6 = vpack.c.bf16 %v6213_v25, %v6205_v7  ;;  %v1241_v45 = vadd.f32 %v1240_v54, %v7363_v47  ;;  %6238 = vtanh.f32 %v1350_v17  ;;  %v1744_v46 = vld [vmem:[#allocation9 + $0x720] sm:$0xff]  ;;  %v1741_v7 = vld [vmem:[#allocation9 + $0x708] sm:$0xff] }
 0x2b0   : > { %v6217_v14 = vpop.eup %6216  ;;  %3227 = vmatprep.subr.bf16.mxu1 %v5352_v11  ;;  %3453 = vmatprep.subr.bf16.mxu0 %v5354_v26  ;;  %v7670_v4 = vpack.c.bf16 %v6215_v63, %v6207_v8  ;;  %v1354_v62 = vadd.f32 %v1353_v53, %v7367_v48  ;;  %v1745_v3 = vld [vmem:[#allocation9 + $0x728] sm:$0xff]  ;;  %6240 = vtanh.f32 %v1239_v51  ;;  %v5359_v48 = vcombine.low %v7651_v28, %v7653_v31  ;;  %v1748_v26 = vld [vmem:[#allocation9 + $0x740] sm:$0xff] }
 0x2b1   : > { %v6219_v12 = vpop.eup %6218  ;;  %3176 = vmatprep.mubr.bf16.mxu1 %v7665_v6  ;;  %3402 = vmatprep.mubr.bf16.mxu0 %v7665_v6  ;;  %6242 = vtanh.f32 %v1352_v38  ;;  %v5361_v8 = vcombine.low %v1733_v24, %v1737_v41  ;;  %v5368_v5 = vcombine.high %v1740_v60, %v1744_v46  ;;  %v5370_v0 = vcombine.high %v1741_v7, %v1745_v3  ;;  %v1752_v17 = vld [vmem:[#allocation9 + $0x760] sm:$0xff] }
 0x2b2   : > { %v6221_v13 = vpop.eup %6220  ;;  %3177 = vmatmul.mubr.bf16.gmra.mrb[52].mxu1 %v7657_v22  ;;  %3403 = vmatmul.mubr.bf16.gmra.mrb[84].mxu0 %v7657_v22  ;;  %6244 = vtanh.f32 %v1241_v45  ;;  %v5367_v31 = vcombine.low %v1740_v60, %v1744_v46  ;;  %v5369_v24 = vcombine.low %v1741_v7, %v1745_v3  ;;  %v5376_v54 = vcombine.high %v1748_v26, %v1752_v17  ;;  %v1761_v45 = vld [vmem:[#allocation9 + $0x7a8] sm:$0xff] }
 0x2b3   : > { %v6223_v47 = vpop.eup %6222  ;;  %3228 = vmatpush1.bf16.msra.mxu1 %v5351_v10  ;;  %3454 = vmatpush1.bf16.msra.mxu0 %v5353_v57  ;;  %6246 = vtanh.f32 %v1354_v62  ;;  %v5378_v53 = vcombine.high %v1749_v18, %v1753_v19  ;;  %v1756_v57 = vld [vmem:[#allocation9 + $0x780] sm:$0xff]  ;;  %v5377_v62 = vcombine.low %v1749_v18, %v1753_v19 }
 0x2b4   : > { %v6225_v11 = vpop.eup %6224  ;;  %3229 = vmatprep.subr.bf16.mxu1 %v5360_v9  ;;  %3455 = vmatprep.subr.bf16.mxu0 %v5362_v1  ;;  %v1760_v9 = vld [vmem:[#allocation9 + $0x7a0] sm:$0xff] }
 0x2b5   : > { %v6227_v15 = vpop.eup %6226  ;;  %v7679_v16 = vpack.c.bf16 %v6225_v11, %v6217_v14  ;;  %v1757_v14 = vld [vmem:[#allocation9 + $0x788] sm:$0xff]  ;;  %v5384_v7 = vcombine.high %v1756_v57, %v1760_v9  ;;  %v1768_v11 = vld [vmem:[#allocation9 + $0x7e0] sm:$0xff] }
 0x2b6   : > { %v6229_v10 = vpop.eup %6228  ;;  %v7681_v25 = vpack.c.bf16 %v6227_v15, %v6219_v12  ;;  %v5375_v12 = vcombine.low %v1748_v26, %v1752_v17  ;;  %v5386_v3 = vcombine.high %v1757_v14, %v1761_v45  ;;  %v5383_v17 = vcombine.low %v1756_v57, %v1760_v9 }
 0x2b7   : > { %v6231_v51 = vpop.eup %6230  ;;  %3230 = vmatpush1.bf16.msra.mxu1 %v5359_v48  ;;  %3456 = vmatpush1.bf16.msra.mxu0 %v5361_v8  ;;  %v7683_v28 = vpack.c.bf16 %v6229_v10, %v6221_v13  ;;  %v1764_v48 = vld [vmem:[#allocation9 + $0x7c0] sm:$0xff]  ;;  %v5385_v18 = vcombine.low %v1757_v14, %v1761_v45  ;;  %v1526_v45 = vld [vmem:[#allocation9 + $0x50] sm:$0xff] }
 0x2b8   : > { %v6233_v41 = vpop.eup %6232  ;;  %3231 = vmatprep.subr.bf16.mxu1 %v5368_v5  ;;  %3457 = vmatprep.subr.bf16.mxu0 %v5370_v0  ;;  %v7685_v63 = vpack.c.bf16 %v6231_v51, %v6223_v47  ;;  %v1765_v5 = vld [vmem:[#allocation9 + $0x7c8] sm:$0xff]  ;;  %v5392_v51 = vcombine.high %v1764_v48, %v1768_v11  ;;  %v5391_v57 = vcombine.low %v1764_v48, %v1768_v11  ;;  %v1535_v11 = vld [vmem:[#allocation9 + $0x98] sm:$0xff] }
 0x2b9   : > { %v6235_v38 = vpop.eup %6234  ;;  %3186 = vmatprep.mubr.bf16.mxu1 %v7683_v28  ;;  %3412 = vmatprep.mubr.bf16.mxu0 %v7683_v28  ;;  %v1769_v0 = vld [vmem:[#allocation9 + $0x7e8] sm:$0xff] }
 0x2ba   : > { %v6237_v1 = vpop.eup %6236  ;;  %3187 = vmatmul.mubr.bf16.gmra.mrb[56].mxu1 %v7679_v16  ;;  %3413 = vmatmul.mubr.bf16.gmra.mrb[88].mxu0 %v7679_v16 }
 0x2bb   : > { %v6239_v60 = vpop.eup %6238  ;;  %3232 = vmatpush1.bf16.msra.mxu1 %v5367_v31  ;;  %3458 = vmatpush1.bf16.msra.mxu0 %v5369_v24  ;;  %v5394_v31 = vcombine.high %v1765_v5, %v1769_v0  ;;  %v1518_v24 = vld [vmem:[#allocation9 + $0x10] sm:$0xff] }
 0x2bc   : > { %v6241_v46 = vpop.eup %6240  ;;  %3233 = vmatprep.subr.bf16.mxu1 %v5376_v54  ;;  %3459 = vmatprep.subr.bf16.mxu0 %v5378_v53  ;;  %v1519_v54 = vld [vmem:[#allocation9 + $0x18] sm:$0xff] }
 0x2bd   : > { %v6243_v13 = vpop.eup %6242  ;;  %v7691_v47 = vpack.c.bf16 %v6241_v46, %v6233_v41  ;;  %v1522_v41 = vld [vmem:[#allocation9 + $0x30] sm:$0xff]  ;;  %v1523_v53 = vld [vmem:[#allocation9 + $0x38] sm:$0xff] }
 0x2be   : > { %v6245_v8 = vpop.eup %6244  ;;  %v7693_v15 = vpack.c.bf16 %v6243_v13, %v6235_v38  ;;  %v5393_v38 = vcombine.low %v1765_v5, %v1769_v0  ;;  %v5148_v9 = vcombine.high %v1518_v24, %v1522_v41  ;;  %v5150_v14 = vcombine.high %v1519_v54, %v1523_v53  ;;  %v1538_v13 = vld [vmem:[#allocation9 + $0xb0] sm:$0xff]  ;;  %v1539_v5 = vld [vmem:[#allocation9 + $0xb8] sm:$0xff] }
 0x2bf   : > { %v6247_v10 = vpop.eup %6246  ;;  %3234 = vmatpush1.bf16.msra.mxu1 %v5375_v12  ;;  %3460 = vmatpush1.bf16.msra.mxu0 %v5377_v62  ;;  %v7695_v26 = vpack.c.bf16 %v6245_v8, %v6237_v1  ;;  %v1530_v1 = vld [vmem:[#allocation9 + $0x70] sm:$0xff]  ;;  %v1527_v12 = vld [vmem:[#allocation9 + $0x58] sm:$0xff]  ;;  %v5149_v46 = vcombine.low %v1519_v54, %v1523_v53  ;;  %v5165_v54 = vcombine.low %v1535_v11, %v1539_v5 }
 0x2c0   : > { %3235 = vmatprep.subr.bf16.mxu1 %v5384_v7  ;;  %3461 = vmatprep.subr.bf16.mxu0 %v5386_v3  ;;  %v7697_v19 = vpack.c.bf16 %v6247_v10, %v6239_v60  ;;  %v5147_v60 = vcombine.low %v1518_v24, %v1522_v41  ;;  %v1531_v62 = vld [vmem:[#allocation9 + $0x78] sm:$0xff]  ;;  %v5156_v7 = vcombine.high %v1526_v45, %v1530_v1  ;;  %v1534_v3 = vld [vmem:[#allocation9 + $0x90] sm:$0xff] }
 0x2c1   : > { %3196 = vmatprep.mubr.bf16.mxu1 %v7695_v26  ;;  %3422 = vmatprep.mubr.bf16.mxu0 %v7695_v26  ;;  %v5158_v48 = vcombine.high %v1527_v12, %v1531_v62  ;;  %v5155_v8 = vcombine.low %v1526_v45, %v1530_v1  ;;  %v5164_v0 = vcombine.high %v1534_v3, %v1538_v13  ;;  %v1543_v24 = vld [vmem:[#allocation9 + $0xd8] sm:$0xff] }
 0x2c2   : > { %3197 = vmatmul.mubr.bf16.gmra.mrb[60].mxu1 %v7691_v47  ;;  %3423 = vmatmul.mubr.bf16.gmra.mrb[92].mxu0 %v7691_v47  ;;  %v5157_v10 = vcombine.low %v1527_v12, %v1531_v62  ;;  %v1547_v41 = vld [vmem:[#allocation9 + $0xf8] sm:$0xff] }
 0x2c3   : > { %3236 = vmatpush1.bf16.msra.mxu1 %v5383_v17  ;;  %3239 = vmatprep.mubr.bf16.mxu1 %v7414_v2  ;;  %v5166_v17 = vcombine.high %v1535_v11, %v1539_v5  ;;  %v1551_v45 = vld [vmem:[#allocation9 + $0x118] sm:$0xff]  ;;  %v5173_v12 = vcombine.low %v1543_v24, %v1547_v41  ;;  %v1566_v5 = vld [vmem:[#allocation9 + $0x190] sm:$0xff] }
 0x2c4   : > { %3462 = vmatpush1.bf16.msra.mxu0 %v5385_v18  ;;  %3465 = vmatprep.mubr.bf16.mxu0 %v7414_v2  ;;  %v1542_v18 = vld [vmem:[#allocation9 + $0xd0] sm:$0xff]  ;;  %v1555_v1 = vld [vmem:[#allocation9 + $0x138] sm:$0xff] }
 0x2c5   : > { %3237 = vmatprep.subr.bf16.mxu1 %v5392_v51  ;;  %3463 = vmatprep.subr.bf16.mxu0 %v5394_v31  ;;  %v1546_v51 = vld [vmem:[#allocation9 + $0xf0] sm:$0xff]  ;;  %v5163_v31 = vcombine.low %v1534_v3, %v1538_v13  ;;  %v5182_v62 = vcombine.high %v1551_v45, %v1555_v1  ;;  %v1559_v13 = vld [vmem:[#allocation9 + $0x158] sm:$0xff] }
 0x2c6   : > { %v5172_v53 = vcombine.high %v1542_v18, %v1546_v51 }
 0x2c7   : > { %3238 = vmatpush1.bf16.msra.mxu1 %v5391_v57  ;;  %v1550_v57 = vld [vmem:[#allocation9 + $0x110] sm:$0xff] }
 0x2c8   : > { %3464 = vmatpush1.bf16.msra.mxu0 %v5393_v38  ;;  %3546 = vmatprep.subr.bf16.mxu1 %v5148_v9  ;;  %v1554_v38 = vld [vmem:[#allocation9 + $0x130] sm:$0xff]  ;;  %v5174_v9 = vcombine.high %v1543_v24, %v1547_v41 }
 0x2c9   : > { %3772 = vmatprep.subr.bf16.mxu0 %v5150_v14  ;;  %v5171_v14 = vcombine.low %v1542_v18, %v1546_v51  ;;  %v5179_v3 = vcombine.low %v1550_v57, %v1554_v38  ;;  %v1567_v18 = vld [vmem:[#allocation9 + $0x198] sm:$0xff] }
 0x2ca   : > { %3240 = vmatmul.mubr.bf16.vlgmr.msra.gmra.mrb[32].mxu1 %v7400_v55  ;;  %v1571_v51 = vld [vmem:[#allocation9 + $0x1b8] sm:$0xff] }
 0x2cb   : > { %3466 = vmatmul.mubr.bf16.vlgmr.msra.gmra.mrb[64].mxu0 %v7400_v55  ;;  %3547 = vmatpush1.bf16.msra.mxu1 %v5147_v60  ;;  %v5180_v60 = vcombine.high %v1550_v57, %v1554_v38  ;;  %v5198_v41 = vcombine.high %v1567_v18, %v1571_v51  ;;  %v1575_v38 = vld [vmem:[#allocation9 + $0x1d8] sm:$0xff] }
 0x2cc   : > { %3249 = vmatprep.mubr.bf16.mxu1 %v7472_v56  ;;  %3475 = vmatprep.mubr.bf16.mxu0 %v7472_v56 }
 0x2cd   : > { %3773 = vmatpush1.bf16.msra.mxu0 %v5149_v46  ;;  %3548 = vmatprep.subr.bf16.mxu1 %v5156_v7  ;;  %v1558_v46 = vld [vmem:[#allocation9 + $0x150] sm:$0xff] }
 0x2ce   : > { %3774 = vmatprep.subr.bf16.mxu0 %v5158_v48  ;;  %v1562_v7 = vld [vmem:[#allocation9 + $0x170] sm:$0xff]  ;;  %v1563_v48 = vld [vmem:[#allocation9 + $0x178] sm:$0xff] }
 0x2cf   : > { %3549 = vmatpush1.bf16.msra.mxu1 %v5155_v8  ;;  %v5181_v8 = vcombine.low %v1551_v45, %v1555_v1  ;;  %v5188_v11 = vcombine.high %v1558_v46, %v1562_v7  ;;  %v5189_v24 = vcombine.low %v1559_v13, %v1563_v48  ;;  %v1582_v1 = vld [vmem:[#allocation9 + $0x210] sm:$0xff] }
 0x2d0   : > { %3550 = vmatprep.subr.bf16.mxu1 %v5164_v0  ;;  %v1570_v0 = vld [vmem:[#allocation9 + $0x1b0] sm:$0xff] }
 0x2d1   : > { %3775 = vmatpush1.bf16.msra.mxu0 %v5157_v10  ;;  %v5190_v10 = vcombine.high %v1559_v13, %v1563_v48  ;;  %v5195_v57 = vcombine.low %v1566_v5, %v1570_v0 }
 0x2d2   : > { %3250 = vmatmul.mubr.bf16.gmra.mrb[36].mxu1 %v7458_v30  ;;  %3776 = vmatprep.subr.bf16.mxu0 %v5166_v17  ;;  %v5187_v17 = vcombine.low %v1558_v46, %v1562_v7  ;;  %v1583_v46 = vld [vmem:[#allocation9 + $0x218] sm:$0xff] }
 0x2d3   : > { %3476 = vmatmul.mubr.bf16.gmra.mrb[68].mxu0 %v7458_v30  ;;  %3551 = vmatpush1.bf16.msra.mxu1 %v5163_v31  ;;  %v5196_v31 = vcombine.high %v1566_v5, %v1570_v0  ;;  %v1587_v7 = vld [vmem:[#allocation9 + $0x238] sm:$0xff] }
 0x2d4   : > { %3259 = vmatprep.mubr.bf16.mxu1 %v7524_v39  ;;  %3485 = vmatprep.mubr.bf16.mxu0 %v7524_v39  ;;  %v5214_v48 = vcombine.high %v1583_v46, %v1587_v7  ;;  %v1591_v0 = vld [vmem:[#allocation9 + $0x258] sm:$0xff] }
 0x2d5   : > { %3777 = vmatpush1.bf16.msra.mxu0 %v5165_v54  ;;  %3552 = vmatprep.subr.bf16.mxu1 %v5172_v53  ;;  %v1574_v54 = vld [vmem:[#allocation9 + $0x1d0] sm:$0xff] }
 0x2d6   : > { %3778 = vmatprep.subr.bf16.mxu0 %v5174_v9  ;;  %v1578_v53 = vld [vmem:[#allocation9 + $0x1f0] sm:$0xff]  ;;  %v1579_v9 = vld [vmem:[#allocation9 + $0x1f8] sm:$0xff] }
 0x2d7   : > { %3553 = vmatpush1.bf16.msra.mxu1 %v5171_v14  ;;  %v5197_v14 = vcombine.low %v1567_v18, %v1571_v51  ;;  %v5204_v45 = vcombine.high %v1574_v54, %v1578_v53  ;;  %v5205_v13 = vcombine.low %v1575_v38, %v1579_v9  ;;  %v1598_v51 = vld [vmem:[#allocation9 + $0x290] sm:$0xff] }
 0x2d8   : > { %3554 = vmatprep.subr.bf16.mxu1 %v5180_v60  ;;  %v1586_v60 = vld [vmem:[#allocation9 + $0x230] sm:$0xff] }
 0x2d9   : > { %3779 = vmatpush1.bf16.msra.mxu0 %v5173_v12  ;;  %v5206_v12 = vcombine.high %v1575_v38, %v1579_v9  ;;  %v5211_v5 = vcombine.low %v1582_v1, %v1586_v60 }
 0x2da   : > { %3260 = vmatmul.mubr.bf16.gmra.mrb[40].mxu1 %v7510_v23  ;;  %3780 = vmatprep.subr.bf16.mxu0 %v5182_v62  ;;  %v5203_v62 = vcombine.low %v1574_v54, %v1578_v53  ;;  %v1599_v54 = vld [vmem:[#allocation9 + $0x298] sm:$0xff] }
 0x2db   : > { %3486 = vmatmul.mubr.bf16.gmra.mrb[72].mxu0 %v7510_v23  ;;  %3555 = vmatpush1.bf16.msra.mxu1 %v5179_v3  ;;  %v5212_v3 = vcombine.high %v1582_v1, %v1586_v60  ;;  %v1603_v53 = vld [vmem:[#allocation9 + $0x2b8] sm:$0xff] }
 0x2dc   : > { %3269 = vmatprep.mubr.bf16.mxu1 %v7576_v52  ;;  %3495 = vmatprep.mubr.bf16.mxu0 %v7576_v52  ;;  %v5230_v9 = vcombine.high %v1599_v54, %v1603_v53  ;;  %v1607_v60 = vld [vmem:[#allocation9 + $0x2d8] sm:$0xff] }
 0x2dd   : > { %3781 = vmatpush1.bf16.msra.mxu0 %v5181_v8  ;;  %3556 = vmatprep.subr.bf16.mxu1 %v5188_v11  ;;  %v1590_v8 = vld [vmem:[#allocation9 + $0x250] sm:$0xff] }
 0x2de   : > { %3782 = vmatprep.subr.bf16.mxu0 %v5190_v10  ;;  %v1594_v11 = vld [vmem:[#allocation9 + $0x270] sm:$0xff]  ;;  %v1595_v10 = vld [vmem:[#allocation9 + $0x278] sm:$0xff] }
 0x2df   : > { %3557 = vmatpush1.bf16.msra.mxu1 %v5187_v17  ;;  %v5213_v17 = vcombine.low %v1583_v46, %v1587_v7  ;;  %v5220_v18 = vcombine.high %v1590_v8, %v1594_v11  ;;  %v5221_v38 = vcombine.low %v1591_v0, %v1595_v10  ;;  %v1614_v7 = vld [vmem:[#allocation9 + $0x310] sm:$0xff] }
 0x2e0   : > { %3558 = vmatprep.subr.bf16.mxu1 %v5196_v31  ;;  %v1602_v31 = vld [vmem:[#allocation9 + $0x2b0] sm:$0xff] }
 0x2e1   : > { %3783 = vmatpush1.bf16.msra.mxu0 %v5189_v24  ;;  %v5222_v24 = vcombine.high %v1591_v0, %v1595_v10  ;;  %v5227_v1 = vcombine.low %v1598_v51, %v1602_v31 }
 0x2e2   : > { %3270 = vmatmul.mubr.bf16.gmra.mrb[44].mxu1 %v7562_v20  ;;  %3784 = vmatprep.subr.bf16.mxu0 %v5198_v41  ;;  %v5219_v41 = vcombine.low %v1590_v8, %v1594_v11  ;;  %v1615_v8 = vld [vmem:[#allocation9 + $0x318] sm:$0xff] }
 0x2e3   : > { %3496 = vmatmul.mubr.bf16.gmra.mrb[76].mxu0 %v7562_v20  ;;  %3559 = vmatpush1.bf16.msra.mxu1 %v5195_v57  ;;  %v5228_v57 = vcombine.high %v1598_v51, %v1602_v31  ;;  %v1619_v11 = vld [vmem:[#allocation9 + $0x338] sm:$0xff] }
 0x2e4   : > { %3279 = vmatprep.mubr.bf16.mxu1 %v7628_v61  ;;  %3505 = vmatprep.mubr.bf16.mxu0 %v7628_v61  ;;  %v5246_v10 = vcombine.high %v1615_v8, %v1619_v11  ;;  %v1623_v31 = vld [vmem:[#allocation9 + $0x358] sm:$0xff] }
 0x2e5   : > { %3785 = vmatpush1.bf16.msra.mxu0 %v5197_v14  ;;  %3560 = vmatprep.subr.bf16.mxu1 %v5204_v45  ;;  %v1606_v14 = vld [vmem:[#allocation9 + $0x2d0] sm:$0xff] }
 0x2e6   : > { %3786 = vmatprep.subr.bf16.mxu0 %v5206_v12  ;;  %v1610_v45 = vld [vmem:[#allocation9 + $0x2f0] sm:$0xff]  ;;  %v1611_v12 = vld [vmem:[#allocation9 + $0x2f8] sm:$0xff] }
 0x2e7   : > { %3561 = vmatpush1.bf16.msra.mxu1 %v5203_v62  ;;  %v5229_v62 = vcombine.low %v1599_v54, %v1603_v53  ;;  %v5236_v46 = vcombine.high %v1606_v14, %v1610_v45  ;;  %v5237_v0 = vcombine.low %v1607_v60, %v1611_v12  ;;  %v1630_v53 = vld [vmem:[#allocation9 + $0x390] sm:$0xff] }
 0x2e8   : > { %3562 = vmatprep.subr.bf16.mxu1 %v5212_v3  ;;  %v1618_v3 = vld [vmem:[#allocation9 + $0x330] sm:$0xff] }
 0x2e9   : > { %3787 = vmatpush1.bf16.msra.mxu0 %v5205_v13  ;;  %v5238_v13 = vcombine.high %v1607_v60, %v1611_v12  ;;  %v5243_v51 = vcombine.low %v1614_v7, %v1618_v3 }
 0x2ea   : > { %3280 = vmatmul.mubr.bf16.gmra.mrb[48].mxu1 %v7614_v33  ;;  %3788 = vmatprep.subr.bf16.mxu0 %v5214_v48  ;;  %v5235_v48 = vcombine.low %v1606_v14, %v1610_v45  ;;  %v1631_v14 = vld [vmem:[#allocation9 + $0x398] sm:$0xff] }
 0x2eb   : > { %3506 = vmatmul.mubr.bf16.gmra.mrb[80].mxu0 %v7614_v33  ;;  %3563 = vmatpush1.bf16.msra.mxu1 %v5211_v5  ;;  %v5244_v5 = vcombine.high %v1614_v7, %v1618_v3  ;;  %v1635_v45 = vld [vmem:[#allocation9 + $0x3b8] sm:$0xff] }
 0x2ec   : > { %3289 = vmatprep.mubr.bf16.mxu1 %v7670_v4  ;;  %3515 = vmatprep.mubr.bf16.mxu0 %v7670_v4  ;;  %v5262_v12 = vcombine.high %v1631_v14, %v1635_v45  ;;  %v1639_v3 = vld [vmem:[#allocation9 + $0x3d8] sm:$0xff] }
 0x2ed   : > { %3789 = vmatpush1.bf16.msra.mxu0 %v5213_v17  ;;  %3564 = vmatprep.subr.bf16.mxu1 %v5220_v18  ;;  %v1622_v17 = vld [vmem:[#allocation9 + $0x350] sm:$0xff] }
 0x2ee   : > { %3790 = vmatprep.subr.bf16.mxu0 %v5222_v24  ;;  %v1626_v18 = vld [vmem:[#allocation9 + $0x370] sm:$0xff]  ;;  %v1627_v24 = vld [vmem:[#allocation9 + $0x378] sm:$0xff] }
 0x2ef   : > { %3565 = vmatpush1.bf16.msra.mxu1 %v5219_v41  ;;  %v5245_v41 = vcombine.low %v1615_v8, %v1619_v11  ;;  %v5252_v54 = vcombine.high %v1622_v17, %v1626_v18  ;;  %v5253_v60 = vcombine.low %v1623_v31, %v1627_v24  ;;  %v1646_v11 = vld [vmem:[#allocation9 + $0x410] sm:$0xff] }
 0x2f0   : > { %3566 = vmatprep.subr.bf16.mxu1 %v5228_v57  ;;  %v1634_v57 = vld [vmem:[#allocation9 + $0x3b0] sm:$0xff] }
 0x2f1   : > { %3791 = vmatpush1.bf16.msra.mxu0 %v5221_v38  ;;  %v5254_v38 = vcombine.high %v1623_v31, %v1627_v24  ;;  %v5259_v7 = vcombine.low %v1630_v53, %v1634_v57  ;;  %v1654_v24 = vld [vmem:[#allocation9 + $0x450] sm:$0xff] }
 0x2f2   : > { %3290 = vmatmul.mubr.bf16.gmra.mrb[52].mxu1 %v7662_v59  ;;  %3792 = vmatprep.subr.bf16.mxu0 %v5230_v9  ;;  %v5251_v9 = vcombine.low %v1622_v17, %v1626_v18  ;;  %v1647_v17 = vld [vmem:[#allocation9 + $0x418] sm:$0xff] }
 0x2f3   : > { %3516 = vmatmul.mubr.bf16.gmra.mrb[84].mxu0 %v7662_v59  ;;  %3567 = vmatpush1.bf16.msra.mxu1 %v5227_v1  ;;  %v5260_v1 = vcombine.high %v1630_v53, %v1634_v57  ;;  %v1651_v18 = vld [vmem:[#allocation9 + $0x438] sm:$0xff] }
 0x2f4   : > { %3299 = vmatprep.mubr.bf16.mxu1 %v7685_v63  ;;  %3525 = vmatprep.mubr.bf16.mxu0 %v7685_v63  ;;  %v1655_v57 = vld [vmem:[#allocation9 + $0x458] sm:$0xff] }
 0x2f5   : > { %3793 = vmatpush1.bf16.msra.mxu0 %v5229_v62  ;;  %3568 = vmatprep.subr.bf16.mxu1 %v5236_v46  ;;  %v1638_v62 = vld [vmem:[#allocation9 + $0x3d0] sm:$0xff] }
 0x2f6   : > { %3794 = vmatprep.subr.bf16.mxu0 %v5238_v13  ;;  %v1642_v46 = vld [vmem:[#allocation9 + $0x3f0] sm:$0xff]  ;;  %v1643_v13 = vld [vmem:[#allocation9 + $0x3f8] sm:$0xff] }
 0x2f7   : > { %3569 = vmatpush1.bf16.msra.mxu1 %v5235_v48  ;;  %v5261_v48 = vcombine.low %v1631_v14, %v1635_v45  ;;  %v5268_v8 = vcombine.high %v1638_v62, %v1642_v46  ;;  %v5269_v31 = vcombine.low %v1639_v3, %v1643_v13  ;;  %v7739_v14 = vcombine.low %v1647_v17, %v1651_v18  ;;  %v1662_v45 = vld [vmem:[#allocation9 + $0x490] sm:$0xff] }
 0x2f8   : > { %3570 = vmatprep.subr.bf16.mxu1 %v5244_v5  ;;  %v1650_v5 = vld [vmem:[#allocation9 + $0x430] sm:$0xff] }
 0x2f9   : > { %3795 = vmatpush1.bf16.msra.mxu0 %v5237_v0  ;;  %v5270_v0 = vcombine.high %v1639_v3, %v1643_v13  ;;  %v5275_v53 = vcombine.low %v1646_v11, %v1650_v5  ;;  %v1670_v3 = vld [vmem:[#allocation9 + $0x4d0] sm:$0xff] }
 0x2fa   : > { %3300 = vmatmul.mubr.bf16.gmra.mrb[56].mxu1 %v7681_v25  ;;  %3796 = vmatprep.subr.bf16.mxu0 %v5246_v10  ;;  %v5267_v10 = vcombine.low %v1638_v62, %v1642_v46  ;;  %v1667_v62 = vld [vmem:[#allocation9 + $0x4b8] sm:$0xff]  ;;  %v1674_v13 = vld [vmem:[#allocation9 + $0x4f0] sm:$0xff] }
 0x2fb   : > { %3526 = vmatmul.mubr.bf16.gmra.mrb[88].mxu0 %v7681_v25  ;;  %3571 = vmatpush1.bf16.msra.mxu1 %v5243_v51  ;;  %v5276_v51 = vcombine.high %v1646_v11, %v1650_v5  ;;  %v1671_v11 = vld [vmem:[#allocation9 + $0x4d8] sm:$0xff] }
 0x2fc   : > { %3309 = vmatprep.mubr.bf16.mxu1 %v7697_v19  ;;  %3535 = vmatprep.mubr.bf16.mxu0 %v7697_v19  ;;  %v1675_v5 = vld [vmem:[#allocation9 + $0x4f8] sm:$0xff] }
 0x2fd   : > { %3797 = vmatpush1.bf16.msra.mxu0 %v5245_v41  ;;  %3572 = vmatprep.subr.bf16.mxu1 %v5252_v54  ;;  %v1658_v41 = vld [vmem:[#allocation9 + $0x470] sm:$0xff]  ;;  %v7737_v54 = vcombine.high %v1647_v17, %v1651_v18  ;;  %v7759_v17 = vcombine.high %v1671_v11, %v1675_v5  ;;  %v5299_v18 = vcombine.low %v1670_v3, %v1674_v13 }
 0x2fe   : > { %3798 = vmatprep.subr.bf16.mxu0 %v5254_v38  ;;  %v1659_v38 = vld [vmem:[#allocation9 + $0x478] sm:$0xff] }
 0x2ff   : > { %3573 = vmatpush1.bf16.msra.mxu1 %v5251_v9  ;;  %v5284_v9 = vcombine.high %v1654_v24, %v1658_v41 }
 0x300   : > { %3574 = vmatprep.subr.bf16.mxu1 %v5260_v1  ;;  %v7743_v1 = vcombine.high %v1655_v57, %v1659_v38 }
 0x301   : > { %3799 = vmatpush1.bf16.msra.mxu0 %v5253_v60  ;;  %v5283_v60 = vcombine.low %v1654_v24, %v1658_v41  ;;  %v7765_v41 = vcombine.low %v1671_v11, %v1675_v5  ;;  %v1702_v5 = vld [vmem:[#allocation9 + $0x5d0] sm:$0xff] }
 0x302   : > { %3310 = vmatmul.mubr.bf16.gmra.mrb[60].mxu1 %v7693_v15  ;;  %3800 = vmatprep.subr.bf16.mxu0 %v5262_v12  ;;  %v1663_v12 = vld [vmem:[#allocation9 + $0x498] sm:$0xff] }
 0x303   : > { %3536 = vmatmul.mubr.bf16.gmra.mrb[92].mxu0 %v7693_v15  ;;  %3575 = vmatpush1.bf16.msra.mxu1 %v5259_v7  ;;  %v7749_v7 = vcombine.low %v1655_v57, %v1659_v38  ;;  %v1690_v57 = vld [vmem:[#allocation9 + $0x570] sm:$0xff] }
 0x304   : > { %3578 = vmatprep.mubr.bf16.mxu1 %v7403_v58  ;;  %3804 = vmatprep.mubr.bf16.mxu0 %v7403_v58  ;;  %v1666_v58 = vld [vmem:[#allocation9 + $0x4b0] sm:$0xff] }
 0x305   : > { %3801 = vmatpush1.bf16.msra.mxu0 %v5261_v48  ;;  %3576 = vmatprep.subr.bf16.mxu1 %v5268_v8  ;;  %v5292_v46 = vcombine.high %v1662_v45, %v1666_v58  ;;  %v7752_v48 = vcombine.high %v1663_v12, %v1667_v62  ;;  %v5291_v8 = vcombine.low %v1662_v45, %v1666_v58  ;;  %v1687_v45 = vld [vmem:[#allocation9 + $0x558] sm:$0xff] }
 0x306   : > { %3802 = vmatprep.subr.bf16.mxu0 %v5270_v0  ;;  %v7755_v0 = vcombine.low %v1663_v12, %v1667_v62  ;;  %v1691_v58 = vld [vmem:[#allocation9 + $0x578] sm:$0xff]  ;;  %v1698_v12 = vld [vmem:[#allocation9 + $0x5b0] sm:$0xff] }
 0x307   : > { %3577 = vmatpush1.bf16.msra.mxu1 %v5267_v10  ;;  %v1682_v10 = vld [vmem:[#allocation9 + $0x530] sm:$0xff]  ;;  %v7775_v62 = vcombine.high %v1687_v45, %v1691_v58  ;;  %v7781_v11 = vcombine.low %v1687_v45, %v1691_v58  ;;  %v1715_v45 = vld [vmem:[#allocation9 + $0x638] sm:$0xff] }
 0x308   : > { %3659 = vmatprep.subr.bf16.mxu1 %v5276_v51  ;;  %v1679_v51 = vld [vmem:[#allocation9 + $0x518] sm:$0xff] }
 0x309   : > { %3803 = vmatpush1.bf16.msra.mxu0 %v5269_v31  ;;  %v1683_v31 = vld [vmem:[#allocation9 + $0x538] sm:$0xff] }
 0x30a   : > { %3579 = vmatmul.mubr.bf16.vlgmr.msra.gmra.mrb[64].mxu1 %v7393_v50  ;;  %3885 = vmatprep.subr.bf16.mxu0 %v7737_v54  ;;  %v7768_v38 = vcombine.high %v1679_v51, %v1683_v31 }
 0x30b   : > { %3660 = vmatpush1.bf16.msra.mxu1 %v5275_v53  ;;  %3588 = vmatprep.mubr.bf16.mxu1 %v7461_v49  ;;  %v1686_v53 = vld [vmem:[#allocation9 + $0x550] sm:$0xff] }
 0x30c   : > { %3805 = vmatmul.mubr.bf16.vlgmr.msra.gmra.mrb[96].mxu0 %v7393_v50  ;;  %3661 = vmatprep.subr.bf16.mxu1 %v5284_v9  ;;  %v5300_v50 = vcombine.high %v1670_v3, %v1674_v13  ;;  %v1695_v3 = vld [vmem:[#allocation9 + $0x598] sm:$0xff] }
 0x30d   : > { %3814 = vmatprep.mubr.bf16.mxu0 %v7461_v49  ;;  %3886 = vmatpush1.bf16.msra.mxu0 %v7739_v14  ;;  %v1678_v49 = vld [vmem:[#allocation9 + $0x510] sm:$0xff]  ;;  %v1699_v13 = vld [vmem:[#allocation9 + $0x5b8] sm:$0xff] }
 0x30e   : > { %3887 = vmatprep.subr.bf16.mxu0 %v7743_v1  ;;  %v5308_v24 = vcombine.high %v1678_v49, %v1682_v10  ;;  %v5307_v9 = vcombine.low %v1678_v49, %v1682_v10  ;;  %v7784_v49 = vcombine.high %v1695_v3, %v1699_v13 }
 0x30f   : > { %3662 = vmatpush1.bf16.msra.mxu1 %v5283_v60  ;;  %v7771_v60 = vcombine.low %v1679_v51, %v1683_v31  ;;  %v1707_v51 = vld [vmem:[#allocation9 + $0x5f8] sm:$0xff]  ;;  %v7787_v31 = vcombine.low %v1695_v3, %v1699_v13 }
 0x310   : > { %3663 = vmatprep.subr.bf16.mxu1 %v5292_v46  ;;  %v5315_v46 = vcombine.low %v1686_v53, %v1690_v57  ;;  %v1719_v13 = vld [vmem:[#allocation9 + $0x658] sm:$0xff] }
 0x311   : > { %3888 = vmatpush1.bf16.msra.mxu0 %v7749_v7 }
 0x312   : > { %3589 = vmatmul.mubr.bf16.gmra.mrb[68].mxu1 %v7449_v21  ;;  %3889 = vmatprep.subr.bf16.mxu0 %v7752_v48 }
 0x313   : > { %3664 = vmatpush1.bf16.msra.mxu1 %v5291_v8  ;;  %3598 = vmatprep.mubr.bf16.mxu1 %v7513_v32 }
 0x314   : > { %3815 = vmatmul.mubr.bf16.gmra.mrb[100].mxu0 %v7449_v21  ;;  %3665 = vmatprep.subr.bf16.mxu1 %v5300_v50  ;;  %v5316_v21 = vcombine.high %v1686_v53, %v1690_v57  ;;  %v1706_v50 = vld [vmem:[#allocation9 + $0x5f0] sm:$0xff] }
 0x315   : > { %3824 = vmatprep.mubr.bf16.mxu0 %v7513_v32  ;;  %3890 = vmatpush1.bf16.msra.mxu0 %v7755_v0  ;;  %v1694_v32 = vld [vmem:[#allocation9 + $0x590] sm:$0xff]  ;;  %v5331_v57 = vcombine.low %v1702_v5, %v1706_v50 }
 0x316   : > { %3891 = vmatprep.subr.bf16.mxu0 %v7759_v17  ;;  %v5324_v8 = vcombine.high %v1694_v32, %v1698_v12  ;;  %v5323_v10 = vcombine.low %v1694_v32, %v1698_v12  ;;  %v1718_v32 = vld [vmem:[#allocation9 + $0x650] sm:$0xff] }
 0x317   : > { %3666 = vmatpush1.bf16.msra.mxu1 %v5299_v18  ;;  %v1703_v18 = vld [vmem:[#allocation9 + $0x5d8] sm:$0xff]  ;;  %v1722_v12 = vld [vmem:[#allocation9 + $0x670] sm:$0xff] }
 0x318   : > { %3667 = vmatprep.subr.bf16.mxu1 %v5308_v24  ;;  %v1714_v24 = vld [vmem:[#allocation9 + $0x630] sm:$0xff]  ;;  %v7791_v53 = vcombine.high %v1703_v18, %v1707_v51 }
 0x319   : > { %3892 = vmatpush1.bf16.msra.mxu0 %v7765_v41 }
 0x31a   : > { %3599 = vmatmul.mubr.bf16.gmra.mrb[72].mxu1 %v7501_v40  ;;  %3893 = vmatprep.subr.bf16.mxu0 %v7768_v38 }
 0x31b   : > { %3668 = vmatpush1.bf16.msra.mxu1 %v5307_v9  ;;  %3608 = vmatprep.mubr.bf16.mxu1 %v7565_v29  ;;  %v1711_v9 = vld [vmem:[#allocation9 + $0x618] sm:$0xff] }
 0x31c   : > { %3825 = vmatmul.mubr.bf16.gmra.mrb[104].mxu0 %v7501_v40  ;;  %3669 = vmatprep.subr.bf16.mxu1 %v5316_v21  ;;  %v5332_v40 = vcombine.high %v1702_v5, %v1706_v50  ;;  %v7797_v21 = vcombine.low %v1703_v18, %v1707_v51  ;;  %v7803_v5 = vcombine.low %v1711_v9, %v1715_v45  ;;  %v1730_v50 = vld [vmem:[#allocation9 + $0x6b0] sm:$0xff]  ;;  %v1727_v51 = vld [vmem:[#allocation9 + $0x698] sm:$0xff] }
 0x31d   : > { %3834 = vmatprep.mubr.bf16.mxu0 %v7565_v29  ;;  %3894 = vmatpush1.bf16.msra.mxu0 %v7771_v60  ;;  %v1710_v29 = vld [vmem:[#allocation9 + $0x610] sm:$0xff]  ;;  %v5347_v18 = vcombine.low %v1718_v32, %v1722_v12 }
 0x31e   : > { %3895 = vmatprep.subr.bf16.mxu0 %v7775_v62  ;;  %v5340_v58 = vcombine.high %v1710_v29, %v1714_v24  ;;  %v5339_v3 = vcombine.low %v1710_v29, %v1714_v24 }
 0x31f   : > { %3670 = vmatpush1.bf16.msra.mxu1 %v5315_v46  ;;  %v7800_v46 = vcombine.high %v1711_v9, %v1715_v45  ;;  %v1738_v9 = vld [vmem:[#allocation9 + $0x6f0] sm:$0xff] }
 0x320   : > { %3671 = vmatprep.subr.bf16.mxu1 %v5324_v8  ;;  %v1723_v8 = vld [vmem:[#allocation9 + $0x678] sm:$0xff] }
 0x321   : > { %3896 = vmatpush1.bf16.msra.mxu0 %v7781_v11  ;;  %v7813_v24 = vcombine.low %v1719_v13, %v1723_v8 }
 0x322   : > { %3609 = vmatmul.mubr.bf16.gmra.mrb[76].mxu1 %v7553_v27  ;;  %3897 = vmatprep.subr.bf16.mxu0 %v7784_v49 }
 0x323   : > { %3672 = vmatpush1.bf16.msra.mxu1 %v5323_v10  ;;  %3618 = vmatprep.mubr.bf16.mxu1 %v7617_v43  ;;  %v7807_v10 = vcombine.high %v1719_v13, %v1723_v8 }
 0x324   : > { %3835 = vmatmul.mubr.bf16.gmra.mrb[108].mxu0 %v7553_v27  ;;  %3673 = vmatprep.subr.bf16.mxu1 %v5332_v40  ;;  %v5348_v27 = vcombine.high %v1718_v32, %v1722_v12  ;;  %v1731_v40 = vld [vmem:[#allocation9 + $0x6b8] sm:$0xff] }
 0x325   : > { %3844 = vmatprep.mubr.bf16.mxu0 %v7617_v43  ;;  %3898 = vmatpush1.bf16.msra.mxu0 %v7787_v31  ;;  %v1726_v43 = vld [vmem:[#allocation9 + $0x690] sm:$0xff]  ;;  %v7816_v45 = vcombine.high %v1727_v51, %v1731_v40  ;;  %v1735_v32 = vld [vmem:[#allocation9 + $0x6d8] sm:$0xff] }
 0x326   : > { %3899 = vmatprep.subr.bf16.mxu0 %v7791_v53  ;;  %v5356_v29 = vcombine.high %v1726_v43, %v1730_v50  ;;  %v1739_v12 = vld [vmem:[#allocation9 + $0x6f8] sm:$0xff] }
 0x327   : > { %3674 = vmatpush1.bf16.msra.mxu1 %v5331_v57  ;;  %v1734_v57 = vld [vmem:[#allocation9 + $0x6d0] sm:$0xff]  ;;  %v7823_v13 = vcombine.high %v1735_v32, %v1739_v12 }
 0x328   : > { %3675 = vmatprep.subr.bf16.mxu1 %v5340_v58  ;;  %v5355_v58 = vcombine.low %v1726_v43, %v1730_v50  ;;  %v5363_v8 = vcombine.low %v1734_v57, %v1738_v9  ;;  %v1743_v43 = vld [vmem:[#allocation9 + $0x718] sm:$0xff] }
 0x329   : > { %3900 = vmatpush1.bf16.msra.mxu0 %v7797_v21  ;;  %v1747_v50 = vld [vmem:[#allocation9 + $0x738] sm:$0xff] }
 0x32a   : > { %3619 = vmatmul.mubr.bf16.gmra.mrb[80].mxu1 %v7605_v36  ;;  %3901 = vmatprep.subr.bf16.mxu0 %v7800_v46 }
 0x32b   : > { %3676 = vmatpush1.bf16.msra.mxu1 %v5339_v3  ;;  %3628 = vmatprep.mubr.bf16.mxu1 %v7665_v6  ;;  %v7819_v3 = vcombine.low %v1727_v51, %v1731_v40  ;;  %v7829_v51 = vcombine.low %v1735_v32, %v1739_v12  ;;  %v1750_v40 = vld [vmem:[#allocation9 + $0x750] sm:$0xff] }
 0x32c   : > { %3845 = vmatmul.mubr.bf16.gmra.mrb[112].mxu0 %v7605_v36  ;;  %3677 = vmatprep.subr.bf16.mxu1 %v5348_v27  ;;  %v5364_v36 = vcombine.high %v1734_v57, %v1738_v9  ;;  %v1746_v27 = vld [vmem:[#allocation9 + $0x730] sm:$0xff]  ;;  %v1751_v9 = vld [vmem:[#allocation9 + $0x758] sm:$0xff] }
 0x32d   : > { %3854 = vmatprep.mubr.bf16.mxu0 %v7665_v6  ;;  %3902 = vmatpush1.bf16.msra.mxu0 %v7803_v5  ;;  %v1742_v6 = vld [vmem:[#allocation9 + $0x710] sm:$0xff]  ;;  %v7839_v32 = vcombine.high %v1751_v9, %v1755_v44 }
 0x32e   : > { %3903 = vmatprep.subr.bf16.mxu0 %v7807_v10  ;;  %v5371_v57 = vcombine.low %v1742_v6, %v1746_v27 }
 0x32f   : > { %3678 = vmatpush1.bf16.msra.mxu1 %v5347_v18  ;;  %v5372_v18 = vcombine.high %v1742_v6, %v1746_v27  ;;  %v1759_v6 = vld [vmem:[#allocation9 + $0x798] sm:$0xff] }
 0x330   : > { %3679 = vmatprep.subr.bf16.mxu1 %v5356_v29  ;;  %v1754_v29 = vld [vmem:[#allocation9 + $0x770] sm:$0xff]  ;;  %v1763_v27 = vld [vmem:[#allocation9 + $0x7b8] sm:$0xff] }
 0x331   : > { %3904 = vmatpush1.bf16.msra.mxu0 %v7813_v24  ;;  %v5379_v12 = vcombine.low %v1750_v40, %v1754_v29 }
 0x332   : > { %3629 = vmatmul.mubr.bf16.gmra.mrb[84].mxu1 %v7657_v22  ;;  %3905 = vmatprep.subr.bf16.mxu0 %v7816_v45 }
 0x333   : > { %3680 = vmatpush1.bf16.msra.mxu1 %v5355_v58  ;;  %3638 = vmatprep.mubr.bf16.mxu1 %v7683_v28  ;;  %v7832_v58 = vcombine.high %v1743_v43, %v1747_v50 }
 0x334   : > { %3855 = vmatmul.mubr.bf16.gmra.mrb[116].mxu0 %v7657_v22  ;;  %3681 = vmatprep.subr.bf16.mxu1 %v5364_v36  ;;  %v5380_v22 = vcombine.high %v1750_v40, %v1754_v29  ;;  %v7835_v36 = vcombine.low %v1743_v43, %v1747_v50  ;;  %v7845_v43 = vcombine.low %v1751_v9, %v1755_v44  ;;  %v1766_v50 = vld [vmem:[#allocation9 + $0x7d0] sm:$0xff]  ;;  %v1767_v29 = vld [vmem:[#allocation9 + $0x7d8] sm:$0xff] }
 0x335   : > { %3864 = vmatprep.mubr.bf16.mxu0 %v7683_v28  ;;  %3906 = vmatpush1.bf16.msra.mxu0 %v7819_v3  ;;  %v1758_v28 = vld [vmem:[#allocation9 + $0x790] sm:$0xff]  ;;  %v7855_v44 = vcombine.high %v1767_v29, %v1771_v37 }
 0x336   : > { %3907 = vmatprep.subr.bf16.mxu0 %v7823_v13  ;;  %v5387_v40 = vcombine.low %v1758_v28, %v1762_v42 }
 0x337   : > { %3682 = vmatpush1.bf16.msra.mxu1 %v5363_v8  ;;  %v5388_v8 = vcombine.high %v1758_v28, %v1762_v42  ;;  %v5397_v42 = vcombine.low %v1767_v29, %v1771_v37  ;;  %v7926_v37 = vld [vmem:[%s8556_s6] sm:$0xff] }
 0x338   : > { %3683 = vmatprep.subr.bf16.mxu1 %v5372_v18  ;;  %v1770_v18 = vld [vmem:[#allocation9 + $0x7f0] sm:$0xff] }
 0x339   : > { %3908 = vmatpush1.bf16.msra.mxu0 %v7829_v51 }
 0x33a   : > { %3639 = vmatmul.mubr.bf16.gmra.mrb[88].mxu1 %v7679_v16  ;;  %3909 = vmatprep.subr.bf16.mxu0 %v7832_v58 }
 0x33b   : > { %3684 = vmatpush1.bf16.msra.mxu1 %v5371_v57  ;;  %3648 = vmatprep.mubr.bf16.mxu1 %v7695_v26  ;;  %v7848_v57 = vcombine.high %v1759_v6, %v1763_v27 }
 0x33c   : > { %3865 = vmatmul.mubr.bf16.gmra.mrb[120].mxu0 %v7679_v16  ;;  %3685 = vmatprep.subr.bf16.mxu1 %v5380_v22  ;;  %v5396_v16 = vcombine.high %v1766_v50, %v1770_v18  ;;  %v7851_v22 = vcombine.low %v1759_v6, %v1763_v27 }
 0x33d   : > { %3874 = vmatprep.mubr.bf16.mxu0 %v7695_v26  ;;  %3910 = vmatpush1.bf16.msra.mxu0 %v7835_v36  ;;  %v5395_v26 = vcombine.low %v1766_v50, %v1770_v18 }
 0x33e   : > { %3911 = vmatprep.subr.bf16.mxu0 %v7839_v32 }
 0x33f   : > { %3686 = vmatpush1.bf16.msra.mxu1 %v5379_v12 }
 0x340   : > { %3687 = vmatprep.subr.bf16.mxu1 %v5388_v8 }
 0x341   : > { %3912 = vmatpush1.bf16.msra.mxu0 %v7845_v43 }
 0x342   : > { %3649 = vmatmul.mubr.bf16.gmra.mrb[92].mxu1 %v7691_v47  ;;  %3913 = vmatprep.subr.bf16.mxu0 %v7848_v57 }
 0x343   : > { %3688 = vmatpush1.bf16.msra.mxu1 %v5387_v40  ;;  %3691 = vmatprep.mubr.bf16.mxu1 %v7414_v2 }
 0x344   : > { %3875 = vmatmul.mubr.bf16.gmra.mrb[124].mxu0 %v7691_v47  ;;  %3689 = vmatprep.subr.bf16.mxu1 %v5396_v16 }
 0x345   : > { %3914 = vmatpush1.bf16.msra.mxu0 %v7851_v22  ;;  %3917 = vmatprep.mubr.bf16.mxu0 %v7414_v2  ;;  %v8587_v2 = vsub.s32 2, %v7279_v34 }
 0x346   : > { %3915 = vmatprep.subr.bf16.mxu0 %v7855_v44 }
 0x347   : > { %3690 = vmatpush1.bf16.msra.mxu1 %v5395_v26 }
 0x348   : > { %5536 = vmatprep.subr.bf16.mxu1 %v7737_v54 }
 0x349   : > { %3916 = vmatpush1.bf16.msra.mxu0 %v5397_v42 }
 0x34a   : > { %3692 = vmatmul.mubr.bf16.vlgmr.msra.gmra.mrb[64].mxu1 %v7400_v55 }
 0x34b   : > { %5552 = vmatpush1.bf16.msra.mxu1 %v7739_v14  ;;  %3701 = vmatprep.mubr.bf16.mxu1 %v7472_v56 }
 0x34c   : > { %3918 = vmatmul.mubr.bf16.vlgmr.msra.gmra.mrb[96].mxu0 %v7400_v55  ;;  %5537 = vmatprep.subr.bf16.mxu1 %v7743_v1  ;;  %v7930_v55 = vrot.slane %v7926_v37, %v7282_v35 }
 0x34d   : > { %3927 = vmatprep.mubr.bf16.mxu0 %v7472_v56  ;;  %v8588_v56 = vld [vmem:[#allocation18_spill] sm:$0xff] }
 0x34f   : > { %5553 = vmatpush1.bf16.msra.mxu1 %v7749_v7 }
 0x350   : > { %5538 = vmatprep.subr.bf16.mxu1 %v7752_v48 }
 0x352   : > { %3702 = vmatmul.mubr.bf16.gmra.mrb[68].mxu1 %v7458_v30 }
 0x353   : > { %5554 = vmatpush1.bf16.msra.mxu1 %v7755_v0  ;;  %3711 = vmatprep.mubr.bf16.mxu1 %v7524_v39 }
 0x354   : > { %3928 = vmatmul.mubr.bf16.gmra.mrb[100].mxu0 %v7458_v30  ;;  %5539 = vmatprep.subr.bf16.mxu1 %v7759_v17  ;;  %v7935_v30 = vrot.slane %v7926_v37, %v8587_v2 }
 0x355   : > { %3937 = vmatprep.mubr.bf16.mxu0 %v7524_v39  ;;  %v8589_v39 = vsub.s32 3, %v7279_v34 }
 0x357   : > { %5555 = vmatpush1.bf16.msra.mxu1 %v7765_v41 }
 0x358   : > { %5540 = vmatprep.subr.bf16.mxu1 %v7768_v38 }
 0x35a   : > { %3712 = vmatmul.mubr.bf16.gmra.mrb[72].mxu1 %v7510_v23 }
 0x35b   : > { %5556 = vmatpush1.bf16.msra.mxu1 %v7771_v60  ;;  %3721 = vmatprep.mubr.bf16.mxu1 %v7576_v52 }
 0x35c   : > { %3938 = vmatmul.mubr.bf16.gmra.mrb[104].mxu0 %v7510_v23  ;;  %5541 = vmatprep.subr.bf16.mxu1 %v7775_v62  ;;  %v7939_v23 = vrot.slane %v7926_v37, %v8588_v56 }
 0x35d   : > { %3947 = vmatprep.mubr.bf16.mxu0 %v7576_v52 }
 0x35f   : > { %5557 = vmatpush1.bf16.msra.mxu1 %v7781_v11 }
 0x360   : > { %5542 = vmatprep.subr.bf16.mxu1 %v7784_v49 }
 0x362   : > { %3722 = vmatmul.mubr.bf16.gmra.mrb[76].mxu1 %v7562_v20 }
 0x363   : > { %5558 = vmatpush1.bf16.msra.mxu1 %v7787_v31  ;;  %3731 = vmatprep.mubr.bf16.mxu1 %v7628_v61 }
 0x364   : > { %3948 = vmatmul.mubr.bf16.gmra.mrb[108].mxu0 %v7562_v20  ;;  %5543 = vmatprep.subr.bf16.mxu1 %v7791_v53  ;;  %v7944_v20 = vrot.slane %v7926_v37, %v8589_v39 }
 0x365   : > { %3957 = vmatprep.mubr.bf16.mxu0 %v7628_v61 }
 0x367   : > { %5559 = vmatpush1.bf16.msra.mxu1 %v7797_v21 }
 0x368   : > { %5544 = vmatprep.subr.bf16.mxu1 %v7800_v46 }
 0x36a   : > { %3732 = vmatmul.mubr.bf16.gmra.mrb[80].mxu1 %v7614_v33 }
 0x36b   : > { %5560 = vmatpush1.bf16.msra.mxu1 %v7803_v5  ;;  %3741 = vmatprep.mubr.bf16.mxu1 %v7670_v4 }
 0x36c   : > { %3958 = vmatmul.mubr.bf16.gmra.mrb[112].mxu0 %v7614_v33  ;;  %5545 = vmatprep.subr.bf16.mxu1 %v7807_v10 }
 0x36d   : > { %3967 = vmatprep.mubr.bf16.mxu0 %v7670_v4 }
 0x36f   : > { %5561 = vmatpush1.bf16.msra.mxu1 %v7813_v24 }
 0x370   : > { %5546 = vmatprep.subr.bf16.mxu1 %v7816_v45 }
 0x372   : > { %3742 = vmatmul.mubr.bf16.gmra.mrb[84].mxu1 %v7662_v59 }
 0x373   : > { %5562 = vmatpush1.bf16.msra.mxu1 %v7819_v3  ;;  %3751 = vmatprep.mubr.bf16.mxu1 %v7685_v63 }
 0x374   : > { %3968 = vmatmul.mubr.bf16.gmra.mrb[116].mxu0 %v7662_v59  ;;  %5547 = vmatprep.subr.bf16.mxu1 %v7823_v13 }
 0x377   : > { %5563 = vmatpush1.bf16.msra.mxu1 %v7829_v51 }
 0x378   : > { %5548 = vmatprep.subr.bf16.mxu1 %v7832_v58 }
 0x37a   : > { %3752 = vmatmul.mubr.bf16.gmra.mrb[88].mxu1 %v7681_v25 }
 0x37b   : > { %5564 = vmatpush1.bf16.msra.mxu1 %v7835_v36  ;;  %3761 = vmatprep.mubr.bf16.mxu1 %v7697_v19 }
 0x37c   : > { %5549 = vmatprep.subr.bf16.mxu1 %v7839_v32 }
 0x37f   : > { %5565 = vmatpush1.bf16.msra.mxu1 %v7845_v43 }
 0x380   : > { %5550 = vmatprep.subr.bf16.mxu1 %v7848_v57 }
 0x382   : > { %3762 = vmatmul.mubr.bf16.gmra.mrb[92].mxu1 %v7693_v15 }
 0x383   : > { %5566 = vmatpush1.bf16.msra.mxu1 %v7851_v22  ;;  %3977 = vmatprep.mubr.bf16.mxu1 %v7685_v63 }
 0x384   : > { %5551 = vmatprep.subr.bf16.mxu1 %v7855_v44 }
 0x387   : > { %5567 = vmatpush1.bf16.msra.mxu1 %v5397_v42 }
 0x38a   : > { %3978 = vmatmul.mubr.bf16.vlgmr.msra.gmra.mrb[96].mxu1 %v7681_v25 }
 0x38b   : > { %3987 = vmatprep.mubr.bf16.mxu1 %v7697_v19 }
 0x392   : > { %3988 = vmatmul.mubr.bf16.gmra.mrb[100].mxu1 %v7693_v15 }
 0x39d   : > { %v3241_v52 = vpop.f32.mrb[32].mxu1 }
 0x39e   : > { %v5568_v33 = vadd.f32 %v3241_v52, %v7930_v55  ;;  %v3467_v61 = vpop.f32.mrb[64].mxu0  ;;  %v3243_v35 = vpop.f32.mrb[33].mxu1 }
 0x39f   : > { %v5600_v59 = vadd.f32 %v3467_v61, %v7935_v30  ;;  %v5569_v4 = vadd.f32 %v3243_v35, %v7939_v23  ;;  %v3469_v25 = vpop.f32.mrb[65].mxu0  ;;  %v3245_v63 = vpop.f32.mrb[34].mxu1 }
 0x3a0   : > { %v5399_v47 = vmul.f32 -1.442695, %v5568_v33  ;;  %v5601_v15 = vadd.f32 %v3469_v25, %v7944_v20  ;;  %v5570_v19 = vadd.f32 %v3245_v63, %v7930_v55  ;;  %v3471_v54 = vpop.f32.mrb[66].mxu0  ;;  %v3247_v14 = vpop.f32.mrb[35].mxu1 }
 0x3a1   : > { %v5401_v1 = vmul.f32 -1.442695, %v5600_v59  ;;  %v5400_v7 = vmul.f32 -1.442695, %v5569_v4  ;;  %v5602_v48 = vadd.f32 %v3471_v54, %v7935_v30  ;;  %v5571_v0 = vadd.f32 %v3247_v14, %v7939_v23  ;;  %v3473_v17 = vpop.f32.mrb[67].mxu0 }
 0x3a2   : > { %6248 = vpow2.f32 %v5399_v47  ;;  %v5402_v41 = vmul.f32 -1.442695, %v5601_v15  ;;  %v5407_v38 = vmul.f32 -1.442695, %v5570_v19  ;;  %v5603_v60 = vadd.f32 %v3473_v17, %v7944_v20 }
 0x3a3   : > { %6250 = vpow2.f32 %v5401_v1  ;;  %v5409_v62 = vmul.f32 -1.442695, %v5602_v48  ;;  %v5408_v11 = vmul.f32 -1.442695, %v5571_v0 }
 0x3a4   : > { %6252 = vpow2.f32 %v5400_v7  ;;  %v5410_v49 = vmul.f32 -1.442695, %v5603_v60 }
 0x3a5   : > { %6254 = vpow2.f32 %v5402_v41  ;;  %v3251_v31 = vpop.f32.mrb[36].mxu1 }
 0x3a6   : > { %6256 = vpow2.f32 %v5407_v38  ;;  %v5572_v53 = vadd.f32 %v3251_v31, %v7930_v55  ;;  %v3477_v21 = vpop.f32.mrb[68].mxu0  ;;  %v3253_v46 = vpop.f32.mrb[37].mxu1 }
 0x3a7   : > { %6258 = vpow2.f32 %v5409_v62  ;;  %v5604_v5 = vadd.f32 %v3477_v21, %v7935_v30  ;;  %v5573_v10 = vadd.f32 %v3253_v46, %v7939_v23  ;;  %v3479_v24 = vpop.f32.mrb[69].mxu0  ;;  %v3255_v45 = vpop.f32.mrb[38].mxu1 }
 0x3a8   : > { %6260 = vpow2.f32 %v5408_v11  ;;  %v5415_v3 = vmul.f32 -1.442695, %v5572_v53  ;;  %v5605_v13 = vadd.f32 %v3479_v24, %v7944_v20  ;;  %v5574_v51 = vadd.f32 %v3255_v45, %v7930_v55  ;;  %v3481_v58 = vpop.f32.mrb[70].mxu0  ;;  %v3257_v9 = vpop.f32.mrb[39].mxu1 }
 0x3a9   : > { %6262 = vpow2.f32 %v5410_v49  ;;  %v5417_v36 = vmul.f32 -1.442695, %v5604_v5  ;;  %v5416_v28 = vmul.f32 -1.442695, %v5573_v10  ;;  %v3483_v32 = vpop.f32.mrb[71].mxu0  ;;  %v5606_v15 = vadd.f32 %v3481_v58, %v7935_v30 }
 0x3aa   : > { %6264 = vpow2.f32 %v5415_v3  ;;  %v5418_v12 = vmul.f32 -1.442695, %v5605_v13  ;;  %v5423_v6 = vmul.f32 -1.442695, %v5574_v51  ;;  %v5575_v14 = vadd.f32 %v3257_v9, %v7939_v23 }
 0x3ab   : > { %6266 = vpow2.f32 %v5417_v36  ;;  %v5607_v0 = vadd.f32 %v3483_v32, %v7944_v20  ;;  %v5425_v21 = vmul.f32 -1.442695, %v5606_v15 }
 0x3ac   : > { %v6249_v27 = vpop.eup %6248  ;;  %6268 = vpow2.f32 %v5416_v28  ;;  %v5424_v3 = vmul.f32 -1.442695, %v5575_v14 }
 0x3ad   : > { %v6251_v8 = vpop.eup %6250  ;;  %v4382_v43 = vadd.f32 1.0, %v6249_v27  ;;  %6270 = vpow2.f32 %v5418_v12  ;;  %v3261_v50 = vpop.f32.mrb[40].mxu1  ;;  %v5426_v9 = vmul.f32 -1.442695, %v5607_v0 }
 0x3ae   : > { %v6253_v18 = vpop.eup %6252  ;;  %v4384_v57 = vadd.f32 1.0, %v6251_v8  ;;  %6272 = vpow2.f32 %v5423_v6  ;;  %v3487_v40 = vpop.f32.mrb[72].mxu0  ;;  %v5576_v62 = vadd.f32 %v3261_v50, %v7930_v55 }
 0x3af   : > { %v3263_v29 = vpop.f32.mrb[41].mxu1  ;;  %v6255_v16 = vpop.eup %6254  ;;  %6274 = vrcp.f32 %v4382_v43  ;;  %v4383_v22 = vadd.f32 1.0, %v6253_v18  ;;  %v5608_v46 = vadd.f32 %v3487_v40, %v7935_v30 }
 0x3b0   : > { %v3489_v44 = vpop.f32.mrb[73].mxu0  ;;  %v3265_v26 = vpop.f32.mrb[42].mxu1  ;;  %6276 = vrcp.f32 %v4384_v57  ;;  %v4385_v2 = vadd.f32 1.0, %v6255_v16  ;;  %v5577_v13 = vadd.f32 %v3263_v29, %v7939_v23  ;;  %v5431_v32 = vmul.f32 -1.442695, %v5576_v62 }
 0x3b1   : > { %v6257_v42 = vpop.eup %6256  ;;  %v3491_v56 = vpop.f32.mrb[74].mxu0  ;;  %6278 = vrcp.f32 %v4383_v22  ;;  %v5609_v36 = vadd.f32 %v3489_v44, %v7944_v20  ;;  %v5578_v12 = vadd.f32 %v3265_v26, %v7930_v55  ;;  %v5433_v27 = vmul.f32 -1.442695, %v5608_v46 }
 0x3b2   : > { %v7959_v39 = vpop.f32.mrb[43].mxu1  ;;  %v6259_v52 = vpop.eup %6258  ;;  %v4390_v33 = vadd.f32 1.0, %v6257_v42  ;;  %6280 = vrcp.f32 %v4385_v2  ;;  %v5610_v8 = vadd.f32 %v3491_v56, %v7935_v30  ;;  %v5432_v50 = vmul.f32 -1.442695, %v5577_v13 }
 0x3b3   : > { %v7961_v61 = vpop.f32.mrb[75].mxu0  ;;  %v6261_v35 = vpop.eup %6260  ;;  %v4392_v59 = vadd.f32 1.0, %v6259_v52  ;;  %v5579_v18 = vadd.f32 %v7959_v39, %v7939_v23  ;;  %v5434_v29 = vmul.f32 -1.442695, %v5609_v36  ;;  %v5439_v42 = vmul.f32 -1.442695, %v5578_v12 }
 0x3b4   : > { %v6263_v4 = vpop.eup %6262  ;;  %6282 = vrcp.f32 %v4390_v33  ;;  %v4391_v25 = vadd.f32 1.0, %v6261_v35  ;;  %v5611_v16 = vadd.f32 %v7961_v61, %v7944_v20  ;;  %v5441_v33 = vmul.f32 -1.442695, %v5610_v8 }
 0x3b5   : > { %v6265_v63 = vpop.eup %6264  ;;  %6284 = vrcp.f32 %v4392_v59  ;;  %v4393_v47 = vadd.f32 1.0, %v6263_v4  ;;  %v3271_v1 = vpop.f32.mrb[44].mxu1 }
 0x3b6   : > { %v6267_v19 = vpop.eup %6266  ;;  %6286 = vrcp.f32 %v4391_v25  ;;  %v4398_v54 = vadd.f32 1.0, %v6265_v63  ;;  %v3497_v17 = vpop.f32.mrb[76].mxu0  ;;  %v5580_v2 = vadd.f32 %v3271_v1, %v7930_v55  ;;  %v5440_v25 = vmul.f32 -1.442695, %v5579_v18 }
 0x3b7   : > { %v6269_v7 = vpop.eup %6268  ;;  %6288 = vrcp.f32 %v4393_v47  ;;  %v4400_v48 = vadd.f32 1.0, %v6267_v19  ;;  %v7967_v41 = vpop.f32.mrb[45].mxu1  ;;  %v5612_v61 = vadd.f32 %v3497_v17, %v7935_v30  ;;  %v5442_v15 = vmul.f32 -1.442695, %v5611_v16 }
 0x3b8   : > { %v6271_v38 = vpop.eup %6270  ;;  %6290 = vrcp.f32 %v4398_v54  ;;  %v4399_v60 = vadd.f32 1.0, %v6269_v7  ;;  %v7970_v11 = vpop.f32.mrb[77].mxu0  ;;  %v5447_v54 = vmul.f32 -1.442695, %v5580_v2  ;;  %v5581_v12 = vadd.f32 %v7967_v41, %v7939_v23 }
 0x3b9   : > { %v7972_v49 = vpop.f32.mrb[46].mxu1  ;;  %v6273_v31 = vpop.eup %6272  ;;  %6292 = vrcp.f32 %v4400_v48  ;;  %v4401_v53 = vadd.f32 1.0, %v6271_v38  ;;  %v5449_v7 = vmul.f32 -1.442695, %v5612_v61 }
 0x3ba   : > { %v7975_v5 = vpop.f32.mrb[78].mxu0  ;;  %v7977_v10 = vpop.f32.mrb[47].mxu1  ;;  %6294 = vrcp.f32 %v4399_v60  ;;  %v4406_v45 = vadd.f32 1.0, %v6273_v31 }
 0x3bb   : > { %v6275_v24 = vpop.eup %6274  ;;  %v7980_v51 = vpop.f32.mrb[79].mxu0  ;;  %6296 = vrcp.f32 %v4401_v53 }
 0x3bc   : > { %v6277_v58 = vpop.eup %6276  ;;  %4766 = vst [vmem:[%s7984_s16] sm:$0xff] %v6275_v24  ;;  %6298 = vrcp.f32 %v4406_v45 }
 0x3bd   : > { %v6279_v28 = vpop.eup %6278  ;;  %4768 = vst [vmem:[%s7984_s16 + $0x10] sm:$0xff] %v6277_v58  ;;  %6300 = vpow2.f32 %v5425_v21  ;;  %v7995_v57 = vpop.f32.mrb[48].mxu1 }
 0x3be   : > { %v6281_v6 = vpop.eup %6280  ;;  %4767 = vst [vmem:[%s7984_s16 + $0x8] sm:$0xff] %v6279_v28  ;;  %6302 = vpow2.f32 %v5424_v3  ;;  %v8000_v22 = vpop.f32.mrb[80].mxu0 }
 0x3bf   : > { %v6283_v43 = vpop.eup %6282  ;;  %4769 = vst [vmem:[%s7984_s16 + $0x18] sm:$0xff] %v6281_v6  ;;  %6304 = vpow2.f32 %v5426_v9  ;;  %v8002_v44 = vpop.f32.mrb[49].mxu1  ;;  %v5613_v6 = vadd.f32 %v7970_v11, %v7944_v20 }
 0x3c0   : > { %v6285_v40 = vpop.eup %6284  ;;  %4774 = vst [vmem:[%s7984_s16 + $0x40] sm:$0xff] %v6283_v43  ;;  %6306 = vpow2.f32 %v5431_v32  ;;  %v8006_v56 = vpop.f32.mrb[81].mxu0 }
 0x3c1   : > { %v6287_v26 = vpop.eup %6286  ;;  %4776 = vst [vmem:[%s7984_s16 + $0x50] sm:$0xff] %v6285_v40  ;;  %v8008_v39 = vpop.f32.mrb[50].mxu1  ;;  %6308 = vpow2.f32 %v5433_v27 }
 0x3c2   : > { %v6289_v52 = vpop.eup %6288  ;;  %4775 = vst [vmem:[%s7984_s16 + $0x48] sm:$0xff] %v6287_v26  ;;  %v8012_v35 = vpop.f32.mrb[82].mxu0  ;;  %6310 = vpow2.f32 %v5432_v50 }
 0x3c3   : > { %v8014_v59 = vpop.f32.mrb[51].mxu1  ;;  %v6291_v4 = vpop.eup %6290  ;;  %4777 = vst [vmem:[%s7984_s16 + $0x58] sm:$0xff] %v6289_v52  ;;  %6312 = vpow2.f32 %v5434_v29  ;;  %v5448_v52 = vmul.f32 -1.442695, %v5581_v12 }
 0x3c4   : > { %v3513_v63 = vpop.f32.mrb[83].mxu0  ;;  %v6293_v47 = vpop.eup %6292  ;;  %4782 = vst [vmem:[%s7984_s16 + $0x80] sm:$0xff] %v6291_v4  ;;  %6314 = vpow2.f32 %v5439_v42 }
 0x3c5   : > { %v6295_v19 = vpop.eup %6294  ;;  %4784 = vst [vmem:[%s7984_s16 + $0x90] sm:$0xff] %v6293_v47  ;;  %v8020_v14 = vadd.f32 %v3513_v63, %v7944_v20  ;;  %6316 = vpow2.f32 %v5441_v33  ;;  %v3291_v0 = vpop.f32.mrb[52].mxu1  ;;  %v5450_v33 = vmul.f32 -1.442695, %v5613_v6  ;;  %v5582_v63 = vadd.f32 %v7972_v49, %v7930_v55 }
 0x3c6   : > { %v6297_v1 = vpop.eup %6296  ;;  %4783 = vst [vmem:[%s7984_s16 + $0x88] sm:$0xff] %v6295_v19  ;;  %6318 = vpow2.f32 %v5440_v25  ;;  %v8026_v38 = vadd.f32 %v3291_v0, %v7930_v55  ;;  %v3517_v60 = vpop.f32.mrb[84].mxu0  ;;  %v5614_v49 = vadd.f32 %v7975_v5, %v7935_v30 }
 0x3c7   : > { %v6299_v48 = vpop.eup %6298  ;;  %4785 = vst [vmem:[%s7984_s16 + $0x98] sm:$0xff] %v6297_v1  ;;  %6320 = vpow2.f32 %v5442_v15  ;;  %v3293_v62 = vpop.f32.mrb[53].mxu1  ;;  %v8029_v21 = vadd.f32 %v3517_v60, %v7935_v30 }
 0x3c8   : > { %v6301_v17 = vpop.eup %6300  ;;  %4790 = vst [vmem:[%s7984_s16 + $0xc0] sm:$0xff] %v6299_v48  ;;  %6322 = vpow2.f32 %v5447_v54  ;;  %v8032_v46 = vadd.f32 %v3293_v62, %v7939_v23  ;;  %v3519_v24 = vpop.f32.mrb[85].mxu0 }
 0x3c9   : > { %v6303_v31 = vpop.eup %6302  ;;  %v4408_v53 = vadd.f32 1.0, %v6301_v17  ;;  %v3295_v45 = vpop.f32.mrb[54].mxu1  ;;  %6324 = vpow2.f32 %v5449_v7  ;;  %v8035_v58 = vadd.f32 %v3519_v24, %v7944_v20 }
 0x3ca   : > { %v6305_v3 = vpop.eup %6304  ;;  %v4407_v13 = vadd.f32 1.0, %v6303_v31  ;;  %v3521_v9 = vpop.f32.mrb[86].mxu0  ;;  %v8042_v50 = vadd.f32 %v3295_v45, %v7930_v55 }
 0x3cb   : > { %v3297_v36 = vpop.f32.mrb[55].mxu1  ;;  %v6307_v28 = vpop.eup %6306  ;;  %6326 = vrcp.f32 %v4408_v53  ;;  %v4409_v32 = vadd.f32 1.0, %v6305_v3  ;;  %v8045_v29 = vadd.f32 %v3521_v9, %v7935_v30  ;;  %v5615_v9 = vadd.f32 %v7980_v51, %v7944_v20 }
 0x3cc   : > { %v3523_v27 = vpop.f32.mrb[87].mxu0  ;;  %v6309_v8 = vpop.eup %6308  ;;  %6328 = vrcp.f32 %v4407_v13  ;;  %v4414_v43 = vadd.f32 1.0, %v6307_v28  ;;  %v8048_v16 = vadd.f32 %v3297_v36, %v7939_v23  ;;  %v5583_v13 = vadd.f32 %v7977_v10, %v7939_v23 }
 0x3cd   : > { %v6311_v18 = vpop.eup %6310  ;;  %6330 = vrcp.f32 %v4409_v32  ;;  %v4416_v40 = vadd.f32 1.0, %v6309_v8  ;;  %v8051_v11 = vadd.f32 %v3523_v27, %v7944_v20  ;;  %v3301_v61 = vpop.f32.mrb[56].mxu1  ;;  %v5584_v32 = vadd.f32 %v7995_v57, %v7930_v55 }
 0x3ce   : > { %v6313_v41 = vpop.eup %6312  ;;  %6332 = vrcp.f32 %v4414_v43  ;;  %v4415_v26 = vadd.f32 1.0, %v6311_v18  ;;  %v8056_v47 = vadd.f32 %v3301_v61, %v7930_v55  ;;  %v3527_v15 = vpop.f32.mrb[88].mxu0  ;;  %v5455_v43 = vmul.f32 -1.442695, %v5582_v63 }
 0x3cf   : > { %v6315_v42 = vpop.eup %6314  ;;  %6334 = vrcp.f32 %v4416_v40  ;;  %v4417_v2 = vadd.f32 1.0, %v6313_v41  ;;  %v3303_v19 = vpop.f32.mrb[57].mxu1  ;;  %v8059_v7 = vadd.f32 %v3527_v15, %v7935_v30  ;;  %v5457_v18 = vmul.f32 -1.442695, %v5614_v49 }
 0x3d0   : > { %v6317_v4 = vpop.eup %6316  ;;  %6336 = vrcp.f32 %v4415_v26  ;;  %v4422_v25 = vadd.f32 1.0, %v6315_v42  ;;  %v8062_v48 = vadd.f32 %v3303_v19, %v7939_v23  ;;  %v3529_v0 = vpop.f32.mrb[89].mxu0  ;;  %v5456_v41 = vmul.f32 -1.442695, %v5583_v13 }
 0x3d1   : > { %v6319_v54 = vpop.eup %6318  ;;  %6338 = vrcp.f32 %v4417_v2  ;;  %v4424_v1 = vadd.f32 1.0, %v6317_v4  ;;  %v3305_v17 = vpop.f32.mrb[58].mxu1  ;;  %v8067_v31 = vadd.f32 %v3529_v0, %v7944_v20  ;;  %v5458_v26 = vmul.f32 -1.442695, %v5615_v9 }
 0x3d2   : > { %v6321_v60 = vpop.eup %6320  ;;  %6340 = vrcp.f32 %v4422_v25  ;;  %v4423_v62 = vadd.f32 1.0, %v6319_v54  ;;  %v3531_v53 = vpop.f32.mrb[90].mxu0  ;;  %v8076_v12 = vadd.f32 %v3305_v17, %v7930_v55  ;;  %v5616_v42 = vadd.f32 %v8000_v22, %v7935_v30 }
 0x3d3   : > { %v3307_v24 = vpop.f32.mrb[59].mxu1  ;;  %v6323_v45 = vpop.eup %6322  ;;  %6342 = vrcp.f32 %v4424_v1  ;;  %v4425_v3 = vadd.f32 1.0, %v6321_v60  ;;  %v8079_v8 = vadd.f32 %v3531_v53, %v7935_v30  ;;  %v5463_v4 = vmul.f32 -1.442695, %v5584_v32 }
 0x3d4   : > { %v3533_v36 = vpop.f32.mrb[91].mxu0  ;;  %v6325_v28 = vpop.eup %6324  ;;  %6344 = vrcp.f32 %v4423_v62  ;;  %v4430_v5 = vadd.f32 1.0, %v6323_v45  ;;  %v8082_v10 = vadd.f32 %v3307_v24, %v7939_v23  ;;  %v5585_v25 = vadd.f32 %v8002_v44, %v7939_v23 }
 0x3d5   : > { %v6327_v6 = vpop.eup %6326  ;;  %6346 = vrcp.f32 %v4425_v3  ;;  %v4432_v27 = vadd.f32 1.0, %v6325_v28  ;;  %v8086_v57 = vadd.f32 %v3533_v36, %v7944_v20  ;;  %v3311_v2 = vpop.f32.mrb[60].mxu1  ;;  %v5617_v22 = vadd.f32 %v8006_v56, %v7944_v20 }
 0x3d6   : > { %v6329_v51 = vpop.eup %6328  ;;  %4792 = vst [vmem:[%s7984_s16 + $0xd0] sm:$0xff] %v6327_v6  ;;  %6348 = vrcp.f32 %v4430_v5  ;;  %v8095_v63 = vadd.f32 %v3311_v2, %v7930_v55  ;;  %v3537_v15 = vpop.f32.mrb[92].mxu0  ;;  %v5586_v60 = vadd.f32 %v8008_v39, %v7930_v55  ;;  %v5465_v24 = vmul.f32 -1.442695, %v5616_v42 }
 0x3d7   : > { %v6331_v40 = vpop.eup %6330  ;;  %4791 = vst [vmem:[%s7984_s16 + $0xc8] sm:$0xff] %v6329_v51  ;;  %6350 = vrcp.f32 %v4432_v27  ;;  %v3313_v19 = vpop.f32.mrb[61].mxu1  ;;  %v8101_v1 = vadd.f32 %v3537_v15, %v7935_v30  ;;  %v5618_v45 = vadd.f32 %v8012_v35, %v7935_v30  ;;  %v5587_v9 = vadd.f32 %v8014_v59, %v7939_v23 }
 0x3d8   : > { %v6333_v61 = vpop.eup %6332  ;;  %4793 = vst [vmem:[%s7984_s16 + $0xd8] sm:$0xff] %v6331_v40  ;;  %6352 = vpow2.f32 %v5448_v52  ;;  %v8104_v52 = vadd.f32 %v3313_v19, %v7939_v23  ;;  %v3539_v0 = vpop.f32.mrb[93].mxu0  ;;  %v5466_v35 = vmul.f32 -1.442695, %v5617_v22  ;;  %v5471_v32 = vmul.f32 -1.442695, %v5586_v60 }
 0x3d9   : > { %v6335_v54 = vpop.eup %6334  ;;  %4798 = vst [vmem:[%s7984_s16 + $0x100] sm:$0xff] %v6333_v61  ;;  %6354 = vpow2.f32 %v5450_v33  ;;  %v3315_v44 = vpop.f32.mrb[62].mxu1  ;;  %v8110_v33 = vadd.f32 %v3539_v0, %v7944_v20  ;;  %v5473_v59 = vmul.f32 -1.442695, %v5618_v45 }
 0x3da   : > { %v6337_v17 = vpop.eup %6336  ;;  %4800 = vst [vmem:[%s7984_s16 + $0x110] sm:$0xff] %v6335_v54  ;;  %6356 = vpow2.f32 %v5455_v43  ;;  %v8113_v56 = vadd.f32 %v3315_v44, %v7930_v55  ;;  %v3541_v62 = vpop.f32.mrb[94].mxu0  ;;  %v5464_v55 = vmul.f32 -1.442695, %v5585_v25 }
 0x3db   : > { %v3317_v49 = vpop.f32.mrb[63].mxu1  ;;  %v6339_v53 = vpop.eup %6338  ;;  %4799 = vst [vmem:[%s7984_s16 + $0x108] sm:$0xff] %v6337_v17  ;;  %6358 = vpow2.f32 %v5457_v18  ;;  %v8119_v3 = vadd.f32 %v3541_v62, %v7935_v30 }
 0x3dc   : > { %v3543_v39 = vpop.f32.mrb[95].mxu0  ;;  %v6341_v13 = vpop.eup %6340  ;;  %4801 = vst [vmem:[%s7984_s16 + $0x118] sm:$0xff] %v6339_v53  ;;  %6360 = vpow2.f32 %v5456_v41  ;;  %v8125_v36 = vadd.f32 %v3317_v49, %v7939_v23  ;;  %v5472_v23 = vmul.f32 -1.442695, %v5587_v9 }
 0x3dd   : > { %v6343_v28 = vpop.eup %6342  ;;  %4806 = vst [vmem:[%s7984_s16 + $0x140] sm:$0xff] %v6341_v13  ;;  %6362 = vpow2.f32 %v5458_v26  ;;  %v8129_v30 = vadd.f32 %v3543_v39, %v7944_v20  ;;  %v5474_v13 = vmul.f32 -1.442695, %v8020_v14  ;;  %v5482_v14 = vmul.f32 -1.442695, %v8035_v58 }
 0x3de   : > { %v6345_v5 = vpop.eup %6344  ;;  %4808 = vst [vmem:[%s7984_s16 + $0x150] sm:$0xff] %v6343_v28  ;;  %6364 = vpow2.f32 %v5463_v4  ;;  %v5479_v28 = vmul.f32 -1.442695, %v8026_v38  ;;  %v5487_v38 = vmul.f32 -1.442695, %v8042_v50 }
 0x3df   : > { %v6347_v6 = vpop.eup %6346  ;;  %4807 = vst [vmem:[%s7984_s16 + $0x148] sm:$0xff] %v6345_v5  ;;  %6366 = vpow2.f32 %v5465_v24  ;;  %v5481_v5 = vmul.f32 -1.442695, %v8029_v21  ;;  %v5489_v21 = vmul.f32 -1.442695, %v8045_v29 }
 0x3e0   : > { %v6349_v27 = vpop.eup %6348  ;;  %4809 = vst [vmem:[%s7984_s16 + $0x158] sm:$0xff] %v6347_v6  ;;  %6368 = vpow2.f32 %v5464_v55  ;;  %v5480_v6 = vmul.f32 -1.442695, %v8032_v46  ;;  %v5488_v46 = vmul.f32 -1.442695, %v8048_v16 }
 0x3e1   : > { %v6351_v51 = vpop.eup %6350  ;;  %4814 = vst [vmem:[%s7984_s16 + $0x180] sm:$0xff] %v6349_v27  ;;  %6370 = vpow2.f32 %v5466_v35  ;;  %v5490_v58 = vmul.f32 -1.442695, %v8051_v11  ;;  %v5495_v50 = vmul.f32 -1.442695, %v8056_v47 }
 0x3e2   : > { %v6353_v43 = vpop.eup %6352  ;;  %4816 = vst [vmem:[%s7984_s16 + $0x190] sm:$0xff] %v6351_v51  ;;  %6372 = vpow2.f32 %v5471_v32  ;;  %v5497_v29 = vmul.f32 -1.442695, %v8059_v7  ;;  %v5496_v16 = vmul.f32 -1.442695, %v8062_v48 }
 0x3e3   : > { %v6355_v20 = vpop.eup %6354  ;;  %v4431_v18 = vadd.f32 1.0, %v6353_v43  ;;  %6374 = vpow2.f32 %v5473_v59  ;;  %v5498_v11 = vmul.f32 -1.442695, %v8067_v31 }
 0x3e4   : > { %v6357_v40 = vpop.eup %6356  ;;  %v4433_v41 = vadd.f32 1.0, %v6355_v20  ;;  %6376 = vpow2.f32 %v5472_v23 }
 0x3e5   : > { %v6359_v26 = vpop.eup %6358  ;;  %6378 = vrcp.f32 %v4431_v18  ;;  %v4438_v42 = vadd.f32 1.0, %v6357_v40 }
 0x3e6   : > { %v6361_v2 = vpop.eup %6360  ;;  %6380 = vrcp.f32 %v4433_v41  ;;  %v4440_v61 = vadd.f32 1.0, %v6359_v26 }
 0x3e7   : > { %v6363_v4 = vpop.eup %6362  ;;  %6382 = vrcp.f32 %v4438_v42  ;;  %v4439_v25 = vadd.f32 1.0, %v6361_v2 }
 0x3e8   : > { %v6365_v15 = vpop.eup %6364  ;;  %6384 = vrcp.f32 %v4440_v61  ;;  %v4441_v19 = vadd.f32 1.0, %v6363_v4 }
 0x3e9   : > { %v6367_v54 = vpop.eup %6366  ;;  %6386 = vrcp.f32 %v4439_v25  ;;  %v4446_v22 = vadd.f32 1.0, %v6365_v15 }
 0x3ea   : > { %v6369_v0 = vpop.eup %6368  ;;  %6388 = vrcp.f32 %v4441_v19  ;;  %v4448_v44 = vadd.f32 1.0, %v6367_v54 }
 0x3eb   : > { %v6371_v17 = vpop.eup %6370  ;;  %6390 = vrcp.f32 %v4446_v22  ;;  %v4447_v60 = vadd.f32 1.0, %v6369_v0 }
 0x3ec   : > { %v6373_v62 = vpop.eup %6372  ;;  %6392 = vrcp.f32 %v4448_v44  ;;  %v4449_v49 = vadd.f32 1.0, %v6371_v17 }
 0x3ed   : > { %v6375_v53 = vpop.eup %6374  ;;  %6394 = vrcp.f32 %v4447_v60  ;;  %v4454_v24 = vadd.f32 1.0, %v6373_v62 }
 0x3ee   : > { %v6377_v45 = vpop.eup %6376  ;;  %6396 = vrcp.f32 %v4449_v49  ;;  %v4456_v39 = vadd.f32 1.0, %v6375_v53 }
 0x3ef   : > { %v6379_v55 = vpop.eup %6378  ;;  %6398 = vrcp.f32 %v4454_v24  ;;  %v4455_v9 = vadd.f32 1.0, %v6377_v45 }
 0x3f0   : > { %v6381_v35 = vpop.eup %6380  ;;  %4815 = vst [vmem:[%s7984_s16 + $0x188] sm:$0xff] %v6379_v55  ;;  %6400 = vrcp.f32 %v4456_v39 }
 0x3f1   : > { %v6383_v32 = vpop.eup %6382  ;;  %4817 = vst [vmem:[%s7984_s16 + $0x198] sm:$0xff] %v6381_v35  ;;  %6402 = vrcp.f32 %v4455_v9  ;;  %v5503_v9 = vmul.f32 -1.442695, %v8076_v12  ;;  %v5506_v12 = vmul.f32 -1.442695, %v8086_v57 }
 0x3f2   : > { %v6385_v59 = vpop.eup %6384  ;;  %4822 = vst [vmem:[%s7984_s16 + $0x1c0] sm:$0xff] %v6383_v32  ;;  %6404 = vpow2.f32 %v5474_v13  ;;  %v5512_v57 = vmul.f32 -1.442695, %v8104_v52  ;;  %v5521_v52 = vmul.f32 -1.442695, %v8119_v3 }
 0x3f3   : > { %v6387_v27 = vpop.eup %6386  ;;  %4824 = vst [vmem:[%s7984_s16 + $0x1d0] sm:$0xff] %v6385_v59  ;;  %6406 = vpow2.f32 %v5479_v28  ;;  %v1800_v59 = vsub.s32 6, %v7279_v34 }
 0x3f4   : > { %v6389_v23 = vpop.eup %6388  ;;  %4823 = vst [vmem:[%s7984_s16 + $0x1c8] sm:$0xff] %v6387_v27  ;;  %6408 = vpow2.f32 %v5481_v5  ;;  %v5505_v5 = vmul.f32 -1.442695, %v8079_v8  ;;  %v1804_v27 = vsub.s32 7, %v7279_v34  ;;  %v5511_v8 = vmul.f32 -1.442695, %v8095_v63 }
 0x3f5   : > { %v6391_v51 = vpop.eup %6390  ;;  %4825 = vst [vmem:[%s7984_s16 + $0x1d8] sm:$0xff] %v6389_v23  ;;  %6410 = vpow2.f32 %v5480_v6  ;;  %v5504_v6 = vmul.f32 -1.442695, %v8082_v10  ;;  %v5513_v10 = vmul.f32 -1.442695, %v8101_v1 }
 0x3f6   : > { %v6393_v43 = vpop.eup %6392  ;;  %4830 = vst [vmem:[%s7984_s16 + $0x200] sm:$0xff] %v6391_v51  ;;  %6412 = vpow2.f32 %v5482_v14  ;;  %v8177_v51 = vrot.slane %v7926_v37, %v1800_v59  ;;  %v5514_v63 = vmul.f32 -1.442695, %v8110_v33  ;;  %v5519_v1 = vmul.f32 -1.442695, %v8113_v56 }
 0x3f7   : > { %v6395_v20 = vpop.eup %6394  ;;  %4832 = vst [vmem:[%s7984_s16 + $0x210] sm:$0xff] %v6393_v43  ;;  %6414 = vpow2.f32 %v5487_v38  ;;  %v8182_v43 = vrot.slane %v7926_v37, %v1804_v27  ;;  %v5520_v37 = vmul.f32 -1.442695, %v8125_v36  ;;  %v5522_v56 = vmul.f32 -1.442695, %v8129_v30 }
 0x3f8   : > { %v6397_v18 = vpop.eup %6396  ;;  %4831 = vst [vmem:[%s7984_s16 + $0x208] sm:$0xff] %v6395_v20  ;;  %6416 = vpow2.f32 %v5489_v21 }
 0x3f9   : > { %v6399_v40 = vpop.eup %6398  ;;  %4833 = vst [vmem:[%s7984_s16 + $0x218] sm:$0xff] %v6397_v18  ;;  %6418 = vpow2.f32 %v5488_v46 }
 0x3fa   : > { %v6401_v41 = vpop.eup %6400  ;;  %4838 = vst [vmem:[%s7984_s16 + $0x240] sm:$0xff] %v6399_v40  ;;  %6420 = vpow2.f32 %v5490_v58 }
 0x3fb   : > { %v6403_v26 = vpop.eup %6402  ;;  %4840 = vst [vmem:[%s7984_s16 + $0x250] sm:$0xff] %v6401_v41  ;;  %6422 = vpow2.f32 %v5495_v50 }
 0x3fc   : > { %v6405_v47 = vpop.eup %6404  ;;  %4839 = vst [vmem:[%s7984_s16 + $0x248] sm:$0xff] %v6403_v26  ;;  %6424 = vpow2.f32 %v5497_v29 }
 0x3fd   : > { %v6407_v42 = vpop.eup %6406  ;;  %v4457_v2 = vadd.f32 1.0, %v6405_v47  ;;  %6426 = vpow2.f32 %v5496_v16 }
 0x3fe   : > { %v6409_v7 = vpop.eup %6408  ;;  %v4462_v61 = vadd.f32 1.0, %v6407_v42  ;;  %6428 = vpow2.f32 %v5498_v11 }
 0x3ff   : > { %v6411_v4 = vpop.eup %6410  ;;  %6430 = vrcp.f32 %v4457_v2  ;;  %v4464_v48 = vadd.f32 1.0, %v6409_v7 }
 0x400   : > { %v6413_v25 = vpop.eup %6412  ;;  %6432 = vrcp.f32 %v4462_v61  ;;  %v4463_v15 = vadd.f32 1.0, %v6411_v4  ;;  %v1792_v4 = vsub.s32 4, %v7279_v34 }
 0x401   : > { %v6415_v19 = vpop.eup %6414  ;;  %6434 = vrcp.f32 %v4464_v48  ;;  %v4465_v31 = vadd.f32 1.0, %v6413_v25 }
 0x402   : > { %v6417_v54 = vpop.eup %6416  ;;  %6436 = vrcp.f32 %v4463_v15  ;;  %v4470_v22 = vadd.f32 1.0, %v6415_v19  ;;  %v1796_v19 = vsub.s32 5, %v7279_v34 }
 0x403   : > { %v6419_v0 = vpop.eup %6418  ;;  %6438 = vrcp.f32 %v4465_v31  ;;  %v4472_v44 = vadd.f32 1.0, %v6417_v54 }
 0x404   : > { %v6421_v17 = vpop.eup %6420  ;;  %6440 = vrcp.f32 %v4470_v22  ;;  %v4471_v60 = vadd.f32 1.0, %v6419_v0 }
 0x405   : > { %v6423_v62 = vpop.eup %6422  ;;  %6442 = vrcp.f32 %v4472_v44  ;;  %v4473_v49 = vadd.f32 1.0, %v6421_v17 }
 0x406   : > { %v6425_v53 = vpop.eup %6424  ;;  %6444 = vrcp.f32 %v4471_v60  ;;  %v4478_v24 = vadd.f32 1.0, %v6423_v62 }
 0x407   : > { %v6427_v45 = vpop.eup %6426  ;;  %6446 = vrcp.f32 %v4473_v49  ;;  %v4480_v39 = vadd.f32 1.0, %v6425_v53 }
 0x408   : > { %v6429_v13 = vpop.eup %6428  ;;  %6448 = vrcp.f32 %v4478_v24  ;;  %v4479_v55 = vadd.f32 1.0, %v6427_v45  ;;  %v6760_v45 = vld [vmem:[%s8556_s6] sm:$0xff] }
 0x409   : > { %v6431_v28 = vpop.eup %6430  ;;  %6450 = vrcp.f32 %v4480_v39  ;;  %v4481_v35 = vadd.f32 1.0, %v6429_v13  ;;  %v8221_v39 = vrot.slane %v6760_v45, %v1792_v4 }
 0x40a   : > { %v6433_v32 = vpop.eup %6432  ;;  %4841 = vst [vmem:[%s7984_s16 + $0x258] sm:$0xff] %v6431_v28  ;;  %6452 = vrcp.f32 %v4479_v55  ;;  %v8226_v28 = vrot.slane %v6760_v45, %v1796_v19 }
 0x40b   : > { %v6435_v14 = vpop.eup %6434  ;;  %4846 = vst [vmem:[%s7984_s16 + $0x280] sm:$0xff] %v6433_v32  ;;  %6454 = vrcp.f32 %v4481_v35 }
 0x40c   : > { %v6437_v38 = vpop.eup %6436  ;;  %4848 = vst [vmem:[%s7984_s16 + $0x290] sm:$0xff] %v6435_v14  ;;  %6456 = vpow2.f32 %v5503_v9 }
 0x40d   : > { %v6439_v23 = vpop.eup %6438  ;;  %4847 = vst [vmem:[%s7984_s16 + $0x288] sm:$0xff] %v6437_v38  ;;  %6458 = vpow2.f32 %v5505_v5 }
 0x40e   : > { %v6441_v21 = vpop.eup %6440  ;;  %4849 = vst [vmem:[%s7984_s16 + $0x298] sm:$0xff] %v6439_v23  ;;  %6460 = vpow2.f32 %v5504_v6 }
 0x40f   : > { %v6443_v46 = vpop.eup %6442  ;;  %4854 = vst [vmem:[%s7984_s16 + $0x2c0] sm:$0xff] %v6441_v21  ;;  %6462 = vpow2.f32 %v5506_v12  ;;  %v3866_v50 = vpop.f32.mrb[120].mxu0 }
 0x410   : > { %v6445_v58 = vpop.eup %6444  ;;  %4856 = vst [vmem:[%s7984_s16 + $0x2d0] sm:$0xff] %v6443_v46  ;;  %6464 = vpow2.f32 %v5511_v8  ;;  %v8191_v33 = vadd.f32 %v3866_v50, %v8177_v51  ;;  %v3868_v29 = vpop.f32.mrb[121].mxu0 }
 0x411   : > { %v6447_v20 = vpop.eup %6446  ;;  %4855 = vst [vmem:[%s7984_s16 + $0x2c8] sm:$0xff] %v6445_v58  ;;  %6466 = vpow2.f32 %v5513_v10  ;;  %v8196_v16 = vadd.f32 %v3868_v29, %v8182_v43  ;;  %v3870_v3 = vpop.f32.mrb[122].mxu0 }
 0x412   : > { %v6449_v18 = vpop.eup %6448  ;;  %4857 = vst [vmem:[%s7984_s16 + $0x2d8] sm:$0xff] %v6447_v20  ;;  %6468 = vpow2.f32 %v5512_v57  ;;  %v8200_v11 = vadd.f32 %v3870_v3, %v8177_v51  ;;  %v3872_v36 = vpop.f32.mrb[123].mxu0 }
 0x413   : > { %v6451_v40 = vpop.eup %6450  ;;  %4862 = vst [vmem:[%s7984_s16 + $0x300] sm:$0xff] %v6449_v18  ;;  %6470 = vpow2.f32 %v5514_v63  ;;  %v8204_v47 = vadd.f32 %v3872_v36, %v8182_v43 }
 0x414   : > { %v6453_v41 = vpop.eup %6452  ;;  %4864 = vst [vmem:[%s7984_s16 + $0x310] sm:$0xff] %v6451_v40  ;;  %6472 = vpow2.f32 %v5519_v1 }
 0x415   : > { %v6455_v26 = vpop.eup %6454  ;;  %4863 = vst [vmem:[%s7984_s16 + $0x308] sm:$0xff] %v6453_v41  ;;  %6474 = vpow2.f32 %v5521_v52 }
 0x416   : > { %v6457_v42 = vpop.eup %6456  ;;  %4865 = vst [vmem:[%s7984_s16 + $0x318] sm:$0xff] %v6455_v26  ;;  %6476 = vpow2.f32 %v5520_v37 }
 0x417   : > { %v6459_v30 = vpop.eup %6458  ;;  %v4486_v2 = vadd.f32 1.0, %v6457_v42  ;;  %6478 = vpow2.f32 %v5522_v56  ;;  %v3876_v15 = vpop.f32.mrb[124].mxu0 }
 0x418   : > { %v6461_v7 = vpop.eup %6460  ;;  %v4488_v61 = vadd.f32 1.0, %v6459_v30  ;;  %v8210_v22 = vadd.f32 %v3876_v15, %v8177_v51  ;;  %v3878_v0 = vpop.f32.mrb[125].mxu0 }
 0x419   : > { %v6463_v48 = vpop.eup %6462  ;;  %6480 = vrcp.f32 %v4486_v2  ;;  %v4487_v25 = vadd.f32 1.0, %v6461_v7  ;;  %v8213_v60 = vadd.f32 %v3878_v0, %v8182_v43  ;;  %v3880_v62 = vpop.f32.mrb[126].mxu0 }
 0x41a   : > { %v6465_v31 = vpop.eup %6464  ;;  %6482 = vrcp.f32 %v4488_v61  ;;  %v4489_v54 = vadd.f32 1.0, %v6463_v48  ;;  %v8216_v24 = vadd.f32 %v3880_v62, %v8177_v51  ;;  %v3882_v34 = vpop.f32.mrb[127].mxu0 }
 0x41b   : > { %v6467_v44 = vpop.eup %6466  ;;  %6484 = vrcp.f32 %v4487_v25  ;;  %v4494_v17 = vadd.f32 1.0, %v6465_v31  ;;  %v8224_v9 = vadd.f32 %v3882_v34, %v8182_v43 }
 0x41c   : > { %v6469_v49 = vpop.eup %6468  ;;  %6486 = vrcp.f32 %v4489_v54  ;;  %v4496_v53 = vadd.f32 1.0, %v6467_v44 }
 0x41d   : > { %v6471_v13 = vpop.eup %6470  ;;  %6488 = vrcp.f32 %v4494_v17  ;;  %v4495_v55 = vadd.f32 1.0, %v6469_v49  ;;  %v3693_v59 = vpop.f32.mrb[64].mxu1 }
 0x41e   : > { %v6473_v35 = vpop.eup %6472  ;;  %6490 = vrcp.f32 %v4496_v53  ;;  %v4497_v5 = vadd.f32 1.0, %v6471_v13  ;;  %v5632_v27 = vadd.f32 %v3693_v59, %v8221_v39  ;;  %v3695_v38 = vpop.f32.mrb[65].mxu1 }
 0x41f   : > { %v6475_v32 = vpop.eup %6474  ;;  %6492 = vrcp.f32 %v4495_v55  ;;  %v4502_v6 = vadd.f32 1.0, %v6473_v35  ;;  %v3919_v10 = vpop.f32.mrb[96].mxu0  ;;  %v5633_v21 = vadd.f32 %v3695_v38, %v8226_v28 }
 0x420   : > { %v6477_v14 = vpop.eup %6476  ;;  %6494 = vrcp.f32 %v4497_v5  ;;  %v4504_v12 = vadd.f32 1.0, %v6475_v32  ;;  %v3697_v57 = vpop.f32.mrb[66].mxu1  ;;  %v5403_v63 = vmul.f32 -1.442695, %v5632_v27  ;;  %v5664_v58 = vadd.f32 %v3919_v10, %v8177_v51 }
 0x421   : > { %v6479_v8 = vpop.eup %6478  ;;  %6496 = vrcp.f32 %v4502_v6  ;;  %v4503_v23 = vadd.f32 1.0, %v6477_v14  ;;  %v3921_v1 = vpop.f32.mrb[97].mxu0  ;;  %v5404_v50 = vmul.f32 -1.442695, %v5633_v21  ;;  %v5634_v37 = vadd.f32 %v3697_v57, %v8221_v39 }
 0x422   : > { %6498 = vrcp.f32 %v4504_v12  ;;  %v4505_v46 = vadd.f32 1.0, %v6479_v8  ;;  %v3699_v20 = vpop.f32.mrb[67].mxu1  ;;  %v5665_v18 = vadd.f32 %v3921_v1, %v8182_v43  ;;  %v3923_v29 = vpop.f32.mrb[98].mxu0  ;;  %v5405_v56 = vmul.f32 -1.442695, %v5664_v58 }
 0x423   : > { %v6481_v52 = vpop.eup %6480  ;;  %6500 = vrcp.f32 %v4503_v23  ;;  %v5666_v3 = vadd.f32 %v3923_v29, %v8177_v51  ;;  %v5635_v41 = vadd.f32 %v3699_v20, %v8226_v28  ;;  %v3925_v36 = vpop.f32.mrb[99].mxu0  ;;  %v5411_v30 = vmul.f32 -1.442695, %v5634_v37 }
 0x424   : > { %v6483_v40 = vpop.eup %6482  ;;  %4870 = vst [vmem:[%s7984_s16 + $0x340] sm:$0xff] %v6481_v52  ;;  %6502 = vrcp.f32 %v4505_v46  ;;  %v5406_v42 = vmul.f32 -1.442695, %v5665_v18  ;;  %v5667_v2 = vadd.f32 %v3925_v36, %v8182_v43 }
 0x425   : > { %v6485_v26 = vpop.eup %6484  ;;  %4872 = vst [vmem:[%s7984_s16 + $0x350] sm:$0xff] %v6483_v40  ;;  %6504 = vpow2.f32 %v5403_v63  ;;  %v5413_v61 = vmul.f32 -1.442695, %v5666_v3  ;;  %v5412_v48 = vmul.f32 -1.442695, %v5635_v41  ;;  %v3703_v25 = vpop.f32.mrb[68].mxu1 }
 0x426   : > { %v6487_v7 = vpop.eup %6486  ;;  %4871 = vst [vmem:[%s7984_s16 + $0x348] sm:$0xff] %v6485_v26  ;;  %6506 = vpow2.f32 %v5405_v56  ;;  %v5414_v19 = vmul.f32 -1.442695, %v5667_v2  ;;  %v5636_v31 = vadd.f32 %v3703_v25, %v8221_v39  ;;  %v3705_v54 = vpop.f32.mrb[69].mxu1 }
 0x427   : > { %v6489_v4 = vpop.eup %6488  ;;  %4873 = vst [vmem:[%s7984_s16 + $0x358] sm:$0xff] %v6487_v7  ;;  %6508 = vpow2.f32 %v5404_v50  ;;  %v3929_v44 = vpop.f32.mrb[100].mxu0  ;;  %v5637_v17 = vadd.f32 %v3705_v54, %v8226_v28 }
 0x428   : > { %v6491_v15 = vpop.eup %6490  ;;  %4878 = vst [vmem:[%s7984_s16 + $0x380] sm:$0xff] %v6489_v4  ;;  %6510 = vpow2.f32 %v5406_v42  ;;  %v3707_v62 = vpop.f32.mrb[70].mxu1  ;;  %v5419_v53 = vmul.f32 -1.442695, %v5636_v31  ;;  %v5668_v34 = vadd.f32 %v3929_v44, %v8177_v51 }
 0x429   : > { %v6493_v0 = vpop.eup %6492  ;;  %4880 = vst [vmem:[%s7984_s16 + $0x390] sm:$0xff] %v6491_v15  ;;  %6512 = vpow2.f32 %v5411_v30  ;;  %v3931_v45 = vpop.f32.mrb[101].mxu0  ;;  %v5638_v13 = vadd.f32 %v3707_v62, %v8221_v39  ;;  %v5420_v5 = vmul.f32 -1.442695, %v5637_v17 }
 0x42a   : > { %v6495_v49 = vpop.eup %6494  ;;  %4879 = vst [vmem:[%s7984_s16 + $0x388] sm:$0xff] %v6493_v0  ;;  %6514 = vpow2.f32 %v5413_v61  ;;  %v3709_v55 = vpop.f32.mrb[71].mxu1  ;;  %v5669_v32 = vadd.f32 %v3931_v45, %v8182_v43  ;;  %v5421_v14 = vmul.f32 -1.442695, %v5668_v34 }
 0x42b   : > { %v6497_v35 = vpop.eup %6496  ;;  %4881 = vst [vmem:[%s7984_s16 + $0x398] sm:$0xff] %v6495_v49  ;;  %6516 = vpow2.f32 %v5412_v48  ;;  %v3933_v6 = vpop.f32.mrb[102].mxu0  ;;  %v5427_v8 = vmul.f32 -1.442695, %v5638_v13  ;;  %v5639_v31 = vadd.f32 %v3709_v55, %v8226_v28 }
 0x42c   : > { %v6499_v59 = vpop.eup %6498  ;;  %4886 = vst [vmem:[%s7984_s16 + $0x3c0] sm:$0xff] %v6497_v35  ;;  %6518 = vpow2.f32 %v5414_v19  ;;  %v3935_v12 = vpop.f32.mrb[103].mxu0  ;;  %v5422_v38 = vmul.f32 -1.442695, %v5669_v32  ;;  %v5670_v48 = vadd.f32 %v3933_v6, %v8177_v51 }
 0x42d   : > { %v6501_v27 = vpop.eup %6500  ;;  %4888 = vst [vmem:[%s7984_s16 + $0x3d0] sm:$0xff] %v6499_v59  ;;  %6520 = vpow2.f32 %v5419_v53  ;;  %v3713_v21 = vpop.f32.mrb[72].mxu1  ;;  %v5671_v17 = vadd.f32 %v3935_v12, %v8182_v43 }
 0x42e   : > { %v6503_v23 = vpop.eup %6502  ;;  %4887 = vst [vmem:[%s7984_s16 + $0x3c8] sm:$0xff] %v6501_v27  ;;  %6522 = vpow2.f32 %v5421_v14  ;;  %v3715_v63 = vpop.f32.mrb[73].mxu1  ;;  %v5640_v45 = vadd.f32 %v3713_v21, %v8221_v39  ;;  %v5429_v32 = vmul.f32 -1.442695, %v5670_v48  ;;  %v5428_v27 = vmul.f32 -1.442695, %v5639_v31 }
 0x42f   : > { %v6505_v10 = vpop.eup %6504  ;;  %4889 = vst [vmem:[%s7984_s16 + $0x3d8] sm:$0xff] %v6503_v23  ;;  %6524 = vpow2.f32 %v5420_v5  ;;  %v3939_v20 = vpop.f32.mrb[104].mxu0 }
 0x430   : > { %v6507_v57 = vpop.eup %6506  ;;  %v4386_v46 = vadd.f32 1.0, %v6505_v10  ;;  %6526 = vpow2.f32 %v5422_v38  ;;  %v8253_v52 = vpop.f32.mrb[74].mxu1  ;;  %v5672_v6 = vadd.f32 %v3939_v20, %v8177_v51  ;;  %v5641_v38 = vadd.f32 %v3715_v63, %v8226_v28 }
 0x431   : > { %v6509_v58 = vpop.eup %6508  ;;  %v4388_v1 = vadd.f32 1.0, %v6507_v57  ;;  %6528 = vpow2.f32 %v5427_v8  ;;  %v3941_v37 = vpop.f32.mrb[105].mxu0  ;;  %v5430_v10 = vmul.f32 -1.442695, %v5671_v17 }
 0x432   : > { %v6511_v50 = vpop.eup %6510  ;;  %6530 = vrcp.f32 %v4386_v46  ;;  %v4387_v18 = vadd.f32 1.0, %v6509_v58  ;;  %v8255_v29 = vpop.f32.mrb[75].mxu1  ;;  %v5673_v21 = vadd.f32 %v3941_v37, %v8182_v43  ;;  %v5435_v46 = vmul.f32 -1.442695, %v5640_v45 }
 0x433   : > { %v6513_v40 = vpop.eup %6512  ;;  %6532 = vrcp.f32 %v4388_v1  ;;  %v4389_v56 = vadd.f32 1.0, %v6511_v50  ;;  %v3943_v3 = vpop.f32.mrb[106].mxu0  ;;  %v5642_v58 = vadd.f32 %v8253_v52, %v8221_v39  ;;  %v5437_v63 = vmul.f32 -1.442695, %v5672_v6 }
 0x434   : > { %v6515_v41 = vpop.eup %6514  ;;  %6534 = vrcp.f32 %v4387_v18  ;;  %v4394_v36 = vadd.f32 1.0, %v6513_v40  ;;  %v8257_v26 = vpop.f32.mrb[107].mxu0  ;;  %v5674_v20 = vadd.f32 %v3943_v3, %v8177_v51  ;;  %v5436_v37 = vmul.f32 -1.442695, %v5641_v38 }
 0x435   : > { %v6517_v42 = vpop.eup %6516  ;;  %6536 = vrcp.f32 %v4389_v56  ;;  %v4396_v30 = vadd.f32 1.0, %v6515_v41  ;;  %v8260_v25 = vpop.f32.mrb[76].mxu1  ;;  %v5643_v40 = vadd.f32 %v8255_v29, %v8226_v28  ;;  %v5438_v41 = vmul.f32 -1.442695, %v5673_v21 }
 0x436   : > { %v6519_v2 = vpop.eup %6518  ;;  %6538 = vrcp.f32 %v4394_v36  ;;  %v4395_v7 = vadd.f32 1.0, %v6517_v42  ;;  %v8263_v54 = vpop.f32.mrb[77].mxu1  ;;  %v5675_v3 = vadd.f32 %v8257_v26, %v8182_v43  ;;  %v5644_v29 = vadd.f32 %v8260_v25, %v8221_v39 }
 0x437   : > { %v6521_v61 = vpop.eup %6520  ;;  %6540 = vrcp.f32 %v4396_v30  ;;  %v4397_v4 = vadd.f32 1.0, %v6519_v2  ;;  %v3949_v62 = vpop.f32.mrb[108].mxu0  ;;  %v5443_v2 = vmul.f32 -1.442695, %v5642_v58  ;;  %v5445_v26 = vmul.f32 -1.442695, %v5674_v20 }
 0x438   : > { %v6523_v15 = vpop.eup %6522  ;;  %6542 = vrcp.f32 %v4395_v7  ;;  %v4402_v19 = vadd.f32 1.0, %v6521_v61  ;;  %v8266_v49 = vpop.f32.mrb[78].mxu1  ;;  %v5676_v48 = vadd.f32 %v3949_v62, %v8177_v51  ;;  %v5444_v31 = vmul.f32 -1.442695, %v5643_v40 }
 0x439   : > { %v6525_v0 = vpop.eup %6524  ;;  %6544 = vrcp.f32 %v4397_v4  ;;  %v4404_v44 = vadd.f32 1.0, %v6523_v15  ;;  %v8269_v13 = vpop.f32.mrb[109].mxu0  ;;  %v5451_v62 = vmul.f32 -1.442695, %v5644_v29 }
 0x43a   : > { %v6527_v53 = vpop.eup %6526  ;;  %6546 = vrcp.f32 %v4402_v19  ;;  %v4403_v34 = vadd.f32 1.0, %v6525_v0  ;;  %v8271_v35 = vpop.f32.mrb[79].mxu1  ;;  %v5453_v45 = vmul.f32 -1.442695, %v5676_v48 }
 0x43b   : > { %v6529_v55 = vpop.eup %6528  ;;  %6548 = vrcp.f32 %v4404_v44  ;;  %v4405_v5 = vadd.f32 1.0, %v6527_v53  ;;  %v8274_v59 = vpop.f32.mrb[110].mxu0  ;;  %v5446_v44 = vmul.f32 -1.442695, %v5675_v3 }
 0x43c   : > { %v6531_v14 = vpop.eup %6530  ;;  %6550 = vrcp.f32 %v4403_v34  ;;  %v4410_v12 = vadd.f32 1.0, %v6529_v55  ;;  %v8277_v8 = vpop.f32.mrb[111].mxu0 }
 0x43d   : > { %v6533_v23 = vpop.eup %6532  ;;  %4770 = vst [vmem:[%s7984_s16 + $0x20] sm:$0xff] %v6531_v14  ;;  %6552 = vrcp.f32 %v4405_v5  ;;  %v8286_v50 = vpop.f32.mrb[80].mxu1 }
 0x43e   : > { %v6535_v57 = vpop.eup %6534  ;;  %4772 = vst [vmem:[%s7984_s16 + $0x30] sm:$0xff] %v6533_v23  ;;  %6554 = vrcp.f32 %v4410_v12  ;;  %v8291_v56 = vpop.f32.mrb[81].mxu1 }
 0x43f   : > { %v6537_v1 = vpop.eup %6536  ;;  %4771 = vst [vmem:[%s7984_s16 + $0x28] sm:$0xff] %v6535_v57  ;;  %6556 = vpow2.f32 %v5429_v32  ;;  %v8296_v36 = vpop.f32.mrb[112].mxu0 }
 0x440   : > { %v6539_v18 = vpop.eup %6538  ;;  %4773 = vst [vmem:[%s7984_s16 + $0x38] sm:$0xff] %v6537_v1  ;;  %6558 = vpow2.f32 %v5428_v27  ;;  %v8298_v42 = vpop.f32.mrb[82].mxu1 }
 0x441   : > { %v6541_v52 = vpop.eup %6540  ;;  %4778 = vst [vmem:[%s7984_s16 + $0x60] sm:$0xff] %v6539_v18  ;;  %6560 = vpow2.f32 %v5430_v10  ;;  %v8303_v7 = vpop.f32.mrb[113].mxu0 }
 0x442   : > { %v6543_v30 = vpop.eup %6542  ;;  %4780 = vst [vmem:[%s7984_s16 + $0x70] sm:$0xff] %v6541_v52  ;;  %6562 = vpow2.f32 %v5435_v46  ;;  %v8305_v61 = vpop.f32.mrb[83].mxu1 }
 0x443   : > { %v6545_v4 = vpop.eup %6544  ;;  %4779 = vst [vmem:[%s7984_s16 + $0x68] sm:$0xff] %v6543_v30  ;;  %6564 = vpow2.f32 %v5437_v63  ;;  %v8309_v15 = vpop.f32.mrb[114].mxu0 }
 0x444   : > { %v6547_v19 = vpop.eup %6546  ;;  %4781 = vst [vmem:[%s7984_s16 + $0x78] sm:$0xff] %v6545_v4  ;;  %6566 = vpow2.f32 %v5436_v37  ;;  %v3965_v0 = vpop.f32.mrb[115].mxu0 }
 0x445   : > { %v6549_v25 = vpop.eup %6548  ;;  %4786 = vst [vmem:[%s7984_s16 + $0xa0] sm:$0xff] %v6547_v19  ;;  %6568 = vpow2.f32 %v5438_v41  ;;  %v8314_v17 = vadd.f32 %v3965_v0, %v8182_v43  ;;  %v3743_v55 = vpop.f32.mrb[84].mxu1 }
 0x446   : > { %v6551_v53 = vpop.eup %6550  ;;  %4788 = vst [vmem:[%s7984_s16 + $0xb0] sm:$0xff] %v6549_v25  ;;  %6570 = vpow2.f32 %v5443_v2  ;;  %v8320_v32 = vadd.f32 %v3743_v55, %v8221_v39  ;;  %v3745_v6 = vpop.f32.mrb[85].mxu1 }
 0x447   : > { %v6553_v34 = vpop.eup %6552  ;;  %4787 = vst [vmem:[%s7984_s16 + $0xa8] sm:$0xff] %v6551_v53  ;;  %6572 = vpow2.f32 %v5445_v26  ;;  %v3969_v12 = vpop.f32.mrb[116].mxu0  ;;  %v8324_v27 = vadd.f32 %v3745_v6, %v8226_v28 }
 0x448   : > { %v6555_v5 = vpop.eup %6554  ;;  %4789 = vst [vmem:[%s7984_s16 + $0xb8] sm:$0xff] %v6553_v34  ;;  %6574 = vpow2.f32 %v5444_v31  ;;  %v3747_v38 = vpop.f32.mrb[86].mxu1  ;;  %v8327_v21 = vadd.f32 %v3969_v12, %v8177_v51  ;;  %v5677_v12 = vadd.f32 %v8269_v13, %v8182_v43  ;;  %v5678_v13 = vadd.f32 %v8274_v59, %v8177_v51 }
 0x449   : > { %v6557_v14 = vpop.eup %6556  ;;  %4794 = vst [vmem:[%s7984_s16 + $0xe0] sm:$0xff] %v6555_v5  ;;  %6576 = vpow2.f32 %v5446_v44  ;;  %v3971_v57 = vpop.f32.mrb[117].mxu0  ;;  %v8333_v40 = vadd.f32 %v3747_v38, %v8221_v39 }
 0x44a   : > { %v6559_v23 = vpop.eup %6558  ;;  %v4412_v10 = vadd.f32 1.0, %v6557_v14  ;;  %6578 = vpow2.f32 %v5451_v62  ;;  %v3749_v46 = vpop.f32.mrb[87].mxu1  ;;  %v8330_v63 = vadd.f32 %v3971_v57, %v8182_v43 }
 0x44b   : > { %v6561_v58 = vpop.eup %6560  ;;  %v4411_v1 = vadd.f32 1.0, %v6559_v23  ;;  %6580 = vpow2.f32 %v5453_v45  ;;  %v3973_v20 = vpop.f32.mrb[118].mxu0  ;;  %v8339_v4 = vadd.f32 %v3749_v46, %v8226_v28  ;;  %v5645_v45 = vadd.f32 %v8263_v54, %v8226_v28 }
 0x44c   : > { %v6563_v18 = vpop.eup %6562  ;;  %6582 = vrcp.f32 %v4412_v10  ;;  %v4413_v37 = vadd.f32 1.0, %v6561_v58  ;;  %v3975_v52 = vpop.f32.mrb[119].mxu0  ;;  %v8336_v30 = vadd.f32 %v3973_v20, %v8177_v51  ;;  %v5646_v54 = vadd.f32 %v8266_v49, %v8221_v39 }
 0x44d   : > { %v6565_v41 = vpop.eup %6564  ;;  %6584 = vrcp.f32 %v4411_v1  ;;  %v4418_v3 = vadd.f32 1.0, %v6563_v18  ;;  %v8342_v19 = vadd.f32 %v3975_v52, %v8182_v43  ;;  %v3753_v31 = vpop.f32.mrb[88].mxu1  ;;  %v5647_v52 = vadd.f32 %v8271_v35, %v8226_v28 }
 0x44e   : > { %v6567_v2 = vpop.eup %6566  ;;  %6586 = vrcp.f32 %v4413_v37  ;;  %v4420_v29 = vadd.f32 1.0, %v6565_v41  ;;  %v8345_v44 = vadd.f32 %v3753_v31, %v8221_v39  ;;  %v3755_v53 = vpop.f32.mrb[89].mxu1  ;;  %v5452_v37 = vmul.f32 -1.442695, %v5645_v45 }
 0x44f   : > { %v6569_v26 = vpop.eup %6568  ;;  %6588 = vrcp.f32 %v4418_v3  ;;  %v4419_v48 = vadd.f32 1.0, %v6567_v2  ;;  %v8350_v55 = vadd.f32 %v3755_v53, %v8226_v28  ;;  %v3757_v5 = vpop.f32.mrb[90].mxu1  ;;  %v5454_v3 = vmul.f32 -1.442695, %v5677_v12 }
 0x450   : > { %v6571_v0 = vpop.eup %6570  ;;  %6590 = vrcp.f32 %v4420_v29  ;;  %v4421_v25 = vadd.f32 1.0, %v6569_v26  ;;  %v8355_v38 = vadd.f32 %v3757_v5, %v8221_v39  ;;  %v3759_v23 = vpop.f32.mrb[91].mxu1  ;;  %v5679_v2 = vadd.f32 %v8277_v8, %v8182_v43 }
 0x451   : > { %v6573_v62 = vpop.eup %6572  ;;  %6592 = vrcp.f32 %v4419_v48  ;;  %v4426_v34 = vadd.f32 1.0, %v6571_v0  ;;  %v8360_v46 = vadd.f32 %v3759_v23, %v8226_v28  ;;  %v5459_v59 = vmul.f32 -1.442695, %v5646_v54 }
 0x452   : > { %v6575_v6 = vpop.eup %6574  ;;  %6594 = vrcp.f32 %v4421_v25  ;;  %v4428_v14 = vadd.f32 1.0, %v6573_v62  ;;  %v5648_v26 = vadd.f32 %v8286_v50, %v8221_v39  ;;  %v5461_v35 = vmul.f32 -1.442695, %v5678_v13 }
 0x453   : > { %v6577_v10 = vpop.eup %6576  ;;  %6596 = vrcp.f32 %v4426_v34  ;;  %v4427_v57 = vadd.f32 1.0, %v6575_v6  ;;  %v5680_v0 = vadd.f32 %v8296_v36, %v8177_v51  ;;  %v5460_v62 = vmul.f32 -1.442695, %v5647_v52 }
 0x454   : > { %v6579_v58 = vpop.eup %6578  ;;  %6598 = vrcp.f32 %v4428_v14  ;;  %v4429_v1 = vadd.f32 1.0, %v6577_v10  ;;  %v5649_v50 = vadd.f32 %v8291_v56, %v8226_v28  ;;  %v5462_v36 = vmul.f32 -1.442695, %v5679_v2 }
 0x455   : > { %v6581_v20 = vpop.eup %6580  ;;  %6600 = vrcp.f32 %v4427_v57  ;;  %v4434_v18 = vadd.f32 1.0, %v6579_v58  ;;  %v3763_v48 = vpop.f32.mrb[92].mxu1  ;;  %v5681_v6 = vadd.f32 %v8303_v7, %v8182_v43  ;;  %v5467_v56 = vmul.f32 -1.442695, %v5648_v26 }
 0x456   : > { %v6583_v41 = vpop.eup %6582  ;;  %6602 = vrcp.f32 %v4429_v1  ;;  %v4436_v49 = vadd.f32 1.0, %v6581_v20  ;;  %v8375_v25 = vadd.f32 %v3763_v48, %v8221_v39  ;;  %v3765_v8 = vpop.f32.mrb[93].mxu1  ;;  %v5650_v10 = vadd.f32 %v8298_v42, %v8221_v39 }
 0x457   : > { %v6585_v29 = vpop.eup %6584  ;;  %4796 = vst [vmem:[%s7984_s16 + $0xf0] sm:$0xff] %v6583_v41  ;;  %6604 = vrcp.f32 %v4434_v18  ;;  %v8381_v34 = vadd.f32 %v3765_v8, %v8226_v28  ;;  %v3767_v45 = vpop.f32.mrb[94].mxu1  ;;  %v5469_v43 = vmul.f32 -1.442695, %v5680_v0  ;;  %v5682_v7 = vadd.f32 %v8309_v15, %v8177_v51 }
 0x458   : > { %v6587_v31 = vpop.eup %6586  ;;  %4795 = vst [vmem:[%s7984_s16 + $0xe8] sm:$0xff] %v6585_v29  ;;  %6606 = vrcp.f32 %v4436_v49  ;;  %v8387_v14 = vadd.f32 %v3767_v45, %v8221_v39  ;;  %v3769_v12 = vpop.f32.mrb[95].mxu1  ;;  %v5468_v1 = vmul.f32 -1.442695, %v5649_v50  ;;  %v5651_v13 = vadd.f32 %v8305_v61, %v8226_v28 }
 0x459   : > { %v6589_v53 = vpop.eup %6588  ;;  %4797 = vst [vmem:[%s7984_s16 + $0xf8] sm:$0xff] %v6587_v31  ;;  %6608 = vpow2.f32 %v5452_v37  ;;  %v8393_v57 = vadd.f32 %v3769_v12, %v8226_v28  ;;  %v5470_v42 = vmul.f32 -1.442695, %v5681_v6  ;;  %v5475_v18 = vmul.f32 -1.442695, %v5650_v10 }
 0x45a   : > { %v6591_v5 = vpop.eup %6590  ;;  %4802 = vst [vmem:[%s7984_s16 + $0x120] sm:$0xff] %v6589_v53  ;;  %6610 = vpow2.f32 %v5454_v3  ;;  %v5477_v15 = vmul.f32 -1.442695, %v5682_v7  ;;  %v5476_v41 = vmul.f32 -1.442695, %v5651_v13 }
 0x45b   : > { %v6593_v23 = vpop.eup %6592  ;;  %4804 = vst [vmem:[%s7984_s16 + $0x130] sm:$0xff] %v6591_v5  ;;  %6612 = vpow2.f32 %v5459_v59 }
 0x45c   : > { %v6595_v54 = vpop.eup %6594  ;;  %4803 = vst [vmem:[%s7984_s16 + $0x128] sm:$0xff] %v6593_v23  ;;  %6614 = vpow2.f32 %v5461_v35 }
 0x45d   : > { %v6597_v58 = vpop.eup %6596  ;;  %4805 = vst [vmem:[%s7984_s16 + $0x138] sm:$0xff] %v6595_v54  ;;  %6616 = vpow2.f32 %v5460_v62  ;;  %v3979_v37 = vpop.f32.mrb[96].mxu1 }
 0x45e   : > { %v6599_v39 = vpop.eup %6598  ;;  %4810 = vst [vmem:[%s7984_s16 + $0x160] sm:$0xff] %v6597_v58  ;;  %6618 = vpow2.f32 %v5462_v36  ;;  %v8405_v52 = vadd.f32 %v3979_v37, %v8191_v33  ;;  %v3981_v28 = vpop.f32.mrb[97].mxu1  ;;  %v5478_v37 = vmul.f32 -1.442695, %v8314_v17  ;;  %v5486_v17 = vmul.f32 -1.442695, %v8330_v63 }
 0x45f   : > { %v6601_v20 = vpop.eup %6600  ;;  %4812 = vst [vmem:[%s7984_s16 + $0x170] sm:$0xff] %v6599_v39  ;;  %6620 = vpow2.f32 %v5467_v56  ;;  %v8409_v49 = vadd.f32 %v3981_v28, %v8196_v16  ;;  %v3983_v3 = vpop.f32.mrb[98].mxu1  ;;  %v5494_v63 = vmul.f32 -1.442695, %v8342_v19  ;;  %v5508_v19 = vmul.f32 -1.442695, %v8360_v46 }
 0x460   : > { %v6603_v51 = vpop.eup %6602  ;;  %4811 = vst [vmem:[%s7984_s16 + $0x168] sm:$0xff] %v6601_v20  ;;  %6622 = vpow2.f32 %v5469_v43  ;;  %v8413_v29 = vadd.f32 %v3983_v3, %v8200_v11  ;;  %v3985_v59 = vpop.f32.mrb[99].mxu1  ;;  %v5484_v3 = vmul.f32 -1.442695, %v8324_v27  ;;  %v5492_v27 = vmul.f32 -1.442695, %v8339_v4 }
 0x461   : > { %v6605_v61 = vpop.eup %6604  ;;  %4813 = vst [vmem:[%s7984_s16 + $0x178] sm:$0xff] %v6603_v51  ;;  %6624 = vpow2.f32 %v5468_v1  ;;  %v8417_v33 = vadd.f32 %v3985_v59, %v8204_v47  ;;  %v5507_v4 = vmul.f32 -1.442695, %v8355_v38 }
 0x462   : > { %v6607_v2 = vpop.eup %6606  ;;  %4818 = vst [vmem:[%s7984_s16 + $0x1a0] sm:$0xff] %v6605_v61  ;;  %6626 = vpow2.f32 %v5470_v42  ;;  %v5485_v61 = vmul.f32 -1.442695, %v8327_v21  ;;  %v5493_v21 = vmul.f32 -1.442695, %v8336_v30 }
 0x463   : > { %v6609_v26 = vpop.eup %6608  ;;  %4820 = vst [vmem:[%s7984_s16 + $0x1b0] sm:$0xff] %v6607_v2  ;;  %6628 = vpow2.f32 %v5475_v18  ;;  %v5500_v30 = vmul.f32 -1.442695, %v8350_v55 }
 0x464   : > { %v6611_v48 = vpop.eup %6610  ;;  %v4435_v31 = vadd.f32 1.0, %v6609_v26  ;;  %6630 = vpow2.f32 %v5477_v15  ;;  %v5483_v15 = vmul.f32 -1.442695, %v8320_v32  ;;  %v5491_v32 = vmul.f32 -1.442695, %v8333_v40 }
 0x465   : > { %v6613_v35 = vpop.eup %6612  ;;  %v4437_v16 = vadd.f32 1.0, %v6611_v48  ;;  %6632 = vpow2.f32 %v5476_v41  ;;  %v3989_v62 = vpop.f32.mrb[100].mxu1  ;;  %v5499_v40 = vmul.f32 -1.442695, %v8345_v44 }
 0x466   : > { %v6615_v0 = vpop.eup %6614  ;;  %6634 = vrcp.f32 %v4435_v31  ;;  %v4442_v8 = vadd.f32 1.0, %v6613_v35  ;;  %v8420_v5 = vadd.f32 %v3989_v62, %v8210_v22  ;;  %v3991_v47 = vpop.f32.mrb[101].mxu1 }
 0x467   : > { %v6617_v53 = vpop.eup %6616  ;;  %6636 = vrcp.f32 %v4437_v16  ;;  %v4444_v11 = vadd.f32 1.0, %v6615_v0  ;;  %v8423_v12 = vadd.f32 %v3991_v47, %v8213_v60  ;;  %v3993_v23 = vpop.f32.mrb[102].mxu1 }
 0x468   : > { %v6619_v50 = vpop.eup %6618  ;;  %6638 = vrcp.f32 %v4442_v8  ;;  %v4443_v45 = vadd.f32 1.0, %v6617_v53  ;;  %v8426_v54 = vadd.f32 %v3993_v23, %v8216_v24  ;;  %v3995_v43 = vpop.f32.mrb[103].mxu1 }
 0x469   : > { %v6621_v36 = vpop.eup %6620  ;;  %6640 = vrcp.f32 %v4444_v11  ;;  %v4445_v6 = vadd.f32 1.0, %v6619_v50  ;;  %v8429_v22 = vadd.f32 %v3995_v43, %v8224_v9 }
 0x46a   : > { %v6623_v56 = vpop.eup %6622  ;;  %6642 = vrcp.f32 %v4443_v45  ;;  %v4450_v10 = vadd.f32 1.0, %v6621_v36 }
 0x46b   : > { %v6625_v7 = vpop.eup %6624  ;;  %6644 = vrcp.f32 %v4445_v6  ;;  %v4452_v58 = vadd.f32 1.0, %v6623_v56 }
 0x46c   : > { %v6627_v1 = vpop.eup %6626  ;;  %6646 = vrcp.f32 %v4450_v10  ;;  %v4451_v13 = vadd.f32 1.0, %v6625_v7 }
 0x46d   : > { %v6629_v60 = vpop.eup %6628  ;;  %6648 = vrcp.f32 %v4452_v58  ;;  %v4453_v39 = vadd.f32 1.0, %v6627_v1 }
 0x46e   : > { %v6631_v42 = vpop.eup %6630  ;;  %6650 = vrcp.f32 %v4451_v13  ;;  %v4458_v20 = vadd.f32 1.0, %v6629_v60 }
 0x46f   : > { %v6633_v24 = vpop.eup %6632  ;;  %6652 = vrcp.f32 %v4453_v39  ;;  %v4460_v18 = vadd.f32 1.0, %v6631_v42 }
 0x470   : > { %v6635_v51 = vpop.eup %6634  ;;  %6654 = vrcp.f32 %v4458_v20  ;;  %v4459_v9 = vadd.f32 1.0, %v6633_v24 }
 0x471   : > { %v6637_v28 = vpop.eup %6636  ;;  %4819 = vst [vmem:[%s7984_s16 + $0x1a8] sm:$0xff] %v6635_v51  ;;  %6656 = vrcp.f32 %v4460_v18 }
 0x472   : > { %v6639_v41 = vpop.eup %6638  ;;  %4821 = vst [vmem:[%s7984_s16 + $0x1b8] sm:$0xff] %v6637_v28  ;;  %6658 = vrcp.f32 %v4459_v9 }
 0x473   : > { %v6641_v2 = vpop.eup %6640  ;;  %4826 = vst [vmem:[%s7984_s16 + $0x1e0] sm:$0xff] %v6639_v41  ;;  %6660 = vpow2.f32 %v5478_v37  ;;  %v5515_v37 = vmul.f32 -1.442695, %v8375_v25  ;;  %v5501_v25 = vmul.f32 -1.442695, %v8405_v52 }
 0x474   : > { %v6643_v59 = vpop.eup %6642  ;;  %4828 = vst [vmem:[%s7984_s16 + $0x1f0] sm:$0xff] %v6641_v2  ;;  %6662 = vpow2.f32 %v5483_v15  ;;  %v5516_v15 = vmul.f32 -1.442695, %v8381_v34  ;;  %v5502_v34 = vmul.f32 -1.442695, %v8409_v49 }
 0x475   : > { %v6645_v26 = vpop.eup %6644  ;;  %4827 = vst [vmem:[%s7984_s16 + $0x1e8] sm:$0xff] %v6643_v59  ;;  %6664 = vpow2.f32 %v5485_v61  ;;  %v5523_v61 = vmul.f32 -1.442695, %v8387_v14  ;;  %v5509_v14 = vmul.f32 -1.442695, %v8413_v29 }
 0x476   : > { %v6647_v48 = vpop.eup %6646  ;;  %4829 = vst [vmem:[%s7984_s16 + $0x1f8] sm:$0xff] %v6645_v26  ;;  %6666 = vpow2.f32 %v5484_v3  ;;  %v5524_v3 = vmul.f32 -1.442695, %v8393_v57  ;;  %v5510_v57 = vmul.f32 -1.442695, %v8417_v33 }
 0x477   : > { %v6649_v31 = vpop.eup %6648  ;;  %4834 = vst [vmem:[%s7984_s16 + $0x220] sm:$0xff] %v6647_v48  ;;  %6668 = vpow2.f32 %v5486_v17  ;;  %v5517_v52 = vmul.f32 -1.442695, %v8420_v5  ;;  %v5518_v49 = vmul.f32 -1.442695, %v8423_v12 }
 0x478   : > { %v6651_v35 = vpop.eup %6650  ;;  %4836 = vst [vmem:[%s7984_s16 + $0x230] sm:$0xff] %v6649_v31  ;;  %6670 = vpow2.f32 %v5491_v32  ;;  %v5525_v48 = vmul.f32 -1.442695, %v8426_v54  ;;  %v5526_v33 = vmul.f32 -1.442695, %v8429_v22 }
 0x479   : > { %v6653_v16 = vpop.eup %6652  ;;  %4835 = vst [vmem:[%s7984_s16 + $0x228] sm:$0xff] %v6651_v35  ;;  %6672 = vpow2.f32 %v5493_v21 }
 0x47a   : > { %v6655_v0 = vpop.eup %6654  ;;  %4837 = vst [vmem:[%s7984_s16 + $0x238] sm:$0xff] %v6653_v16  ;;  %6674 = vpow2.f32 %v5492_v27 }
 0x47b   : > { %v6657_v8 = vpop.eup %6656  ;;  %4842 = vst [vmem:[%s7984_s16 + $0x260] sm:$0xff] %v6655_v0  ;;  %6676 = vpow2.f32 %v5494_v63 }
 0x47c   : > { %v6659_v53 = vpop.eup %6658  ;;  %4844 = vst [vmem:[%s7984_s16 + $0x270] sm:$0xff] %v6657_v8  ;;  %6678 = vpow2.f32 %v5499_v40 }
 0x47d   : > { %v6661_v44 = vpop.eup %6660  ;;  %4843 = vst [vmem:[%s7984_s16 + $0x268] sm:$0xff] %v6659_v53  ;;  %6680 = vpow2.f32 %v5500_v30 }
 0x47e   : > { %v6663_v11 = vpop.eup %6662  ;;  %v4461_v62 = vadd.f32 1.0, %v6661_v44  ;;  %6682 = vpow2.f32 %v5507_v4 }
 0x47f   : > { %v6665_v55 = vpop.eup %6664  ;;  %v4466_v50 = vadd.f32 1.0, %v6663_v11  ;;  %6684 = vpow2.f32 %v5508_v19 }
 0x480   : > { %v6667_v45 = vpop.eup %6666  ;;  %6686 = vrcp.f32 %v4461_v62  ;;  %v4468_v38 = vadd.f32 1.0, %v6665_v55 }
 0x481   : > { %v6669_v47 = vpop.eup %6668  ;;  %6688 = vrcp.f32 %v4466_v50  ;;  %v4467_v36 = vadd.f32 1.0, %v6667_v45 }
 0x482   : > { %v6671_v6 = vpop.eup %6670  ;;  %6690 = vrcp.f32 %v4468_v38  ;;  %v4469_v46 = vadd.f32 1.0, %v6669_v47 }
 0x483   : > { %v6673_v23 = vpop.eup %6672  ;;  %6692 = vrcp.f32 %v4467_v36  ;;  %v4474_v56 = vadd.f32 1.0, %v6671_v6 }
 0x484   : > { %v6675_v10 = vpop.eup %6674  ;;  %6694 = vrcp.f32 %v4469_v46  ;;  %v4476_v43 = vadd.f32 1.0, %v6673_v23 }
 0x485   : > { %v6677_v7 = vpop.eup %6676  ;;  %6696 = vrcp.f32 %v4474_v56  ;;  %v4475_v58 = vadd.f32 1.0, %v6675_v10 }
 0x486   : > { %v6679_v1 = vpop.eup %6678  ;;  %6698 = vrcp.f32 %v4476_v43  ;;  %v4477_v13 = vadd.f32 1.0, %v6677_v7 }
 0x487   : > { %v6681_v60 = vpop.eup %6680  ;;  %6700 = vrcp.f32 %v4475_v58  ;;  %v4482_v39 = vadd.f32 1.0, %v6679_v1 }
 0x488   : > { %v6683_v42 = vpop.eup %6682  ;;  %6702 = vrcp.f32 %v4477_v13  ;;  %v4483_v20 = vadd.f32 1.0, %v6681_v60 }
 0x489   : > { %v6685_v24 = vpop.eup %6684  ;;  %6704 = vrcp.f32 %v4482_v39  ;;  %v4490_v18 = vadd.f32 1.0, %v6683_v42 }
 0x48a   : > { %v6687_v51 = vpop.eup %6686  ;;  %6706 = vrcp.f32 %v4483_v20  ;;  %v4491_v9 = vadd.f32 1.0, %v6685_v24 }
 0x48b   : > { %v6689_v28 = vpop.eup %6688  ;;  %4845 = vst [vmem:[%s7984_s16 + $0x278] sm:$0xff] %v6687_v51  ;;  %6708 = vrcp.f32 %v4490_v18 }
 0x48c   : > { %v6691_v41 = vpop.eup %6690  ;;  %4850 = vst [vmem:[%s7984_s16 + $0x2a0] sm:$0xff] %v6689_v28  ;;  %6710 = vrcp.f32 %v4491_v9 }
 0x48d   : > { %v6693_v2 = vpop.eup %6692  ;;  %4852 = vst [vmem:[%s7984_s16 + $0x2b0] sm:$0xff] %v6691_v41  ;;  %6712 = vpow2.f32 %v5515_v37 }
 0x48e   : > { %v6695_v17 = vpop.eup %6694  ;;  %4851 = vst [vmem:[%s7984_s16 + $0x2a8] sm:$0xff] %v6693_v2  ;;  %6714 = vpow2.f32 %v5516_v15 }
 0x48f   : > { %v6697_v59 = vpop.eup %6696  ;;  %4853 = vst [vmem:[%s7984_s16 + $0x2b8] sm:$0xff] %v6695_v17  ;;  %6716 = vpow2.f32 %v5523_v61 }
 0x490   : > { %v6699_v32 = vpop.eup %6698  ;;  %4858 = vst [vmem:[%s7984_s16 + $0x2e0] sm:$0xff] %v6697_v59  ;;  %6718 = vpow2.f32 %v5524_v3 }
 0x491   : > { %v6701_v26 = vpop.eup %6700  ;;  %4860 = vst [vmem:[%s7984_s16 + $0x2f0] sm:$0xff] %v6699_v32  ;;  %6720 = vpow2.f32 %v5501_v25 }
 0x492   : > { %v6703_v21 = vpop.eup %6702  ;;  %4859 = vst [vmem:[%s7984_s16 + $0x2e8] sm:$0xff] %v6701_v26  ;;  %6722 = vpow2.f32 %v5502_v34 }
 0x493   : > { %v6705_v29 = vpop.eup %6704  ;;  %4861 = vst [vmem:[%s7984_s16 + $0x2f8] sm:$0xff] %v6703_v21  ;;  %6724 = vpow2.f32 %v5509_v14 }
 0x494   : > { %v6707_v27 = vpop.eup %6706  ;;  %4866 = vst [vmem:[%s7984_s16 + $0x320] sm:$0xff] %v6705_v29  ;;  %6726 = vpow2.f32 %v5510_v57 }
 0x495   : > { %v6709_v31 = vpop.eup %6708  ;;  %4867 = vst [vmem:[%s7984_s16 + $0x328] sm:$0xff] %v6707_v27  ;;  %6728 = vpow2.f32 %v5517_v52 }
 0x496   : > { %v6711_v5 = vpop.eup %6710  ;;  %4874 = vst [vmem:[%s7984_s16 + $0x360] sm:$0xff] %v6709_v31  ;;  %6730 = vpow2.f32 %v5518_v49 }
 0x497   : > { %v6713_v63 = vpop.eup %6712  ;;  %4875 = vst [vmem:[%s7984_s16 + $0x368] sm:$0xff] %v6711_v5  ;;  %6732 = vpow2.f32 %v5525_v48 }
 0x498   : > { %v6715_v12 = vpop.eup %6714  ;;  %v4498_v35 = vadd.f32 1.0, %v6713_v63  ;;  %6734 = vpow2.f32 %v5526_v33 }
 0x499   : > { %v6717_v40 = vpop.eup %6716  ;;  %v4499_v16 = vadd.f32 1.0, %v6715_v12 }
 0x49a   : > { %v6719_v54 = vpop.eup %6718  ;;  %6736 = vrcp.f32 %v4498_v35  ;;  %v4506_v30 = vadd.f32 1.0, %v6717_v40 }
 0x49b   : > { %v6721_v0 = vpop.eup %6720  ;;  %6738 = vrcp.f32 %v4499_v16  ;;  %v4507_v22 = vadd.f32 1.0, %v6719_v54 }
 0x49c   : > { %v6723_v4 = vpop.eup %6722  ;;  %6740 = vrcp.f32 %v4506_v30  ;;  %v4484_v8 = vadd.f32 1.0, %v6721_v0 }
 0x49d   : > { %v6725_v19 = vpop.eup %6724  ;;  %6742 = vrcp.f32 %v4507_v22  ;;  %v4485_v53 = vadd.f32 1.0, %v6723_v4 }
 0x49e   : > { %v6727_v44 = vpop.eup %6726  ;;  %6744 = vrcp.f32 %v4484_v8  ;;  %v4492_v11 = vadd.f32 1.0, %v6725_v19 }
 0x49f   : > { %v6729_v62 = vpop.eup %6728  ;;  %6746 = vrcp.f32 %v4485_v53  ;;  %v4493_v55 = vadd.f32 1.0, %v6727_v44 }
 0x4a0   : > { %v6731_v50 = vpop.eup %6730  ;;  %6748 = vrcp.f32 %v4492_v11  ;;  %v4500_v45 = vadd.f32 1.0, %v6729_v62 }
 0x4a1   : > { %v6733_v38 = vpop.eup %6732  ;;  %6750 = vrcp.f32 %v4493_v55  ;;  %v4501_v47 = vadd.f32 1.0, %v6731_v50 }
 0x4a2   : > { %v6735_v36 = vpop.eup %6734  ;;  %6752 = vrcp.f32 %v4500_v45  ;;  %v4508_v6 = vadd.f32 1.0, %v6733_v38 }
 0x4a3   : > { %6754 = vrcp.f32 %v4501_v47  ;;  %v4509_v46 = vadd.f32 1.0, %v6735_v36 }
 0x4a4   : > { %v6737_v23 = vpop.eup %6736  ;;  %6756 = vrcp.f32 %v4508_v6 }
 0x4a5   : > { %v6739_v56 = vpop.eup %6738  ;;  %4882 = vst [vmem:[%s7984_s16 + $0x3a0] sm:$0xff] %v6737_v23  ;;  %6758 = vrcp.f32 %v4509_v46 }
 0x4a6   : > { %v6741_v10 = vpop.eup %6740  ;;  %4883 = vst [vmem:[%s7984_s16 + $0x3a8] sm:$0xff] %v6739_v56 }
 0x4a7   : > { %v6743_v43 = vpop.eup %6742  ;;  %4890 = vst [vmem:[%s7984_s16 + $0x3e0] sm:$0xff] %v6741_v10 }
 0x4a8   : > { %v6745_v7 = vpop.eup %6744  ;;  %4891 = vst [vmem:[%s7984_s16 + $0x3e8] sm:$0xff] %v6743_v43 }
 0x4a9   : > { %v6747_v58 = vpop.eup %6746  ;;  %4868 = vst [vmem:[%s7984_s16 + $0x330] sm:$0xff] %v6745_v7 }
 0x4aa   : > { %v6749_v1 = vpop.eup %6748  ;;  %4869 = vst [vmem:[%s7984_s16 + $0x338] sm:$0xff] %v6747_v58 }
 0x4ab   : > { %v6751_v13 = vpop.eup %6750  ;;  %4876 = vst [vmem:[%s7984_s16 + $0x370] sm:$0xff] %v6749_v1 }
 0x4ac   : > { %v6753_v60 = vpop.eup %6752  ;;  %4877 = vst [vmem:[%s7984_s16 + $0x378] sm:$0xff] %v6751_v13 }
 0x4ad   : > { %v6755_v39 = vpop.eup %6754  ;;  %4884 = vst [vmem:[%s7984_s16 + $0x3b0] sm:$0xff] %v6753_v60 }
 0x4ae   : > { %v6757_v42 = vpop.eup %6756  ;;  %4885 = vst [vmem:[%s7984_s16 + $0x3b8] sm:$0xff] %v6755_v39 }
 0x4af   : > { %v6759_v20 = vpop.eup %6758  ;;  %4892 = vst [vmem:[%s7984_s16 + $0x3f0] sm:$0xff] %v6757_v42 }
 0x4b0   : > { %4893 = vst [vmem:[%s7984_s16 + $0x3f8] sm:$0xff] %v6759_v20 }
 0x4b1   : > { %6888 = shalt.err (!%p6885_p0)
}
 0x4b2   : > { %s6889_s18 = scalar_lea.hbm %s8496_s23, 16384  ;;  %s6893_s16 = scalar_lea.hbm %s8590_s21, 32768 }
 0x4b3   : > { %p6890_p4 = scmp.ne.s32.totalorder %s8496_s23, %s6889_s18  ;;  %p6894_p12 = scmp.lt.u32.totalorder %s8496_s23, %s8590_s21 }
 0x4b4   : > { %p6895_p1 = scmp.lt.u32.totalorder %s6893_s16, %s6889_s18  ;;  %p6897_p13 = scmp.lt.u32.totalorder %s6889_s18, %s8496_s23 }
 0x4b5   : > { %p6891_p2 = pnand %p6890_p4, %p7171_p10 }
 0x4b6   : > { %p6896_p11 = por %p6895_p1, %p6894_p12 }
 0x4b7   : > { %p6892_p8 = pneg %p6891_p2 }
 0x4b8   : > { %p6898_p6 = por %p6897_p13, %p6896_p11 }
 0x4ba   : > { %p6899_p3 = pnand %p6898_p6, %p6892_p8 }
 0x4bc   : > { %6902 = shalt.err (!%p6899_p3)
}
 0x4bd   : > { %s6981_s15 = smov 1024   ;;  %s6982_s7 = smov 64  }
 0x4be   : > { %5838 = dma.vmem_to_hbm [thread:$0]  (%p7171_p10), %s8498_s30, 16384, %s8496_s23, %s4895_s27, %s6981_s15, %s6981_s15, %s6982_s7  }
 0x4bf PF: > { %s8591_s22 = sld [smem:[#allocation16_spill]]  ;;  %s8592_s9 = sld [smem:[#allocation17_spill]] }
 0x4c0   : > { %p8594_p7 = scmp.ge.s32.totalorder %s6965_s29, 2 }
 0x4c5   : > { %s4926_s11 = sand.u32 1, %s8591_s22   ;;  %p8593_p5 = scmp.ne.s32.totalorder %s8592_s9, 0 }
 0x4c6   : > { %s4927_s13 = scalar_lea.sflag [#allocation5], %s4926_s11 }
 0x4c7   : > { %p5855_p9 = pnand %p8594_p7, %p8593_p5 }
 0x4c9   : > { %6940 = dma.done.wait (!%p5855_p9), %s4927_s13, 16384  }
 0x4ca   : > { %6942 = vsyncadd (!%p5855_p9), %s4927_s13, 4294950912  ;;  %s25_s29 = sadd.s32 1, %s6965_s29   ;;  %s8595_s24 = smov %s6949_s25 }
 0x4cb   : > { %p22_p0 = scmp.ge.s32.totalorder %s25_s29, 4   ;;  %s8596_s25 = smov %s6953_s26 }
 0x4cc   : > { %s8597_s26 = smov %s7183_s8  ;;  %s8598_s27 = smov %s6961_s28 }
 0x4cd   : > { %s8599_s28 = smov %s8601_s19  ;;  %24 = sbr.rel (!%p22_p0) target bundleno = 11 (0xb), region = 113 }
 0x4d4   :  { %4932 = vsyncpa [#allocation4], 1 }
 0x4d5   :  { %4934 = vsyncpa [#allocation4 + $0x1], 1 }
 0x4d6   :  { %4935 = vsyncpa [#allocation7], 1 }
 0x4d7   :  { %4936 = vsyncpa [#allocation10], 1 }
 0x4d8   :  { %4937 = vsyncpa [#allocation5], 1 }
 0x4d9   :  { %4939 = vsyncpa [#allocation5 + $0x1], 1 }

</bundles_post_ra>
